<compile_context>
chip_gen: v6e
topology: v6e:2x2x1
jax: 0.10.0
libtpu: 0.0.40
codegen_flags: <defaults>
</compile_context>

<pallas_src>
import functools

import jax
import jax.numpy as jnp
from jax.experimental import pallas as pl
from jax.experimental.pallas import tpu as pltpu

_VMEM_LIMIT = 32 * 1024 * 1024


# --------------------------------------------------------------------------
# Pallas kernels
# --------------------------------------------------------------------------

def _fused_linear_kernel(x_ref, w_ref, b_ref, o_ref):
    # Fused [Linear -> ConvTranspose2d on a 1x1 input -> ReLU] as one matmul.
    acc = jnp.dot(x_ref[...], w_ref[...], preferred_element_type=jnp.float32)
    acc = jnp.maximum(acc + b_ref[...], 0.0)
    o_ref[...] = acc.astype(o_ref.dtype)


def fused_linear(x, w, b, out_dtype=jnp.bfloat16):
    BT, Din = x.shape
    Dout = w.shape[1]
    return pl.pallas_call(
        _fused_linear_kernel,
        out_shape=jax.ShapeDtypeStruct((BT, Dout), out_dtype),
        grid=(1,),
        in_specs=[
            pl.BlockSpec((BT, Din), lambda i: (0, 0)),
            pl.BlockSpec((Din, Dout), lambda i: (0, 0)),
            pl.BlockSpec((1, Dout), lambda i: (0, 0)),
        ],
        out_specs=pl.BlockSpec((BT, Dout), lambda i: (0, 0)),
        compiler_params=pltpu.CompilerParams(
            dimension_semantics=("arbitrary",),
            vmem_limit_bytes=_VMEM_LIMIT),
    )(x, w, b)


def _phase_conv_kernel(xp_ref, w_ref, b_ref, o_ref, *, Mmax, Hc, Wc, apply_relu):
    # Phase-decomposed ConvTranspose2d over the UNDILATED input:
    #   xp: (1, Hc+Mmax-1, Wc+Mmax-1, Cin)   input padded by Mmax-1 zeros
    #   w : (Mmax*Mmax*Cin, s*s*Cout)        flipped phase sub-kernels (bf16)
    #   b : (1, s*s*Cout)                    bias tiled over phases (f32)
    #   o : (1, Hc*Wc, s*s*Cout)             phase-packed output
    # Single im2col matmul per batch element (one grid step per image).
    slices = []
    for m in range(Mmax):
        for n in range(Mmax):
            slices.append(xp_ref[0, m:m + Hc, n:n + Wc, :])
    patches = jnp.concatenate(slices, axis=-1)        # (Hc, Wc, Mmax^2*Cin)
    patches = patches.reshape(Hc * Wc, -1)            # (Hc*Wc, Mmax^2*Cin)
    acc = jnp.dot(patches, w_ref[...], preferred_element_type=jnp.float32)
    acc = acc + b_ref[...]
    if apply_relu:
        acc = jnp.maximum(acc, 0.0)
    o_ref[0] = acc.astype(o_ref.dtype)


def conv_transpose2d_phase(x, wm, b_phase, *, stride, kernel_size, padding,
                           apply_relu, out_dtype=jnp.bfloat16):
    # x: (N, H, W, Cin) NHWC (bf16) -> (N, Ho, Wo, Cout) NHWC (out_dtype).
    N, H, W, Cin = x.shape
    s, K, p = stride, kernel_size, padding
    Mmax = -(-K // s)                       # taps per phase = ceil(K / s)
    halo = Mmax - 1
    Hc, Wc = H + halo, W + halo             # phase-output spatial size
    Ho = (H - 1) * s + K - 2 * p
    Wo = (W - 1) * s + K - 2 * p
    Pout = b_phase.shape[1]
    Cout = Pout // (s * s)

    xp = jnp.pad(x, ((0, 0), (halo, halo), (halo, halo), (0, 0)))
    Hp, Wp = xp.shape[1], xp.shape[2]

    kernel = functools.partial(_phase_conv_kernel, Mmax=Mmax, Hc=Hc, Wc=Wc,
                               apply_relu=apply_relu)
    y = pl.pallas_call(
        kernel,
        out_shape=jax.ShapeDtypeStruct((N, Hc * Wc, Pout), out_dtype),
        grid=(N,),
        in_specs=[
            pl.BlockSpec((1, Hp, Wp, Cin), lambda n: (n, 0, 0, 0)),
            pl.BlockSpec(wm.shape, lambda n: (0, 0)),
            pl.BlockSpec((1, Pout), lambda n: (0, 0)),
        ],
        out_specs=pl.BlockSpec((1, Hc * Wc, Pout), lambda n: (n, 0, 0)),
        compiler_params=pltpu.CompilerParams(
            dimension_semantics=("parallel",),
            vmem_limit_bytes=_VMEM_LIMIT),
    )(xp, wm, b_phase)

    # Pixel-shuffle the s*s phases back onto the spatial grid and crop the
    # transposed-conv `padding` border (plain-JAX glue on a small tensor).
    y = y.reshape(N, Hc, Wc, s, s, Cout)
    y = jnp.transpose(y, (0, 1, 3, 2, 4, 5)).reshape(N, Hc * s, Wc * s, Cout)
    return y[:, p:p + Ho, p:p + Wo, :]


def _resize_kernel(x_ref, wy_ref, wxt_ref, o_ref):
    # Separable bilinear resize; all channels of one image per grid step.
    # x: (1, C, Hin, Win), wy: (Hout, Hin), wxt: (Win, Wout), o: (1, C, Hout, Wout)
    C = x_ref.shape[1]
    for c in range(C):
        t = jnp.dot(wy_ref[...], x_ref[0, c].astype(jnp.float32),
                    preferred_element_type=jnp.float32)
        o_ref[0, c] = jnp.dot(t, wxt_ref[...], preferred_element_type=jnp.float32)


def bilinear_resize_nchw(x, wy, wxt):
    N, C, Hin, Win = x.shape
    Hout, Wout = wy.shape[0], wxt.shape[1]
    return pl.pallas_call(
        _resize_kernel,
        out_shape=jax.ShapeDtypeStruct((N, C, Hout, Wout), jnp.float32),
        grid=(N,),
        in_specs=[
            pl.BlockSpec((1, C, Hin, Win), lambda n: (n, 0, 0, 0)),
            pl.BlockSpec((Hout, Hin), lambda n: (0, 0)),
            pl.BlockSpec((Win, Wout), lambda n: (0, 0)),
        ],
        out_specs=pl.BlockSpec((1, C, Hout, Wout), lambda n: (n, 0, 0, 0)),
        compiler_params=pltpu.CompilerParams(
            dimension_semantics=("parallel",),
            vmem_limit_bytes=_VMEM_LIMIT),
    )(x, wy, wxt)


# --------------------------------------------------------------------------
# Parameter preprocessing (done once at init)
# --------------------------------------------------------------------------

def _phase_weight(w_pt, b, stride, kernel_size):
    # w_pt: (Cin, Cout, K, K) PyTorch ConvTranspose2d weight.
    # Returns wm (Mmax^2*Cin, s^2*Cout) such that
    #   Yp[a,b,(u,v,co)] = sum_{m,n,ci} xpad[a+m, b+n, ci] * wm[(m,n,ci),(u,v,co)]
    # reproduces the transposed conv at output position (s*a+u, s*b+v) (full,
    # pre-crop), with xpad = x zero-padded by Mmax-1 on each spatial side.
    cin, cout, K, _ = w_pt.shape
    s = stride
    Mmax = -(-K // s)
    Kpad = Mmax * s
    wp = jnp.zeros((cin, cout, Kpad, Kpad), w_pt.dtype).at[:, :, :K, :K].set(w_pt)
    wr = wp.reshape(cin, cout, Mmax, s, Mmax, s)      # [ci, co, m, u, n, v]
    wr = wr[:, :, ::-1, :, ::-1, :]                   # flip tap indices m, n
    wm = jnp.transpose(wr, (2, 4, 0, 3, 5, 1))        # (m, n, ci, u, v, co)
    wm = wm.reshape(Mmax * Mmax * cin, s * s * cout)
    b_phase = jnp.tile(b, s * s).reshape(1, s * s * cout)
    return wm, b_phase


def _bilinear_matrix(out_size, in_size):
    # Matches F.interpolate(mode='bilinear', align_corners=False, antialias=False)
    i = jnp.arange(out_size, dtype=jnp.float32)
    src = (i + 0.5) * (in_size / out_size) - 0.5
    src = jnp.maximum(src, 0.0)
    lo = jnp.minimum(jnp.floor(src).astype(jnp.int32), in_size - 1)
    hi = jnp.minimum(lo + 1, in_size - 1)
    frac = src - lo.astype(jnp.float32)
    rows = jnp.arange(out_size)
    m = jnp.zeros((out_size, in_size), jnp.float32)
    m = m.at[rows, lo].add(1.0 - frac)
    m = m.at[rows, hi].add(frac)
    return m


def _kaiming_uniform(key, shape, fan_in):
    bound = (6.0 / fan_in) ** 0.5
    return jax.random.uniform(key, shape, jnp.float32, -bound, bound)


# --------------------------------------------------------------------------
# Decoder
# --------------------------------------------------------------------------

class TransposedConvDecoderPallas:
    def __init__(self, key, observation_shape=(3, 224, 224), emb_dim=512,
                 depth=32, kernel_size=5, stride=3):
        self.observation_shape = observation_shape
        self.emb_dim = emb_dim
        self.depth = depth
        self.kernel_size = kernel_size
        self.stride = stride
        self.padding = 1

        K, s, p = kernel_size, stride, self.padding
        keys = jax.random.split(key, 6)
        d32 = depth * 32
        lin_w = _kaiming_uniform(keys[0], (emb_dim, d32), fan_in=emb_dim)
        lin_b = jnp.zeros((d32,), jnp.float32)

        chans = [d32, depth * 8, depth * 4, depth * 2, depth, observation_shape[0]]

        # ---- fuse Linear + ConvT layer 0 (1x1 spatial input) into one matmul --
        c1 = chans[1]
        w1 = _kaiming_uniform(keys[1], (d32, c1, K, K), fan_in=c1 * K * K)
        b1 = jnp.zeros((c1,), jnp.float32)
        h1 = K - 2 * p                                   # spatial size after layer 0
        w1_mat = jnp.transpose(w1[:, :, p:p + h1, p:p + h1],
                               (0, 2, 3, 1)).reshape(d32, h1 * h1 * c1)
        self.h1, self.c1 = h1, c1
        self.fused_w = (lin_w @ w1_mat).astype(jnp.bfloat16)
        self.fused_b = (lin_b @ w1_mat + jnp.tile(b1, h1 * h1)).reshape(1, -1)

        # ---- phase-decomposed weights for ConvT layers 1..4 -------------------
        self.phase_layers = []
        for i in range(1, 5):
            cin, cout = chans[i], chans[i + 1]
            w = _kaiming_uniform(keys[i + 1], (cin, cout, K, K),
                                 fan_in=cout * K * K)
            b = jnp.zeros((cout,), jnp.float32)
            wm, b_phase = _phase_weight(w, b, s, K)
            self.phase_layers.append((wm.astype(jnp.bfloat16), b_phase))

        # ---- bilinear-resize matrices, built once -----------------------------
        hc = h1
        for _ in range(4):
            hc = (hc - 1) * s + K - 2 * p
        self.wy = _bilinear_matrix(observation_shape[1], hc)
        self.wxt = _bilinear_matrix(observation_shape[2], hc).T

    def __call__(self, posterior):
        # posterior: (b, t, emb_dim)
        b, t, e = posterior.shape
        x = posterior.reshape(-1, e).astype(jnp.bfloat16)           # (b*t, emb)

        # Fused Linear + first ConvTranspose2d + ReLU.
        x = fused_linear(x, self.fused_w, self.fused_b)             # (bt, h1*h1*c1)
        x = x.reshape(-1, self.h1, self.h1, self.c1)                # NHWC

        # ConvTranspose2d layers 1..4 (ReLU on all but the last).
        n_layers = len(self.phase_layers)
        for i, (wm, b_phase) in enumerate(self.phase_layers):
            x = conv_transpose2d_phase(
                x, wm, b_phase, stride=self.stride,
                kernel_size=self.kernel_size, padding=self.padding,
                apply_relu=(i < n_layers - 1))

        # NHWC -> NCHW (final image layout), bilinear resize to observation H, W.
        x = jnp.transpose(x, (0, 3, 1, 2))                          # (bt, C, h, w)
        img = bilinear_resize_nchw(x, self.wy, self.wxt)            # (bt, C, H, W) f32

        # Normal(mean=img, std=1).mean == img ; .squeeze(2) is a no-op for C=3;
        # 'b t c h w -> (b t) c h w' keeps the (b*t, ...) layout produced here.
        return img, jnp.zeros((1,), jnp.float32)


if __name__ == "__main__":
    key = jax.random.PRNGKey(0)
    k_params, k_x = jax.random.split(key)

    # Small, consistent configuration: obs=(3,20,20), emb=32, depth=4, k=4, s=2
    # spatial path inside the ConvT stack: 1 -> 2 -> 4 -> 8 -> 16 -> 32 -> resize 20
    dec = TransposedConvDecoderPallas(
        k_params, observation_shape=(3, 20, 20), emb_dim=32, depth=4,
        kernel_size=4, stride=2)

    posterior = jax.random.normal(k_x, (2, 2, 32), jnp.float32)     # (b, t, emb_dim)
    fwd = jax.jit(lambda p: dec(p))
    img, aux = fwd(posterior)
    jax.block_until_ready((img, aux))
    assert img.shape == (4, 3, 20, 20), img.shape
    assert aux.shape == (1,)
    assert bool(jnp.all(jnp.isfinite(img)))
    print("KERNEL_OK")
</pallas_src>

<mosaic_0001>
module attributes {stable_mosaic.version = 11 : i64} {
  func.func @_fused_linear_kernel(%arg0: i32, %arg1: memref<4x32xbf16, #tpu.memory_space<vmem>>, %arg2: memref<32x128xbf16, #tpu.memory_space<vmem>>, %arg3: memref<1x128xf32, #tpu.memory_space<vmem>>, %arg4: memref<4x128xbf16, #tpu.memory_space<vmem>>) attributes {dimension_semantics = [#tpu.dimension_semantics<arbitrary>], iteration_bounds = array<i64: 1>, scalar_prefetch = 0 : i64, scratch_operands = 0 : i64, tpu.core_type = #tpu.core_type<tc>, window_params = [{pipeline_mode = #tpu.pipeline_mode<synchronous>, transform_indices = @transform_0, window_bounds = array<i64: 4, 32>}, {pipeline_mode = #tpu.pipeline_mode<synchronous>, transform_indices = @transform_1, window_bounds = array<i64: 32, 128>}, {pipeline_mode = #tpu.pipeline_mode<synchronous>, transform_indices = @transform_2, window_bounds = array<i64: 1, 128>}, {pipeline_mode = #tpu.pipeline_mode<synchronous>, transform_indices = @transform_3, window_bounds = array<i64: 4, 128>}]} {
    %c0 = arith.constant 0 : index
    %c0_0 = arith.constant 0 : index
    %0 = vector.load %arg1[%c0, %c0_0] : memref<4x32xbf16, #tpu.memory_space<vmem>>, vector<4x32xbf16>
    %c0_1 = arith.constant 0 : index
    %c0_2 = arith.constant 0 : index
    %1 = vector.load %arg2[%c0_1, %c0_2] : memref<32x128xbf16, #tpu.memory_space<vmem>>, vector<32x128xbf16>
    %cst = arith.constant dense<0.000000e+00> : vector<4x128xf32>
    %2 = tpu.matmul %0, %1, %cst {dimension_numbers = #tpu.dot_dimension_numbers<[1], [0], [0], [1], [0, 0, 1, 1], [], []>} : vector<4x32xbf16>, vector<32x128xbf16>, vector<4x128xf32> -> vector<4x128xf32>
    %c0_3 = arith.constant 0 : index
    %c0_4 = arith.constant 0 : index
    %3 = vector.load %arg3[%c0_3, %c0_4] : memref<1x128xf32, #tpu.memory_space<vmem>>, vector<1x128xf32>
    %4 = vector.broadcast %3 : vector<1x128xf32> to vector<4x128xf32>
    %5 = arith.addf %2, %4 : vector<4x128xf32>
    %cst_5 = arith.constant 0.000000e+00 : f32
    %6 = vector.broadcast %cst_5 : f32 to vector<4x128xf32>
    %7 = arith.maximumf %5, %6 : vector<4x128xf32>
    %8 = arith.truncf %7 : vector<4x128xf32> to vector<4x128xbf16>
    %c0_6 = arith.constant 0 : index
    %c0_7 = arith.constant 0 : index
    %9 = vector.load %arg4[%c0_6, %c0_7] : memref<4x128xbf16, #tpu.memory_space<vmem>>, vector<4x128xbf16>
    tpu.vector_store %arg4[%c0_6, %c0_7], %8 {strides = array<i32>} : memref<4x128xbf16, #tpu.memory_space<vmem>>, vector<4x128xbf16>,
    return
  }
  func.func @transform_0(%arg0: i32) -> (i32, i32) {
    %c0_i32 = arith.constant 0 : i32
    %c0_i32_0 = arith.constant 0 : i32
    %c0_i32_1 = arith.constant 0 : i32
    return %c0_i32, %c0_i32_0 : i32, i32
  }
  func.func @transform_1(%arg0: i32) -> (i32, i32) {
    %c0_i32 = arith.constant 0 : i32
    %c0_i32_0 = arith.constant 0 : i32
    %c0_i32_1 = arith.constant 0 : i32
    return %c0_i32, %c0_i32_0 : i32, i32
  }
  func.func @transform_2(%arg0: i32) -> (i32, i32) {
    %c0_i32 = arith.constant 0 : i32
    %c0_i32_0 = arith.constant 0 : i32
    %c0_i32_1 = arith.constant 0 : i32
    return %c0_i32, %c0_i32_0 : i32, i32
  }
  func.func @transform_3(%arg0: i32) -> (i32, i32) {
    %c0_i32 = arith.constant 0 : i32
    %c0_i32_0 = arith.constant 0 : i32
    %c0_i32_1 = arith.constant 0 : i32
    return %c0_i32, %c0_i32_0 : i32, i32
  }
}

module attributes {stable_mosaic.version = 11 : i64} {
  func.func @_phase_conv_kernel(%arg0: i32, %arg1: memref<1x4x4x32xbf16, #tpu.memory_space<vmem>>, %arg2: memref<128x64xbf16, #tpu.memory_space<vmem>>, %arg3: memref<1x64xf32, #tpu.memory_space<vmem>>, %arg4: memref<1x9x64xbf16, #tpu.memory_space<vmem>>) attributes {dimension_semantics = [#tpu.dimension_semantics<parallel>], iteration_bounds = array<i64: 4>, scalar_prefetch = 0 : i64, scratch_operands = 0 : i64, tpu.core_type = #tpu.core_type<tc>, window_params = [{transform_indices = @transform_0, window_bounds = array<i64: 1, 4, 4, 32>}, {pipeline_mode = #tpu.pipeline_mode<synchronous>, transform_indices = @transform_1, window_bounds = array<i64: 128, 64>}, {pipeline_mode = #tpu.pipeline_mode<synchronous>, transform_indices = @transform_2, window_bounds = array<i64: 1, 64>}, {transform_indices = @transform_3, window_bounds = array<i64: 1, 9, 64>}]} {
    %c0 = arith.constant 0 : index
    %c0_0 = arith.constant 0 : index
    %c0_1 = arith.constant 0 : index
    %c0_2 = arith.constant 0 : index
    %0 = vector.load %arg1[%c0, %c0_0, %c0_1, %c0_2] : memref<1x4x4x32xbf16, #tpu.memory_space<vmem>>, vector<1x3x3x32xbf16>
    %1 = vector.shape_cast %0 : vector<1x3x3x32xbf16> to vector<3x3x32xbf16>
    %c0_3 = arith.constant 0 : index
    %c0_4 = arith.constant 0 : index
    %c1 = arith.constant 1 : index
    %c0_5 = arith.constant 0 : index
    %2 = vector.load %arg1[%c0_3, %c0_4, %c1, %c0_5] : memref<1x4x4x32xbf16, #tpu.memory_space<vmem>>, vector<1x3x3x32xbf16>
    %3 = vector.shape_cast %2 : vector<1x3x3x32xbf16> to vector<3x3x32xbf16>
    %c0_6 = arith.constant 0 : index
    %c1_7 = arith.constant 1 : index
    %c0_8 = arith.constant 0 : index
    %c0_9 = arith.constant 0 : index
    %4 = vector.load %arg1[%c0_6, %c1_7, %c0_8, %c0_9] : memref<1x4x4x32xbf16, #tpu.memory_space<vmem>>, vector<1x3x3x32xbf16>
    %5 = vector.shape_cast %4 : vector<1x3x3x32xbf16> to vector<3x3x32xbf16>
    %c0_10 = arith.constant 0 : index
    %c1_11 = arith.constant 1 : index
    %c1_12 = arith.constant 1 : index
    %c0_13 = arith.constant 0 : index
    %6 = vector.load %arg1[%c0_10, %c1_11, %c1_12, %c0_13] : memref<1x4x4x32xbf16, #tpu.memory_space<vmem>>, vector<1x3x3x32xbf16>
    %7 = vector.shape_cast %6 : vector<1x3x3x32xbf16> to vector<3x3x32xbf16>
    %8 = tpu.concatenate %1, %3, %5, %7 in 2 : vector<3x3x32xbf16>, vector<3x3x32xbf16>, vector<3x3x32xbf16>, vector<3x3x32xbf16> -> vector<3x3x128xbf16>
    %9 = vector.shape_cast %8 : vector<3x3x128xbf16> to vector<9x128xbf16>
    %c0_14 = arith.constant 0 : index
    %c0_15 = arith.constant 0 : index
    %10 = vector.load %arg2[%c0_14, %c0_15] : memref<128x64xbf16, #tpu.memory_space<vmem>>, vector<128x64xbf16>
    %cst = arith.constant dense<0.000000e+00> : vector<9x64xf32>
    %11 = tpu.matmul %9, %10, %cst {dimension_numbers = #tpu.dot_dimension_numbers<[1], [0], [0], [1], [0, 0, 1, 1], [], []>} : vector<9x128xbf16>, vector<128x64xbf16>, vector<9x64xf32> -> vector<9x64xf32>
    %c0_16 = arith.constant 0 : index
    %c0_17 = arith.constant 0 : index
    %12 = vector.load %arg3[%c0_16, %c0_17] : memref<1x64xf32, #tpu.memory_space<vmem>>, vector<1x64xf32>
    %13 = vector.broadcast %12 : vector<1x64xf32> to vector<9x64xf32>
    %14 = arith.addf %11, %13 : vector<9x64xf32>
    %cst_18 = arith.constant 0.000000e+00 : f32
    %15 = vector.broadcast %cst_18 : f32 to vector<9x64xf32>
    %16 = arith.maximumf %14, %15 : vector<9x64xf32>
    %17 = arith.truncf %16 : vector<9x64xf32> to vector<9x64xbf16>
    %c0_19 = arith.constant 0 : index
    %c0_20 = arith.constant 0 : index
    %c0_21 = arith.constant 0 : index
    %18 = vector.load %arg4[%c0_19, %c0_20, %c0_21] : memref<1x9x64xbf16, #tpu.memory_space<vmem>>, vector<1x9x64xbf16>
    %19 = vector.shape_cast %18 : vector<1x9x64xbf16> to vector<9x64xbf16>
    %20 = vector.shape_cast %17 : vector<9x64xbf16> to vector<1x9x64xbf16>
    tpu.vector_store %arg4[%c0_19, %c0_20, %c0_21], %20 {strides = array<i32>} : memref<1x9x64xbf16, #tpu.memory_space<vmem>>, vector<1x9x64xbf16>,
    return
  }
  func.func @transform_0(%arg0: i32) -> (i32, i32, i32, i32) {
    %c0_i32 = arith.constant 0 : i32
    %c0_i32_0 = arith.constant 0 : i32
    %c0_i32_1 = arith.constant 0 : i32
    %c0_i32_2 = arith.constant 0 : i32
    return %arg0, %c0_i32, %c0_i32_0, %c0_i32_1 : i32, i32, i32, i32
  }
  func.func @transform_1(%arg0: i32) -> (i32, i32) {
    %c0_i32 = arith.constant 0 : i32
    %c0_i32_0 = arith.constant 0 : i32
    %c0_i32_1 = arith.constant 0 : i32
    return %c0_i32, %c0_i32_0 : i32, i32
  }
  func.func @transform_2(%arg0: i32) -> (i32, i32) {
    %c0_i32 = arith.constant 0 : i32
    %c0_i32_0 = arith.constant 0 : i32
    %c0_i32_1 = arith.constant 0 : i32
    return %c0_i32, %c0_i32_0 : i32, i32
  }
  func.func @transform_3(%arg0: i32) -> (i32, i32, i32) {
    %c0_i32 = arith.constant 0 : i32
    %c0_i32_0 = arith.constant 0 : i32
    %c0_i32_1 = arith.constant 0 : i32
    return %arg0, %c0_i32, %c0_i32_0 : i32, i32, i32
  }
}

module attributes {stable_mosaic.version = 11 : i64} {
  func.func @_phase_conv_kernel(%arg0: i32, %arg1: memref<1x6x6x16xbf16, #tpu.memory_space<vmem>>, %arg2: memref<64x32xbf16, #tpu.memory_space<vmem>>, %arg3: memref<1x32xf32, #tpu.memory_space<vmem>>, %arg4: memref<1x25x32xbf16, #tpu.memory_space<vmem>>) attributes {dimension_semantics = [#tpu.dimension_semantics<parallel>], iteration_bounds = array<i64: 4>, scalar_prefetch = 0 : i64, scratch_operands = 0 : i64, tpu.core_type = #tpu.core_type<tc>, window_params = [{transform_indices = @transform_0, window_bounds = array<i64: 1, 6, 6, 16>}, {pipeline_mode = #tpu.pipeline_mode<synchronous>, transform_indices = @transform_1, window_bounds = array<i64: 64, 32>}, {pipeline_mode = #tpu.pipeline_mode<synchronous>, transform_indices = @transform_2, window_bounds = array<i64: 1, 32>}, {transform_indices = @transform_3, window_bounds = array<i64: 1, 25, 32>}]} {
    %c0 = arith.constant 0 : index
    %c0_0 = arith.constant 0 : index
    %c0_1 = arith.constant 0 : index
    %c0_2 = arith.constant 0 : index
    %0 = vector.load %arg1[%c0, %c0_0, %c0_1, %c0_2] : memref<1x6x6x16xbf16, #tpu.memory_space<vmem>>, vector<1x5x5x16xbf16>
    %1 = vector.shape_cast %0 : vector<1x5x5x16xbf16> to vector<5x5x16xbf16>
    %c0_3 = arith.constant 0 : index
    %c0_4 = arith.constant 0 : index
    %c1 = arith.constant 1 : index
    %c0_5 = arith.constant 0 : index
    %2 = vector.load %arg1[%c0_3, %c0_4, %c1, %c0_5] : memref<1x6x6x16xbf16, #tpu.memory_space<vmem>>, vector<1x5x5x16xbf16>
    %3 = vector.shape_cast %2 : vector<1x5x5x16xbf16> to vector<5x5x16xbf16>
    %c0_6 = arith.constant 0 : index
    %c1_7 = arith.constant 1 : index
    %c0_8 = arith.constant 0 : index
    %c0_9 = arith.constant 0 : index
    %4 = vector.load %arg1[%c0_6, %c1_7, %c0_8, %c0_9] : memref<1x6x6x16xbf16, #tpu.memory_space<vmem>>, vector<1x5x5x16xbf16>
    %5 = vector.shape_cast %4 : vector<1x5x5x16xbf16> to vector<5x5x16xbf16>
    %c0_10 = arith.constant 0 : index
    %c1_11 = arith.constant 1 : index
    %c1_12 = arith.constant 1 : index
    %c0_13 = arith.constant 0 : index
    %6 = vector.load %arg1[%c0_10, %c1_11, %c1_12, %c0_13] : memref<1x6x6x16xbf16, #tpu.memory_space<vmem>>, vector<1x5x5x16xbf16>
    %7 = vector.shape_cast %6 : vector<1x5x5x16xbf16> to vector<5x5x16xbf16>
    %8 = tpu.concatenate %1, %3, %5, %7 in 2 : vector<5x5x16xbf16>, vector<5x5x16xbf16>, vector<5x5x16xbf16>, vector<5x5x16xbf16> -> vector<5x5x64xbf16>
    %9 = vector.shape_cast %8 : vector<5x5x64xbf16> to vector<25x64xbf16>
    %c0_14 = arith.constant 0 : index
    %c0_15 = arith.constant 0 : index
    %10 = vector.load %arg2[%c0_14, %c0_15] : memref<64x32xbf16, #tpu.memory_space<vmem>>, vector<64x32xbf16>
    %cst = arith.constant dense<0.000000e+00> : vector<25x32xf32>
    %11 = tpu.matmul %9, %10, %cst {dimension_numbers = #tpu.dot_dimension_numbers<[1], [0], [0], [1], [0, 0, 1, 1], [], []>} : vector<25x64xbf16>, vector<64x32xbf16>, vector<25x32xf32> -> vector<25x32xf32>
    %c0_16 = arith.constant 0 : index
    %c0_17 = arith.constant 0 : index
    %12 = vector.load %arg3[%c0_16, %c0_17] : memref<1x32xf32, #tpu.memory_space<vmem>>, vector<1x32xf32>
    %13 = vector.broadcast %12 : vector<1x32xf32> to vector<25x32xf32>
    %14 = arith.addf %11, %13 : vector<25x32xf32>
    %cst_18 = arith.constant 0.000000e+00 : f32
    %15 = vector.broadcast %cst_18 : f32 to vector<25x32xf32>
    %16 = arith.maximumf %14, %15 : vector<25x32xf32>
    %17 = arith.truncf %16 : vector<25x32xf32> to vector<25x32xbf16>
    %c0_19 = arith.constant 0 : index
    %c0_20 = arith.constant 0 : index
    %c0_21 = arith.constant 0 : index
    %18 = vector.load %arg4[%c0_19, %c0_20, %c0_21] : memref<1x25x32xbf16, #tpu.memory_space<vmem>>, vector<1x25x32xbf16>
    %19 = vector.shape_cast %18 : vector<1x25x32xbf16> to vector<25x32xbf16>
    %20 = vector.shape_cast %17 : vector<25x32xbf16> to vector<1x25x32xbf16>
    tpu.vector_store %arg4[%c0_19, %c0_20, %c0_21], %20 {strides = array<i32>} : memref<1x25x32xbf16, #tpu.memory_space<vmem>>, vector<1x25x32xbf16>,
    return
  }
  func.func @transform_0(%arg0: i32) -> (i32, i32, i32, i32) {
    %c0_i32 = arith.constant 0 : i32
    %c0_i32_0 = arith.constant 0 : i32
    %c0_i32_1 = arith.constant 0 : i32
    %c0_i32_2 = arith.constant 0 : i32
    return %arg0, %c0_i32, %c0_i32_0, %c0_i32_1 : i32, i32, i32, i32
  }
  func.func @transform_1(%arg0: i32) -> (i32, i32) {
    %c0_i32 = arith.constant 0 : i32
    %c0_i32_0 = arith.constant 0 : i32
    %c0_i32_1 = arith.constant 0 : i32
    return %c0_i32, %c0_i32_0 : i32, i32
  }
  func.func @transform_2(%arg0: i32) -> (i32, i32) {
    %c0_i32 = arith.constant 0 : i32
    %c0_i32_0 = arith.constant 0 : i32
    %c0_i32_1 = arith.constant 0 : i32
    return %c0_i32, %c0_i32_0 : i32, i32
  }
  func.func @transform_3(%arg0: i32) -> (i32, i32, i32) {
    %c0_i32 = arith.constant 0 : i32
    %c0_i32_0 = arith.constant 0 : i32
    %c0_i32_1 = arith.constant 0 : i32
    return %arg0, %c0_i32, %c0_i32_0 : i32, i32, i32
  }
}

module attributes {stable_mosaic.version = 11 : i64} {
  func.func @_phase_conv_kernel(%arg0: i32, %arg1: memref<1x10x10x8xbf16, #tpu.memory_space<vmem>>, %arg2: memref<32x16xbf16, #tpu.memory_space<vmem>>, %arg3: memref<1x16xf32, #tpu.memory_space<vmem>>, %arg4: memref<1x81x16xbf16, #tpu.memory_space<vmem>>) attributes {dimension_semantics = [#tpu.dimension_semantics<parallel>], iteration_bounds = array<i64: 4>, scalar_prefetch = 0 : i64, scratch_operands = 0 : i64, tpu.core_type = #tpu.core_type<tc>, window_params = [{transform_indices = @transform_0, window_bounds = array<i64: 1, 10, 10, 8>}, {pipeline_mode = #tpu.pipeline_mode<synchronous>, transform_indices = @transform_1, window_bounds = array<i64: 32, 16>}, {pipeline_mode = #tpu.pipeline_mode<synchronous>, transform_indices = @transform_2, window_bounds = array<i64: 1, 16>}, {transform_indices = @transform_3, window_bounds = array<i64: 1, 81, 16>}]} {
    %c0 = arith.constant 0 : index
    %c0_0 = arith.constant 0 : index
    %c0_1 = arith.constant 0 : index
    %c0_2 = arith.constant 0 : index
    %0 = vector.load %arg1[%c0, %c0_0, %c0_1, %c0_2] : memref<1x10x10x8xbf16, #tpu.memory_space<vmem>>, vector<1x9x9x8xbf16>
    %1 = vector.shape_cast %0 : vector<1x9x9x8xbf16> to vector<9x9x8xbf16>
    %c0_3 = arith.constant 0 : index
    %c0_4 = arith.constant 0 : index
    %c1 = arith.constant 1 : index
    %c0_5 = arith.constant 0 : index
    %2 = vector.load %arg1[%c0_3, %c0_4, %c1, %c0_5] : memref<1x10x10x8xbf16, #tpu.memory_space<vmem>>, vector<1x9x9x8xbf16>
    %3 = vector.shape_cast %2 : vector<1x9x9x8xbf16> to vector<9x9x8xbf16>
    %c0_6 = arith.constant 0 : index
    %c1_7 = arith.constant 1 : index
    %c0_8 = arith.constant 0 : index
    %c0_9 = arith.constant 0 : index
    %4 = vector.load %arg1[%c0_6, %c1_7, %c0_8, %c0_9] : memref<1x10x10x8xbf16, #tpu.memory_space<vmem>>, vector<1x9x9x8xbf16>
    %5 = vector.shape_cast %4 : vector<1x9x9x8xbf16> to vector<9x9x8xbf16>
    %c0_10 = arith.constant 0 : index
    %c1_11 = arith.constant 1 : index
    %c1_12 = arith.constant 1 : index
    %c0_13 = arith.constant 0 : index
    %6 = vector.load %arg1[%c0_10, %c1_11, %c1_12, %c0_13] : memref<1x10x10x8xbf16, #tpu.memory_space<vmem>>, vector<1x9x9x8xbf16>
    %7 = vector.shape_cast %6 : vector<1x9x9x8xbf16> to vector<9x9x8xbf16>
    %8 = tpu.concatenate %1, %3, %5, %7 in 2 : vector<9x9x8xbf16>, vector<9x9x8xbf16>, vector<9x9x8xbf16>, vector<9x9x8xbf16> -> vector<9x9x32xbf16>
    %9 = vector.shape_cast %8 : vector<9x9x32xbf16> to vector<81x32xbf16>
    %c0_14 = arith.constant 0 : index
    %c0_15 = arith.constant 0 : index
    %10 = vector.load %arg2[%c0_14, %c0_15] : memref<32x16xbf16, #tpu.memory_space<vmem>>, vector<32x16xbf16>
    %cst = arith.constant dense<0.000000e+00> : vector<81x16xf32>
    %11 = tpu.matmul %9, %10, %cst {dimension_numbers = #tpu.dot_dimension_numbers<[1], [0], [0], [1], [0, 0, 1, 1], [], []>} : vector<81x32xbf16>, vector<32x16xbf16>, vector<81x16xf32> -> vector<81x16xf32>
    %c0_16 = arith.constant 0 : index
    %c0_17 = arith.constant 0 : index
    %12 = vector.load %arg3[%c0_16, %c0_17] : memref<1x16xf32, #tpu.memory_space<vmem>>, vector<1x16xf32>
    %13 = vector.broadcast %12 : vector<1x16xf32> to vector<81x16xf32>
    %14 = arith.addf %11, %13 : vector<81x16xf32>
    %cst_18 = arith.constant 0.000000e+00 : f32
    %15 = vector.broadcast %cst_18 : f32 to vector<81x16xf32>
    %16 = arith.maximumf %14, %15 : vector<81x16xf32>
    %17 = arith.truncf %16 : vector<81x16xf32> to vector<81x16xbf16>
    %c0_19 = arith.constant 0 : index
    %c0_20 = arith.constant 0 : index
    %c0_21 = arith.constant 0 : index
    %18 = vector.load %arg4[%c0_19, %c0_20, %c0_21] : memref<1x81x16xbf16, #tpu.memory_space<vmem>>, vector<1x81x16xbf16>
    %19 = vector.shape_cast %18 : vector<1x81x16xbf16> to vector<81x16xbf16>
    %20 = vector.shape_cast %17 : vector<81x16xbf16> to vector<1x81x16xbf16>
    tpu.vector_store %arg4[%c0_19, %c0_20, %c0_21], %20 {strides = array<i32>} : memref<1x81x16xbf16, #tpu.memory_space<vmem>>, vector<1x81x16xbf16>,
    return
  }
  func.func @transform_0(%arg0: i32) -> (i32, i32, i32, i32) {
    %c0_i32 = arith.constant 0 : i32
    %c0_i32_0 = arith.constant 0 : i32
    %c0_i32_1 = arith.constant 0 : i32
    %c0_i32_2 = arith.constant 0 : i32
    return %arg0, %c0_i32, %c0_i32_0, %c0_i32_1 : i32, i32, i32, i32
  }
  func.func @transform_1(%arg0: i32) -> (i32, i32) {
    %c0_i32 = arith.constant 0 : i32
    %c0_i32_0 = arith.constant 0 : i32
    %c0_i32_1 = arith.constant 0 : i32
    return %c0_i32, %c0_i32_0 : i32, i32
  }
  func.func @transform_2(%arg0: i32) -> (i32, i32) {
    %c0_i32 = arith.constant 0 : i32
    %c0_i32_0 = arith.constant 0 : i32
    %c0_i32_1 = arith.constant 0 : i32
    return %c0_i32, %c0_i32_0 : i32, i32
  }
  func.func @transform_3(%arg0: i32) -> (i32, i32, i32) {
    %c0_i32 = arith.constant 0 : i32
    %c0_i32_0 = arith.constant 0 : i32
    %c0_i32_1 = arith.constant 0 : i32
    return %arg0, %c0_i32, %c0_i32_0 : i32, i32, i32
  }
}

module attributes {stable_mosaic.version = 11 : i64} {
  func.func @_phase_conv_kernel(%arg0: i32, %arg1: memref<1x18x18x4xbf16, #tpu.memory_space<vmem>>, %arg2: memref<16x12xbf16, #tpu.memory_space<vmem>>, %arg3: memref<1x12xf32, #tpu.memory_space<vmem>>, %arg4: memref<1x289x12xbf16, #tpu.memory_space<vmem>>) attributes {dimension_semantics = [#tpu.dimension_semantics<parallel>], iteration_bounds = array<i64: 4>, scalar_prefetch = 0 : i64, scratch_operands = 0 : i64, tpu.core_type = #tpu.core_type<tc>, window_params = [{transform_indices = @transform_0, window_bounds = array<i64: 1, 18, 18, 4>}, {pipeline_mode = #tpu.pipeline_mode<synchronous>, transform_indices = @transform_1, window_bounds = array<i64: 16, 12>}, {pipeline_mode = #tpu.pipeline_mode<synchronous>, transform_indices = @transform_2, window_bounds = array<i64: 1, 12>}, {transform_indices = @transform_3, window_bounds = array<i64: 1, 289, 12>}]} {
    %c0 = arith.constant 0 : index
    %c0_0 = arith.constant 0 : index
    %c0_1 = arith.constant 0 : index
    %c0_2 = arith.constant 0 : index
    %0 = vector.load %arg1[%c0, %c0_0, %c0_1, %c0_2] : memref<1x18x18x4xbf16, #tpu.memory_space<vmem>>, vector<1x17x17x4xbf16>
    %1 = vector.shape_cast %0 : vector<1x17x17x4xbf16> to vector<17x17x4xbf16>
    %c0_3 = arith.constant 0 : index
    %c0_4 = arith.constant 0 : index
    %c1 = arith.constant 1 : index
    %c0_5 = arith.constant 0 : index
    %2 = vector.load %arg1[%c0_3, %c0_4, %c1, %c0_5] : memref<1x18x18x4xbf16, #tpu.memory_space<vmem>>, vector<1x17x17x4xbf16>
    %3 = vector.shape_cast %2 : vector<1x17x17x4xbf16> to vector<17x17x4xbf16>
    %c0_6 = arith.constant 0 : index
    %c1_7 = arith.constant 1 : index
    %c0_8 = arith.constant 0 : index
    %c0_9 = arith.constant 0 : index
    %4 = vector.load %arg1[%c0_6, %c1_7, %c0_8, %c0_9] : memref<1x18x18x4xbf16, #tpu.memory_space<vmem>>, vector<1x17x17x4xbf16>
    %5 = vector.shape_cast %4 : vector<1x17x17x4xbf16> to vector<17x17x4xbf16>
    %c0_10 = arith.constant 0 : index
    %c1_11 = arith.constant 1 : index
    %c1_12 = arith.constant 1 : index
    %c0_13 = arith.constant 0 : index
    %6 = vector.load %arg1[%c0_10, %c1_11, %c1_12, %c0_13] : memref<1x18x18x4xbf16, #tpu.memory_space<vmem>>, vector<1x17x17x4xbf16>
    %7 = vector.shape_cast %6 : vector<1x17x17x4xbf16> to vector<17x17x4xbf16>
    %8 = tpu.concatenate %1, %3, %5, %7 in 2 : vector<17x17x4xbf16>, vector<17x17x4xbf16>, vector<17x17x4xbf16>, vector<17x17x4xbf16> -> vector<17x17x16xbf16>
    %9 = vector.shape_cast %8 : vector<17x17x16xbf16> to vector<289x16xbf16>
    %c0_14 = arith.constant 0 : index
    %c0_15 = arith.constant 0 : index
    %10 = vector.load %arg2[%c0_14, %c0_15] : memref<16x12xbf16, #tpu.memory_space<vmem>>, vector<16x12xbf16>
    %cst = arith.constant dense<0.000000e+00> : vector<289x12xf32>
    %11 = tpu.matmul %9, %10, %cst {dimension_numbers = #tpu.dot_dimension_numbers<[1], [0], [0], [1], [0, 0, 1, 1], [], []>} : vector<289x16xbf16>, vector<16x12xbf16>, vector<289x12xf32> -> vector<289x12xf32>
    %c0_16 = arith.constant 0 : index
    %c0_17 = arith.constant 0 : index
    %12 = vector.load %arg3[%c0_16, %c0_17] : memref<1x12xf32, #tpu.memory_space<vmem>>, vector<1x12xf32>
    %13 = vector.broadcast %12 : vector<1x12xf32> to vector<289x12xf32>
    %14 = arith.addf %11, %13 : vector<289x12xf32>
    %15 = arith.truncf %14 : vector<289x12xf32> to vector<289x12xbf16>
    %c0_18 = arith.constant 0 : index
    %c0_19 = arith.constant 0 : index
    %c0_20 = arith.constant 0 : index
    %16 = vector.load %arg4[%c0_18, %c0_19, %c0_20] : memref<1x289x12xbf16, #tpu.memory_space<vmem>>, vector<1x289x12xbf16>
    %17 = vector.shape_cast %16 : vector<1x289x12xbf16> to vector<289x12xbf16>
    %18 = vector.shape_cast %15 : vector<289x12xbf16> to vector<1x289x12xbf16>
    tpu.vector_store %arg4[%c0_18, %c0_19, %c0_20], %18 {strides = array<i32>} : memref<1x289x12xbf16, #tpu.memory_space<vmem>>, vector<1x289x12xbf16>,
    return
  }
  func.func @transform_0(%arg0: i32) -> (i32, i32, i32, i32) {
    %c0_i32 = arith.constant 0 : i32
    %c0_i32_0 = arith.constant 0 : i32
    %c0_i32_1 = arith.constant 0 : i32
    %c0_i32_2 = arith.constant 0 : i32
    return %arg0, %c0_i32, %c0_i32_0, %c0_i32_1 : i32, i32, i32, i32
  }
  func.func @transform_1(%arg0: i32) -> (i32, i32) {
    %c0_i32 = arith.constant 0 : i32
    %c0_i32_0 = arith.constant 0 : i32
    %c0_i32_1 = arith.constant 0 : i32
    return %c0_i32, %c0_i32_0 : i32, i32
  }
  func.func @transform_2(%arg0: i32) -> (i32, i32) {
    %c0_i32 = arith.constant 0 : i32
    %c0_i32_0 = arith.constant 0 : i32
    %c0_i32_1 = arith.constant 0 : i32
    return %c0_i32, %c0_i32_0 : i32, i32
  }
  func.func @transform_3(%arg0: i32) -> (i32, i32, i32) {
    %c0_i32 = arith.constant 0 : i32
    %c0_i32_0 = arith.constant 0 : i32
    %c0_i32_1 = arith.constant 0 : i32
    return %arg0, %c0_i32, %c0_i32_0 : i32, i32, i32
  }
}

module attributes {stable_mosaic.version = 11 : i64} {
  func.func @_resize_kernel(%arg0: i32, %arg1: memref<1x3x32x32xbf16, #tpu.memory_space<vmem>>, %arg2: memref<20x32xf32, #tpu.memory_space<vmem>>, %arg3: memref<32x20xf32, #tpu.memory_space<vmem>>, %arg4: memref<1x3x20x20xf32, #tpu.memory_space<vmem>>) attributes {dimension_semantics = [#tpu.dimension_semantics<parallel>], iteration_bounds = array<i64: 4>, scalar_prefetch = 0 : i64, scratch_operands = 0 : i64, tpu.core_type = #tpu.core_type<tc>, window_params = [{transform_indices = @transform_0, window_bounds = array<i64: 1, 3, 32, 32>}, {pipeline_mode = #tpu.pipeline_mode<synchronous>, transform_indices = @transform_1, window_bounds = array<i64: 20, 32>}, {pipeline_mode = #tpu.pipeline_mode<synchronous>, transform_indices = @transform_2, window_bounds = array<i64: 32, 20>}, {transform_indices = @transform_3, window_bounds = array<i64: 1, 3, 20, 20>}]} {
    %c0 = arith.constant 0 : index
    %c0_0 = arith.constant 0 : index
    %0 = vector.load %arg2[%c0, %c0_0] : memref<20x32xf32, #tpu.memory_space<vmem>>, vector<20x32xf32>
    %c0_1 = arith.constant 0 : index
    %c0_2 = arith.constant 0 : index
    %c0_3 = arith.constant 0 : index
    %c0_4 = arith.constant 0 : index
    %1 = vector.load %arg1[%c0_1, %c0_2, %c0_3, %c0_4] : memref<1x3x32x32xbf16, #tpu.memory_space<vmem>>, vector<1x1x32x32xbf16>
    %2 = vector.shape_cast %1 : vector<1x1x32x32xbf16> to vector<32x32xbf16>
    %3 = arith.extf %2 : vector<32x32xbf16> to vector<32x32xf32>
    %cst = arith.constant dense<0.000000e+00> : vector<20x32xf32>
    %4 = tpu.matmul %0, %3, %cst {dimension_numbers = #tpu.dot_dimension_numbers<[1], [0], [0], [1], [0, 0, 1, 1], [], []>} : vector<20x32xf32>, vector<32x32xf32>, vector<20x32xf32> -> vector<20x32xf32>
    %c0_5 = arith.constant 0 : index
    %c0_6 = arith.constant 0 : index
    %5 = vector.load %arg3[%c0_5, %c0_6] : memref<32x20xf32, #tpu.memory_space<vmem>>, vector<32x20xf32>
    %cst_7 = arith.constant dense<0.000000e+00> : vector<20x20xf32>
    %6 = tpu.matmul %4, %5, %cst_7 {dimension_numbers = #tpu.dot_dimension_numbers<[1], [0], [0], [1], [0, 0, 1, 1], [], []>} : vector<20x32xf32>, vector<32x20xf32>, vector<20x20xf32> -> vector<20x20xf32>
    %c0_8 = arith.constant 0 : index
    %c0_9 = arith.constant 0 : index
    %c0_10 = arith.constant 0 : index
    %c0_11 = arith.constant 0 : index
    %7 = vector.load %arg4[%c0_8, %c0_9, %c0_10, %c0_11] : memref<1x3x20x20xf32, #tpu.memory_space<vmem>>, vector<1x1x20x20xf32>
    %8 = vector.shape_cast %7 : vector<1x1x20x20xf32> to vector<20x20xf32>
    %9 = vector.shape_cast %6 : vector<20x20xf32> to vector<1x1x20x20xf32>
    tpu.vector_store %arg4[%c0_8, %c0_9, %c0_10, %c0_11], %9 {strides = array<i32>} : memref<1x3x20x20xf32, #tpu.memory_space<vmem>>, vector<1x1x20x20xf32>,
    %c0_12 = arith.constant 0 : index
    %c0_13 = arith.constant 0 : index
    %10 = vector.load %arg2[%c0_12, %c0_13] : memref<20x32xf32, #tpu.memory_space<vmem>>, vector<20x32xf32>
    %c0_14 = arith.constant 0 : index
    %c1 = arith.constant 1 : index
    %c0_15 = arith.constant 0 : index
    %c0_16 = arith.constant 0 : index
    %11 = vector.load %arg1[%c0_14, %c1, %c0_15, %c0_16] : memref<1x3x32x32xbf16, #tpu.memory_space<vmem>>, vector<1x1x32x32xbf16>
    %12 = vector.shape_cast %11 : vector<1x1x32x32xbf16> to vector<32x32xbf16>
    %13 = arith.extf %12 : vector<32x32xbf16> to vector<32x32xf32>
    %cst_17 = arith.constant dense<0.000000e+00> : vector<20x32xf32>
    %14 = tpu.matmul %10, %13, %cst_17 {dimension_numbers = #tpu.dot_dimension_numbers<[1], [0], [0], [1], [0, 0, 1, 1], [], []>} : vector<20x32xf32>, vector<32x32xf32>, vector<20x32xf32> -> vector<20x32xf32>
    %c0_18 = arith.constant 0 : index
    %c0_19 = arith.constant 0 : index
    %15 = vector.load %arg3[%c0_18, %c0_19] : memref<32x20xf32, #tpu.memory_space<vmem>>, vector<32x20xf32>
    %cst_20 = arith.constant dense<0.000000e+00> : vector<20x20xf32>
    %16 = tpu.matmul %14, %15, %cst_20 {dimension_numbers = #tpu.dot_dimension_numbers<[1], [0], [0], [1], [0, 0, 1, 1], [], []>} : vector<20x32xf32>, vector<32x20xf32>, vector<20x20xf32> -> vector<20x20xf32>
    %c0_21 = arith.constant 0 : index
    %c1_22 = arith.constant 1 : index
    %c0_23 = arith.constant 0 : index
    %c0_24 = arith.constant 0 : index
    %17 = vector.load %arg4[%c0_21, %c1_22, %c0_23, %c0_24] : memref<1x3x20x20xf32, #tpu.memory_space<vmem>>, vector<1x1x20x20xf32>
    %18 = vector.shape_cast %17 : vector<1x1x20x20xf32> to vector<20x20xf32>
    %19 = vector.shape_cast %16 : vector<20x20xf32> to vector<1x1x20x20xf32>
    tpu.vector_store %arg4[%c0_21, %c1_22, %c0_23, %c0_24], %19 {strides = array<i32>} : memref<1x3x20x20xf32, #tpu.memory_space<vmem>>, vector<1x1x20x20xf32>,
    %c0_25 = arith.constant 0 : index
    %c0_26 = arith.constant 0 : index
    %20 = vector.load %arg2[%c0_25, %c0_26] : memref<20x32xf32, #tpu.memory_space<vmem>>, vector<20x32xf32>
    %c0_27 = arith.constant 0 : index
    %c2 = arith.constant 2 : index
    %c0_28 = arith.constant 0 : index
    %c0_29 = arith.constant 0 : index
    %21 = vector.load %arg1[%c0_27, %c2, %c0_28, %c0_29] : memref<1x3x32x32xbf16, #tpu.memory_space<vmem>>, vector<1x1x32x32xbf16>
    %22 = vector.shape_cast %21 : vector<1x1x32x32xbf16> to vector<32x32xbf16>
    %23 = arith.extf %22 : vector<32x32xbf16> to vector<32x32xf32>
    %cst_30 = arith.constant dense<0.000000e+00> : vector<20x32xf32>
    %24 = tpu.matmul %20, %23, %cst_30 {dimension_numbers = #tpu.dot_dimension_numbers<[1], [0], [0], [1], [0, 0, 1, 1], [], []>} : vector<20x32xf32>, vector<32x32xf32>, vector<20x32xf32> -> vector<20x32xf32>
    %c0_31 = arith.constant 0 : index
    %c0_32 = arith.constant 0 : index
    %25 = vector.load %arg3[%c0_31, %c0_32] : memref<32x20xf32, #tpu.memory_space<vmem>>, vector<32x20xf32>
    %cst_33 = arith.constant dense<0.000000e+00> : vector<20x20xf32>
    %26 = tpu.matmul %24, %25, %cst_33 {dimension_numbers = #tpu.dot_dimension_numbers<[1], [0], [0], [1], [0, 0, 1, 1], [], []>} : vector<20x32xf32>, vector<32x20xf32>, vector<20x20xf32> -> vector<20x20xf32>
    %c0_34 = arith.constant 0 : index
    %c2_35 = arith.constant 2 : index
    %c0_36 = arith.constant 0 : index
    %c0_37 = arith.constant 0 : index
    %27 = vector.load %arg4[%c0_34, %c2_35, %c0_36, %c0_37] : memref<1x3x20x20xf32, #tpu.memory_space<vmem>>, vector<1x1x20x20xf32>
    %28 = vector.shape_cast %27 : vector<1x1x20x20xf32> to vector<20x20xf32>
    %29 = vector.shape_cast %26 : vector<20x20xf32> to vector<1x1x20x20xf32>
    tpu.vector_store %arg4[%c0_34, %c2_35, %c0_36, %c0_37], %29 {strides = array<i32>} : memref<1x3x20x20xf32, #tpu.memory_space<vmem>>, vector<1x1x20x20xf32>,
    return
  }
  func.func @transform_0(%arg0: i32) -> (i32, i32, i32, i32) {
    %c0_i32 = arith.constant 0 : i32
    %c0_i32_0 = arith.constant 0 : i32
    %c0_i32_1 = arith.constant 0 : i32
    %c0_i32_2 = arith.constant 0 : i32
    return %arg0, %c0_i32, %c0_i32_0, %c0_i32_1 : i32, i32, i32, i32
  }
  func.func @transform_1(%arg0: i32) -> (i32, i32) {
    %c0_i32 = arith.constant 0 : i32
    %c0_i32_0 = arith.constant 0 : i32
    %c0_i32_1 = arith.constant 0 : i32
    return %c0_i32, %c0_i32_0 : i32, i32
  }
  func.func @transform_2(%arg0: i32) -> (i32, i32) {
    %c0_i32 = arith.constant 0 : i32
    %c0_i32_0 = arith.constant 0 : i32
    %c0_i32_1 = arith.constant 0 : i32
    return %c0_i32, %c0_i32_0 : i32, i32
  }
  func.func @transform_3(%arg0: i32) -> (i32, i32, i32, i32) {
    %c0_i32 = arith.constant 0 : i32
    %c0_i32_0 = arith.constant 0 : i32
    %c0_i32_1 = arith.constant 0 : i32
    %c0_i32_2 = arith.constant 0 : i32
    return %arg0, %c0_i32, %c0_i32_0, %c0_i32_1 : i32, i32, i32, i32
  }
}

</mosaic_0001>

<bundles_post_ra>
// kernel: _lambda_.6
= control target key start
LH: loop header
LB: loop body
LE: loop exit
PB: predicated region body
PF: predicated region fallthrough
CT: control target
= control target key end

     0   :  { %v109_v0 = vmov 0.0   ;;  %vm110_vm0 = vmmov 0   ;;  %vm39_vm1 = vcmask 261120   ;;  %s146_s1 = inlined_call_operand.vmem [shape: bf16[32,128], index: 1, kind: input, shape index: {}]   ;;  %s147_s0 = inlined_call_operand.vmem [shape: bf16[4,32], index: 0, kind: input, shape index: {}]   ;;  %s148_s2 = inlined_call_operand.vmem [shape: f32[1,128], index: 2, kind: input, shape index: {}]   ;;  %s149_s3 = inlined_call_operand.vmem [shape: bf16[4,128], index: 3, kind: output, shape index: {}]  }
   0x1   :  { %97 = vmatprep.subr.bf16.mxu0 %v109_v0  ;;  %v107_v1 = vld [vmem:[%s146_s1 + $0x8] sm:$0xff]   ;;  %101 = vmatprep.mubr.msk.bf16.mxu0 %vm110_vm0, %v109_v0  ;;  %v108_v2 = vld [vmem:[%s146_s1] sm:$0xff]  }
   0x2   :  { %98 = vmatpush3.bf16.msra.mxu0 %v107_v1  ;;  %v15_v3 = vld [vmem:[%s147_s0] sm:$0x3] }
   0x3   :  { %99 = vmatprep.subr.bf16.mxu0 %v109_v0  ;;  %v90_v4 = vld [vmem:[%s148_s2] ss:$0 sm:$0xff] }
   0x6   :  { %100 = vmatpush3.bf16.msra.mxu0 %v108_v2 }
   0x9   :  { %102 = vmatmul.mubr.msk.bf16.vlgmr.msra.gmra.mxu0 %vm39_vm1, %v15_v3 }
  0xc9   :  { %v77_v5 = vpop.f32.mrf.mxu0 }
  0xca   :  { %v78_v6 = vadd.f32 %v90_v4, %v77_v5 }
  0xcb   :  { %v103_v7 = vpop.f32.mrf.mxu0 }
  0xcc   :  { %v83_v8 = vmax.f32 %v78_v6, 0.0 }
  0xcd   :  { %v80_v9 = vpop.f32.mrf.mxu0 }
  0xce   :  { %v84_v10 = vpack.c.bf16 %v83_v8, %v83_v8 }
  0xcf   :  { %v104_v11 = vpop.f32.mrf.mxu0 }
  0xd0   :  { %85 = vst [vmem:[%s149_s3] sm:$0x3] %v84_v10 }

// kernel: _lambda_.7
= control target key start
LH: loop header
LB: loop body
LE: loop exit
PB: predicated region body
PF: predicated region fallthrough
CT: control target
= control target key end

     0   :  { %s740_s12 = smov 0   ;;  %s839_s0 = inlined_call_operand.vmem [shape: bf16[4,4,4,32], index: 0, kind: input, shape index: {}]   ;;  %s840_s1 = inlined_call_operand.vmem [shape: bf16[128,64], index: 1, kind: input, shape index: {}]   ;;  %s841_s2 = inlined_call_operand.vmem [shape: f32[1,64], index: 2, kind: input, shape index: {}]   ;;  %s842_s3 = inlined_call_operand.vmem [shape: bf16[4,9,64], index: 3, kind: output, shape index: {}]  }
   0x1 LB: > { %s619_s13 = sadd.s32 4294967295, %s711_s12   ;;  %p623_p0 = scmp.ge.s32.totalorder %s711_s12, 1  ;;  %s711_s12 = sphi %s740_s12, %s13_s12  }
   0x2   : > { %p137_p1 = scmp.lt.s32.totalorder %s711_s12, 5 }
   0x4   : > { %p138_p2 = pnand %p623_p0, %p137_p1 }
   0x5   : > { %p161_p3 = scmp.lt.s32.totalorder (!%p138_p2), %s619_s13, 3  ;;  %s715_s22 = smov (!%p138_p2), 64  }
   0x6   : > { %141 = sbr.rel (%p138_p2) target bundleno = 373 (0x175), region = 32  ;;  %s716_s27 = smov (!%p138_p2), 96  }
   0x7   : > { %s717_s30 = smov (!%p138_p2), 32  }
   0xb   : > { %v185_v0 = vlaneseq  ;;  %v713_v1 = vmov 1983009808   ;;  %v697_v3 = vld [vmem:[%s840_s1 + $0x38] sm:$0xff]   ;;  %s844_s13 = smov (!%p161_p3, %s619_s13), 3  ;;  %v714_v5 = vmov 0.0   ;;  %v698_v7 = vld [vmem:[%s840_s1 + $0x30] sm:$0xff]  }
   0xc   : > { %v183_v2 = vunpack.c.l.s4 %v713_v1  ;;  %662 = vmatprep.subr.bf16.mxu0 %v714_v5  ;;  %s649_s18 = sshll.u32 %s844_s13, 3  ;;  %v699_v23 = vld [vmem:[%s840_s1 + $0x28] sm:$0xff]   ;;  %v700_v29 = vld [vmem:[%s840_s1 + $0x20] sm:$0xff]   ;;  %v701_v36 = vld [vmem:[%s840_s1 + $0x18] sm:$0xff]   ;;  %vm718_vm0 = vmmov 0   ;;  %vm287_vm1 = vcmask 261120  }
   0xd   : > { %v753_v4 = vshrl.u32 %v185_v0, 7  ;;  %663 = vmatpush3.bf16.msra.mxu0 %v697_v3  ;;  %s766_s21 = scalar_lea.vmem %s839_s0, %s649_s18  ;;  %v702_v41 = vld [vmem:[%s840_s1 + $0x10] sm:$0xff]   ;;  %v703_v45 = vld [vmem:[%s840_s1 + $0x8] sm:$0xff]   ;;  %678 = vmatprep.mubr.msk.bf16.mxu0 %vm718_vm0, %v714_v5  ;;  %v704_v47 = vld [vmem:[%s840_s1] sm:$0xff]   ;;  %v719_v49 = vmov 1966171168   ;;  %s170_s16 = scalar_lea.vmem %s842_s3, %s649_s18 }
   0xe   : > { %v184_v6 = vunpack.c.0.s8 %v183_v2  ;;  %664 = vmatprep.subr.bf16.mxu0 %v714_v5  ;;  %v631_v9 = vld.sshfl [vmem:[%s766_s21 + $0x2] sm:$0x3 pattern:$0x76325410]  ;;  %v771_v10 = vld [vmem:[%s766_s21] sm:$0x3]  ;;  %v315_v50 = vunpack.c.l.s4 %v719_v49 }
   0xf   : > { %v261_v11 = vshrl.u32 %v631_v9, 16  ;;  %v263_v12 = vshll.u32 %v631_v9, 16  ;;  %254 = vrot.lane.b32.xlu1 %v631_v9, %s715_s22  ;;  %v632_v14 = vld.sshfl [vmem:[%s766_s21 + $0x4] sm:$0x3 pattern:$0x76325410] }
  0x10   : > { %v187_v8 = vsub.s32 %v184_v6, %v753_v4  ;;  %v268_v15 = vshrl.u32 %v632_v14, 16  ;;  %v270_v16 = vshll.u32 %v632_v14, 16  ;;  %v777_v17 = vld [vmem:[%s766_s21 + $0x2] sm:$0x3]  ;;  %v780_v18 = vld [vmem:[%s766_s21 + $0x4] sm:$0x3]  ;;  %v316_v51 = vunpack.c.0.s8 %v315_v50 }
  0x11   : > { %665 = vmatpush3.bf16.msra.mxu0 %v698_v7  ;;  %v265_v19 = vrot.slane %v263_v12, 1  ;;  %v633_v32 = vld.sshfl [vmem:[%s766_s21 + $0x6] sm:$0x3 pattern:$0x76325410]  ;;  %vm297_vm2 = vcmask 523264  }
  0x12   : > { %v188_v13 = vrot.slane %v771_v10, %v187_v8  ;;  %666 = vmatprep.subr.bf16.mxu0 %v714_v5  ;;  %v195_v22 = vrot.slane %v777_v17, %v187_v8  ;;  %v272_v24 = vrot.slane %v270_v16, 1  ;;  %v202_v25 = vrot.slane %v780_v18, %v187_v8 }
  0x13   : > { %v266_v26 = vor.u32 %v265_v19, %v261_v11  ;;  %256 = vrot.lane.b32.xlu1 %v632_v14, %s715_s22  ;;  %v277_v40 = vshll.u32 %v633_v32, 16  ;;  %v275_v43 = vshrl.u32 %v633_v32, 16  ;;  %v319_v54 = vsub.s32 %v316_v51, %v753_v4 }
  0x14   : > { %v204_v20 = vshrl.u32 %v188_v13, 16  ;;  %v206_v21 = vshll.u32 %v188_v13, 16  ;;  %v213_v28 = vshll.u32 %v195_v22, 16  ;;  %v211_v30 = vshrl.u32 %v195_v22, 16 }
  0x15   : > { %667 = vmatpush3.bf16.msra.mxu0 %v699_v23  ;;  %v273_v31 = vor.u32 %v272_v24, %v268_v15  ;;  %281 = vrot.lane.b32.xlu0 %v266_v26, %s716_s27  ;;  %v220_v35 = vshll.u32 %v202_v25, 16  ;;  %v218_v38 = vshrl.u32 %v202_v25, 16  ;;  %v279_v44 = vrot.slane %v277_v40, 1 }
  0x16   : > { %v208_v27 = vrot.slane %v206_v21, 1  ;;  %668 = vmatprep.subr.bf16.mxu0 %v714_v5  ;;  %v215_v34 = vrot.slane %v213_v28, 1  ;;  %vm304_vm3 = vcmask 785408   ;;  %vm556_vm4 = vcmask 519168  }
  0x17   : > { %283 = vrot.lane.b32.xlu1 %v273_v31, %s716_s27  ;;  %v222_v39 = vrot.slane %v220_v35, 1  ;;  %v280_v46 = vor.u32 %v279_v44, %v275_v43  ;;  %v634_v31 = vld [vmem:[%s841_s2] ss:$0 sm:$0xff]  ;;  %vm558_vm5 = vcmask 516096   ;;  %vm559_vm6 = vsmask.f32 256 }
  0x18   : > { %v209_v33 = vor.u32 %v208_v27, %v204_v20  ;;  %v216_v37 = vor.u32 %v215_v34, %v211_v30  ;;  %vm560_vm7 = vmand %vm558_vm5, %vm559_vm6 }
  0x19   : > { %669 = vmatpush3.bf16.msra.mxu0 %v700_v29  ;;  %v223_v42 = vor.u32 %v222_v39, %v218_v38 }
  0x1a   : > { %670 = vmatprep.subr.bf16.mxu0 %v714_v5  ;;  %224 = vrot.lane.b32.xlu0 %v209_v33, %s717_s30 }
  0x1b   : > { %258 = vrot.lane.b32.xlu1 %v633_v32, %s715_s22 }
  0x1d   : > { %671 = vmatpush3.bf16.msra.mxu0 %v701_v36 }
  0x1e   : > { %672 = vmatprep.subr.bf16.mxu0 %v714_v5  ;;  %226 = vrot.lane.b32.xlu0 %v216_v37, %s717_s30 }
  0x21   : > { %673 = vmatpush3.bf16.msra.mxu0 %v702_v41  ;;  %v561_v41 = vld [vmem:[%s170_s16 + $0x4] sm:$0x1] }
  0x22   : > { %674 = vmatprep.subr.bf16.mxu0 %v714_v5  ;;  %228 = vrot.lane.b32.xlu0 %v223_v42, %s717_s30 }
  0x25   : > { %675 = vmatpush3.bf16.msra.mxu0 %v703_v45 }
  0x26   : > { %676 = vmatprep.subr.bf16.mxu0 %v714_v5  ;;  %285 = vrot.lane.b32.xlu0 %v280_v46, %s716_s27 }
  0x29   : > { %677 = vmatpush3.bf16.msra.mxu0 %v704_v47 }
  0x81   : > { %v255_v48 = vpop.permute.xlu1 %254 }
  0x85   : > { %v257_v53 = vpop.permute.xlu1 %256 }
  0x87   : > { %v282_v52 = vpop.permute.xlu0 %281 }
  0x89   : > { %v284_v58 = vpop.permute.xlu1 %283 }
  0x8c   : > { %v225_v55 = vpop.permute.xlu0 %224 }
  0x8d   : > { %v290_v56 = vsel %vm287_vm1, %v771_v10, %v225_v55  ;;  %v259_v5 = vpop.permute.xlu1 %258 }
  0x8e   : > { %v299_v57 = vsel %vm297_vm2, %v290_v56, %v255_v48 }
  0x8f   : > { %v306_v59 = vsel %vm304_vm3, %v299_v57, %v282_v52 }
  0x90   : > { %v227_v60 = vpop.permute.xlu0 %226  ;;  %v320_v61 = vrot.slane %v306_v59, %v319_v54 }
  0x91   : > { %v293_v62 = vsel %vm287_vm1, %v777_v17, %v227_v60 }
  0x92   : > { %v301_v63 = vsel %vm297_vm2, %v293_v62, %v257_v53  ;;  %v321_v0 = vcombine.high %v320_v61, %v320_v61  ;;  %v328_v15 = vrot.slane %v320_v61, %v319_v54 }
  0x93   : > { %v308_v1 = vsel %vm304_vm3, %v301_v63, %v284_v58 }
  0x94   : > { %v342_v2 = vrot.slane %v308_v1, %v319_v54  ;;  %v229_v3 = vpop.permute.xlu0 %228  ;;  %v335_v6 = vrot.slane %v321_v0, %v319_v54 }
  0x95   : > { %v296_v4 = vsel %vm287_vm1, %v780_v18, %v229_v3 }
  0x96   : > { %v343_v7 = vcombine.high %v342_v2, %v342_v2  ;;  %v350_v8 = vrot.slane %v342_v2, %v319_v54  ;;  %v303_v12 = vsel %vm297_vm2, %v296_v4, %v259_v5 }
  0x98   : > { %v357_v9 = vrot.slane %v343_v7, %v319_v54  ;;  %v384_v10 = vunpack.i.h.s16 %v350_v8  ;;  %v635_v11 = vpack.i.b16 %v350_v8, %v335_v6  ;;  %v286_v13 = vpop.permute.xlu0 %285 }
  0x99   : > { %v310_v14 = vsel %vm304_vm3, %v303_v12, %v286_v13 }
  0x9a   : > { %v364_v16 = vrot.slane %v310_v14, %v319_v54  ;;  %v417_v17 = vcombine.low %v328_v15, %v635_v11  ;;  %v636_v19 = vpack.i.b16 %v357_v9, %v384_v10 }
  0x9c   : > { %v365_v20 = vcombine.high %v364_v16, %v364_v16  ;;  %v372_v21 = vrot.slane %v364_v16, %v319_v54  ;;  %v425_v25 = vrot.slane %v417_v17, %v319_v54 }
  0x9e   : > { %v379_v22 = vrot.slane %v365_v20, %v319_v54  ;;  %v418_v18 = vcombine.low %v636_v19, %v372_v21 }
  0xa0   : > { %v388_v23 = vunpack.i.l.s16 %v379_v22  ;;  %v432_v24 = vrot.slane %v418_v18, %v319_v54 }
  0xa2   : > { %v439_v26 = vrot.slane %v388_v23, %v319_v54  ;;  %v440_v27 = vcombine.low %v425_v25, %v432_v24 }
  0xa4   : > { %v447_v28 = vrot.slane %v440_v27, %v319_v54  ;;  %v454_v29 = vrot.slane %v439_v26, %v319_v54 }
  0xa6   : > { %v455_v30 = vcombine.low %v447_v28, %v454_v29 }
  0xa8   : > { %679 = vmatmul.mubr.bf16.vlgmr.msra.gmra.mxu0 %v455_v30 }
 0x168   : > { %v539_v32 = vpop.f32.mrf.mxu0 }
 0x169   : > { %v540_v33 = vadd.f32 %v634_v31, %v539_v32 }
 0x16a   : > { %v680_v34 = vpop.f32.mrf.mxu0 }
 0x16b   : > { %v546_v35 = vmax.f32 %v540_v33, 0.0 }
 0x16c   : > { %v542_v36 = vpop.f32.mrf.mxu0 }
 0x16d   : > { %v651_v37 = vpack.c.bf16 %v546_v35, %v546_v35  ;;  %v543_v38 = vadd.f32 %v634_v31, %v542_v36 }
 0x16e   : > { %v681_v39 = vpop.f32.mrf.mxu0 }
 0x16f   : > { %557 = vst.msk [vmem:[%s170_s16] sm:$0xf] %vm556_vm4, %v651_v37  ;;  %v547_v40 = vmax.f32 %v543_v38, 0.0 }
 0x171   : > { %v652_v42 = vpack.c.bf16 %v547_v40, %v547_v40 }
 0x173   : > { %v562_v43 = vsel %vm560_vm7, %v652_v42, %v561_v41 }
 0x174   : > { %563 = vst [vmem:[%s170_s16 + $0x4] sm:$0x1] %v562_v43 }
 0x175 PF: > { %s13_s12 = sadd.s32 1, %s711_s12  }
 0x176   : > { %p10_p4 = scmp.ge.s32.totalorder %s13_s12, 6  }
 0x178   :  { %12 = sbr.rel (!%p10_p4) target bundleno = 1 (0x1), region = 63 }

// kernel: _lambda_.8
= control target key start
LH: loop header
LB: loop body
LE: loop exit
PB: predicated region body
PF: predicated region fallthrough
CT: control target
= control target key end

     0   :  { %s901_s12 = smov 0   ;;  %s1035_s0 = inlined_call_operand.vmem [shape: bf16[4,6,6,16], index: 0, kind: input, shape index: {}]   ;;  %s1036_s1 = inlined_call_operand.vmem [shape: bf16[64,32], index: 1, kind: input, shape index: {}]   ;;  %s1037_s2 = inlined_call_operand.vmem [shape: f32[1,32], index: 2, kind: input, shape index: {}]   ;;  %s1038_s3 = inlined_call_operand.vmem [shape: bf16[4,25,32], index: 3, kind: output, shape index: {}]  }
   0x1 LB: > { %s777_s13 = sadd.s32 4294967295, %s875_s12   ;;  %p781_p0 = scmp.ge.s32.totalorder %s875_s12, 1  ;;  %s875_s12 = sphi %s901_s12, %s13_s12  }
   0x2   : > { %p137_p1 = scmp.lt.s32.totalorder %s875_s12, 5 }
   0x4   : > { %p138_p2 = pnand %p781_p0, %p137_p1 }
   0x5   : > { %p161_p3 = scmp.lt.s32.totalorder (!%p138_p2), %s777_s13, 3  ;;  %s877_s18 = smov (!%p138_p2), 32  }
   0x6   : > { %141 = sbr.rel (%p138_p2) target bundleno = 387 (0x183), region = 32  ;;  %s878_s19 = smov (!%p138_p2), 16  }
   0x7   : > { %s879_s20 = smov (!%p138_p2), 48  }
   0xb   : > { %s1040_s13 = smov (!%p161_p3, %s777_s13), 3  ;;  %v865_v47 = vld [vmem:[%s1036_s1 + $0x18] sm:$0xff]   ;;  %v866_v52 = vld [vmem:[%s1036_s1 + $0x10] sm:$0xff]   ;;  %v867_v56 = vld [vmem:[%s1036_s1 + $0x8] sm:$0xff]   ;;  %v880_v63 = vmov 1966171168  }
   0xc   : > { %s842_s14 = smul.u32 24, %s1040_s13  ;;  %830 = vmatprep.subr.bf16.mxu0 %v865_v47  ;;  %v868_v58 = vld [vmem:[%s1036_s1] sm:$0xff]   ;;  %vm313_vm0 = vcmask 130048   ;;  %vm340_vm1 = vcmask 392192   ;;  %vm329_vm2 = vcmask 261120   ;;  %vm636_vm3 = vcmask 523264  }
   0xd   : > { %831 = vmatpush3.bf16.msra.mxu0 %v865_v47  ;;  %s819_s4 = sshll.u32 %s1040_s13, 4  ;;  %vm712_vm4 = vcmask 257024   ;;  %vm716_vm5 = vcmask 253952   ;;  %vm717_vm6 = vsmask.f32 256 }
   0xe   : > { %s915_s17 = scalar_lea.vmem %s1035_s0, %s842_s14  ;;  %832 = vmatprep.subr.bf16.mxu0 %v866_v52  ;;  %s170_s7 = scalar_lea.vmem %s1038_s3, %s819_s4  ;;  %vm718_vm7 = vmand %vm716_vm5, %vm717_vm6 }
   0xf   : > { %v855_v0 = vld [vmem:[%s915_s17 + $0x8] ss:$0 sps:$4 sm:$0x77]   ;;  %v856_v1 = vld [vmem:[%s915_s17 + $0xc] ss:$0 sps:$4 sm:$0x77]  }
  0x10   : > { %260 = vrot.lane.b32.xlu1 %v855_v0, %s877_s18  ;;  %v857_v2 = vld [vmem:[%s915_s17 + $0x10] ss:$0 sps:$4 sm:$0x77]   ;;  %262 = vrot.lane.b32.xlu0 %v856_v1, %s877_s18  ;;  %v923_v3 = vld [vmem:[%s915_s17 + $0x4] sm:$0x7]  ;;  %v285_v26 = vshll.u32 %v856_v1, 16 }
  0x11   : > { %v926_v4 = vld [vmem:[%s915_s17 + $0xc] sm:$0x7]  ;;  %v791_v5 = vcombine.low %v923_v3, %v923_v3  ;;  %v933_v7 = vld [vmem:[%s915_s17] sm:$0x7]  ;;  %v939_v10 = vld [vmem:[%s915_s17 + $0x8] sm:$0x7]  ;;  %833 = vmatpush3.bf16.msra.mxu0 %v866_v52 }
  0x12   : > { %v793_v6 = vcombine.low %v926_v4, %v926_v4  ;;  %v859_v8 = vld [vmem:[%s915_s17 + $0x4] ss:$0 sps:$4 sm:$0x77]   ;;  %v790_v9 = vcombine.low %v933_v7, %v933_v7  ;;  %v292_v14 = vshll.u32 %v857_v2, 16  ;;  %v792_v17 = vcombine.low %v939_v10, %v939_v10  ;;  %v947_v32 = vld [vmem:[%s915_s17 + $0x10] sm:$0x7]  ;;  %834 = vmatprep.subr.bf16.mxu0 %v867_v56 }
  0x13   : > { %v206_v11 = vshrl.u32 %v791_v5, 16  ;;  %v208_v12 = vshll.u32 %v791_v5, 16  ;;  %v290_v24 = vshrl.u32 %v857_v2, 16  ;;  %v278_v31 = vshll.u32 %v855_v0, 16 }
  0x14   : > { %264 = vrot.lane.b32.xlu1 %v857_v2, %s877_s18  ;;  %v222_v13 = vshll.u32 %v793_v6, 16  ;;  %v199_v15 = vshrl.u32 %v790_v9, 16  ;;  %v201_v16 = vshll.u32 %v790_v9, 16  ;;  %v220_v19 = vshrl.u32 %v793_v6, 16 }
  0x15   : > { %v210_v18 = vrot.slane %v208_v12, 1  ;;  %v215_v22 = vshll.u32 %v792_v17, 16  ;;  %v294_v25 = vrot.slane %v292_v14, 1  ;;  %v213_v29 = vshrl.u32 %v792_v17, 16  ;;  %835 = vmatpush3.bf16.msra.mxu0 %v867_v56 }
  0x16   : > { %v224_v20 = vrot.slane %v222_v13, 1  ;;  %v203_v21 = vrot.slane %v201_v16, 1  ;;  %v283_v34 = vshrl.u32 %v856_v1, 16  ;;  %v287_v35 = vrot.slane %v285_v26, 1  ;;  %836 = vmatprep.subr.bf16.mxu0 %v868_v58 }
  0x17   : > { %v211_v23 = vor.u32 %v210_v18, %v206_v11  ;;  %v217_v30 = vrot.slane %v215_v22, 1  ;;  %v295_v33 = vor.u32 %v294_v25, %v290_v24  ;;  %v276_v36 = vshrl.u32 %v855_v0, 16  ;;  %v864_v46 = vld [vmem:[%s915_s17 + $0x14] ss:$0 sps:$4 sm:$0x77]  }
  0x18   : > { %258 = vrot.lane.b32.xlu1 %v859_v8, %s877_s18  ;;  %v204_v27 = vor.u32 %v203_v21, %v199_v15  ;;  %v225_v28 = vor.u32 %v224_v20, %v220_v19  ;;  %v280_v38 = vrot.slane %v278_v31, 1  ;;  %v271_v39 = vshll.u32 %v859_v8, 16 }
  0x19   : > { %235 = vrot.lane.b32.xlu0 %v211_v23, %s878_s19  ;;  %v218_v37 = vor.u32 %v217_v30, %v213_v29  ;;  %v794_v40 = vcombine.low %v947_v32, %v947_v32  ;;  %v288_v41 = vor.u32 %v287_v35, %v283_v34  ;;  %v269_v43 = vshrl.u32 %v859_v8, 16  ;;  %837 = vmatpush3.bf16.msra.mxu0 %v868_v58 }
  0x1a   : > { %v281_v42 = vor.u32 %v280_v38, %v276_v36  ;;  %v273_v44 = vrot.slane %v271_v39, 1  ;;  %v299_v51 = vshll.u32 %v864_v46, 16  ;;  %v297_v54 = vshrl.u32 %v864_v46, 16 }
  0x1b   : > { %v229_v45 = vshll.u32 %v794_v40, 16  ;;  %v227_v49 = vshrl.u32 %v794_v40, 16  ;;  %v357_v0 = vunpack.c.l.s4 %v880_v63  ;;  %v359_v1 = vlaneseq }
  0x1c   : > { %233 = vrot.lane.b32.xlu1 %v204_v27, %s878_s19  ;;  %v274_v48 = vor.u32 %v273_v44, %v269_v43  ;;  %v301_v55 = vrot.slane %v299_v51, 1 }
  0x1d   : > { %239 = vrot.lane.b32.xlu0 %v225_v28, %s878_s19  ;;  %v231_v50 = vrot.slane %v229_v45, 1  ;;  %v358_v6 = vunpack.c.0.s8 %v357_v0  ;;  %v360_v8 = vshrl.u32 %v359_v1, 7 }
  0x1e   : > { %v302_v57 = vor.u32 %v301_v55, %v297_v54 }
  0x1f   : > { %v232_v53 = vor.u32 %v231_v50, %v227_v49  ;;  %v977_v13 = vsub.s32 %v358_v6, %v360_v8 }
  0x20   : > { %309 = vrot.lane.b32.xlu1 %v295_v33, %s879_s20 }
  0x21   : > { %237 = vrot.lane.b32.xlu0 %v218_v37, %s878_s19 }
  0x24   : > { %307 = vrot.lane.b32.xlu1 %v288_v41, %s879_s20 }
  0x25   : > { %305 = vrot.lane.b32.xlu0 %v281_v42, %s879_s20 }
  0x28   : > { %266 = vrot.lane.b32.xlu1 %v864_v46, %s877_s18 }
  0x29   : > { %303 = vrot.lane.b32.xlu0 %v274_v48, %s879_s20 }
  0x2d   : > { %241 = vrot.lane.b32.xlu0 %v232_v53, %s878_s19 }
  0x31   : > { %311 = vrot.lane.b32.xlu0 %v302_v57, %s879_s20 }
  0x82   : > { %v261_v59 = vpop.permute.xlu1 %260  ;;  %v263_v60 = vpop.permute.xlu0 %262 }
  0x86   : > { %v265_v61 = vpop.permute.xlu1 %264 }
  0x8a   : > { %v259_v62 = vpop.permute.xlu1 %258 }
  0x8b   : > { %v236_v2 = vpop.permute.xlu0 %235 }
  0x8c   : > { %v319_v17 = vsel %vm313_vm0, %v923_v3, %v236_v2 }
  0x8d   : > { %v333_v22 = vsel %vm329_vm2, %v319_v17, %v261_v59 }
  0x8e   : > { %v234_v5 = vpop.permute.xlu1 %233 }
  0x8f   : > { %v240_v9 = vpop.permute.xlu0 %239  ;;  %v316_v25 = vsel %vm313_vm0, %v933_v7, %v234_v5 }
  0x90   : > { %v325_v11 = vsel %vm313_vm0, %v926_v4, %v240_v9  ;;  %v331_v33 = vsel %vm329_vm2, %v316_v25, %v259_v62 }
  0x91   : > { %v337_v12 = vsel %vm329_vm2, %v325_v11, %v265_v61 }
  0x92   : > { %v310_v14 = vpop.permute.xlu1 %309 }
  0x93   : > { %v348_v15 = vsel %vm340_vm1, %v337_v12, %v310_v14  ;;  %v238_v16 = vpop.permute.xlu0 %237 }
  0x94   : > { %v322_v18 = vsel %vm313_vm0, %v939_v10, %v238_v16  ;;  %v431_v19 = vrot.slane %v348_v15, %v977_v13 }
  0x95   : > { %v335_v20 = vsel %vm329_vm2, %v322_v18, %v263_v60 }
  0x96   : > { %v308_v4 = vpop.permute.xlu1 %307  ;;  %v432_v26 = vcombine.high %v431_v19, %v431_v19  ;;  %v439_v34 = vrot.slane %v431_v19, %v977_v13 }
  0x97   : > { %v346_v21 = vsel %vm340_vm1, %v335_v20, %v308_v4  ;;  %v306_v23 = vpop.permute.xlu0 %305 }
  0x98   : > { %v408_v24 = vrot.slane %v346_v21, %v977_v13  ;;  %v344_v3 = vsel %vm340_vm1, %v333_v22, %v306_v23  ;;  %v446_v7 = vrot.slane %v432_v26, %v977_v13  ;;  %v447_v52 = vcombine.high %v439_v34, %v439_v34 }
  0x99   : > { %v385_v10 = vrot.slane %v344_v3, %v977_v13  ;;  %v487_v55 = vunpack.i.h.s16 %v439_v34 }
  0x9a   : > { %v409_v27 = vcombine.high %v408_v24, %v408_v24  ;;  %v416_v28 = vrot.slane %v408_v24, %v977_v13  ;;  %v267_v49 = vpop.permute.xlu1 %266  ;;  %v489_v50 = vunpack.i.h.s16 %v446_v7 }
  0x9b   : > { %v386_v29 = vcombine.high %v385_v10, %v385_v10  ;;  %v393_v30 = vrot.slane %v385_v10, %v977_v13  ;;  %v304_v31 = vpop.permute.xlu0 %303  ;;  %v805_v5 = vpack.i.b16 %v446_v7, %v487_v55 }
  0x9c   : > { %v424_v35 = vcombine.high %v416_v28, %v416_v28  ;;  %v342_v36 = vsel %vm340_vm1, %v331_v33, %v304_v31  ;;  %v423_v38 = vrot.slane %v409_v27, %v977_v13  ;;  %v800_v27 = vld [vmem:[%s1037_s2] ss:$0 sm:$0xff] }
  0x9d   : > { %v400_v37 = vrot.slane %v386_v29, %v977_v13  ;;  %v362_v40 = vrot.slane %v342_v36, %v977_v13  ;;  %v401_v41 = vcombine.high %v393_v30, %v393_v30  ;;  %v477_v42 = vunpack.i.h.s16 %v393_v30 }
  0x9e   : > { %v804_v39 = vpack.i.b16 %v439_v34, %v424_v35 }
  0x9f   : > { %v479_v43 = vunpack.i.h.s16 %v400_v37  ;;  %v242_v44 = vpop.permute.xlu0 %241  ;;  %v363_v46 = vcombine.high %v362_v40, %v362_v40  ;;  %v370_v47 = vrot.slane %v362_v40, %v977_v13  ;;  %v802_v56 = vpack.i.b16 %v400_v37, %v477_v42  ;;  %v719_v40 = vld [vmem:[%s170_s7 + $0xc] sm:$0x1] }
  0xa0   : > { %v527_v45 = vcombine.low %v423_v38, %v804_v39  ;;  %v328_v48 = vsel %vm313_vm0, %v947_v32, %v242_v44  ;;  %v806_v32 = vpack.i.b16 %v447_v52, %v489_v50 }
  0xa1   : > { %v803_v51 = vpack.i.b16 %v401_v41, %v479_v43  ;;  %v377_v53 = vrot.slane %v363_v46, %v977_v13  ;;  %v378_v54 = vcombine.high %v370_v47, %v370_v47  ;;  %v339_v58 = vsel %vm329_vm2, %v328_v48, %v267_v49 }
  0xa2   : > { %v555_v63 = vrot.slane %v527_v45, %v977_v13  ;;  %v573_v14 = vcombine.low %v805_v5, %v806_v32 }
  0xa3   : > { %v526_v57 = vcombine.low %v803_v51, %v416_v28  ;;  %v312_v59 = vpop.permute.xlu0 %311  ;;  %v801_v60 = vpack.i.b16 %v393_v30, %v378_v54  ;;  %v524_v61 = vcombine.low %v370_v47, %v377_v53 }
  0xa4   : > { %v350_v62 = vsel %vm340_vm1, %v339_v58, %v312_v59  ;;  %v581_v21 = vrot.slane %v573_v14, %v977_v13 }
  0xa5   : > { %v454_v0 = vrot.slane %v350_v62, %v977_v13  ;;  %v548_v1 = vrot.slane %v526_v57, %v977_v13  ;;  %v525_v2 = vcombine.low %v801_v60, %v802_v56  ;;  %v534_v9 = vrot.slane %v524_v61, %v977_v13 }
  0xa7   : > { %v455_v6 = vcombine.high %v454_v0, %v454_v0  ;;  %v462_v8 = vrot.slane %v454_v0, %v977_v13  ;;  %v541_v11 = vrot.slane %v525_v2, %v977_v13  ;;  %v557_v12 = vcombine.low %v548_v1, %v555_v63 }
  0xa9   : > { %v469_v15 = vrot.slane %v455_v6, %v977_v13  ;;  %v470_v16 = vcombine.high %v462_v8, %v462_v8  ;;  %v556_v17 = vcombine.low %v534_v9, %v541_v11  ;;  %v571_v4 = vrot.slane %v557_v12, %v977_v13 }
  0xab   : > { %v495_v18 = vunpack.i.l.s16 %v470_v16  ;;  %v574_v19 = vcombine.low %v462_v8, %v469_v15  ;;  %v564_v20 = vrot.slane %v556_v17, %v977_v13 }
  0xad   : > { %v588_v22 = vrot.slane %v574_v19, %v977_v13  ;;  %v595_v23 = vrot.slane %v495_v18, %v977_v13  ;;  %v572_v24 = vcombine.low %v564_v20, %v571_v4 }
  0xaf   : > { %v596_v25 = vcombine.low %v581_v21, %v588_v22  ;;  %838 = vmatprep.mubr.msk.bf16.mxu0 %vm636_vm3, %v572_v24  ;;  %v610_v26 = vrot.slane %v595_v23, %v977_v13 }
  0xb1   : > { %v603_v3 = vrot.slane %v596_v25, %v977_v13 }
  0xb3   : > { %v611_v10 = vcombine.low %v603_v3, %v610_v26 }
  0xb5   : > { %839 = vmatmul.mubr.msk.bf16.vlgmr.msra.gmra.mxu0 %vm636_vm3, %v611_v10 }
 0x175   : > { %v840_v28 = vpop.f32.mrf.mxu0 }
 0x176   : > { %v686_v29 = vadd.f32 %v840_v28, %v800_v27 }
 0x177   : > { %v677_v30 = vpop.f32.mrf.mxu0 }
 0x178   : > { %v694_v31 = vmax.f32 %v686_v29, 0.0  ;;  %v678_v33 = vadd.f32 %v800_v27, %v677_v30 }
 0x179   : > { %v841_v34 = vpop.f32.mrf.mxu0 }
 0x17a   : > { %v822_v13 = vpack.c.bf16 %v694_v31, %v694_v31  ;;  %v692_v35 = vmax.f32 %v678_v33, 0.0  ;;  %v689_v36 = vadd.f32 %v841_v34, %v800_v27 }
 0x17b   : > { %v680_v7 = vpop.f32.mrf.mxu0 }
 0x17c   : > { %715 = vst.msk [vmem:[%s170_s7 + $0x8] sm:$0xf] %vm712_vm4, %v822_v13  ;;  %v820_v37 = vpack.c.bf16 %v692_v35, %v692_v35  ;;  %v695_v38 = vmax.f32 %v689_v36, 0.0  ;;  %v681_v39 = vadd.f32 %v800_v27, %v680_v7 }
 0x17e   : > { %713 = vst.msk [vmem:[%s170_s7] sm:$0xf] %vm712_vm4, %v820_v37  ;;  %v823_v41 = vpack.c.bf16 %v695_v38, %v695_v38  ;;  %v693_v42 = vmax.f32 %v681_v39, 0.0 }
 0x180   : > { %v720_v43 = vsel %vm718_vm7, %v823_v41, %v719_v40  ;;  %v821_v44 = vpack.c.bf16 %v693_v42, %v693_v42 }
 0x181   : > { %721 = vst [vmem:[%s170_s7 + $0xc] sm:$0x1] %v720_v43 }
 0x182   : > { %714 = vst.msk [vmem:[%s170_s7 + $0x4] sm:$0xf] %vm712_vm4, %v821_v44 }
 0x183 PF: > { %s13_s12 = sadd.s32 1, %s875_s12  }
 0x184   : > { %p10_p4 = scmp.ge.s32.totalorder %s13_s12, 6  }
 0x186   :  { %12 = sbr.rel (!%p10_p4) target bundleno = 1 (0x1), region = 63 }

// kernel: _lambda_.9
= control target key start
LH: loop header
LB: loop body
LE: loop exit
PB: predicated region body
PF: predicated region fallthrough
CT: control target
= control target key end

     0   :  { %s1720_s12 = smov 0   ;;  %s2038_s0 = inlined_call_operand.vmem [shape: bf16[4,10,10,8], index: 0, kind: input, shape index: {}]   ;;  %s2039_s1 = inlined_call_operand.vmem [shape: bf16[32,16], index: 1, kind: input, shape index: {}]   ;;  %s2040_s2 = inlined_call_operand.vmem [shape: f32[1,16], index: 2, kind: input, shape index: {}]   ;;  %s2041_s3 = inlined_call_operand.vmem [shape: bf16[4,81,16], index: 3, kind: output, shape index: {}]  }
   0x1 LB: > { %s1527_s13 = sadd.s32 4294967295, %s1694_s12   ;;  %p1531_p0 = scmp.ge.s32.totalorder %s1694_s12, 1  ;;  %s1694_s12 = sphi %s1720_s12, %s13_s12  }
   0x2   : > { %p137_p1 = scmp.lt.s32.totalorder %s1694_s12, 5 }
   0x4   : > { %p138_p2 = pnand %p1531_p0, %p137_p1 }
   0x5   : > { %p161_p3 = scmp.lt.s32.totalorder (!%p138_p2), %s1527_s13, 3  ;;  %s1696_s18 = smov (!%p138_p2), 16  }
   0x6   : > { %141 = sbr.rel (%p138_p2) target bundleno = 410 (0x19a), region = 32  ;;  %s1697_s19 = smov (!%p138_p2), 8  }
   0x7   : > { %s1698_s20 = smov (!%p138_p2), 24  }
   0xb   : > { %s2043_s13 = smov (!%p161_p3, %s1527_s13), 3  ;;  %vm479_vm0 = vcmask 64512   ;;  %vm517_vm1 = vcmask 195584   ;;  %vm498_vm2 = vcmask 130048   ;;  %vm1300_vm3 = vcmask 261120  }
   0xc   : > { %s1654_s14 = smul.u32 80, %s2043_s13  ;;  %vm1455_vm4 = vcmask 125952   ;;  %vm1466_vm5 = vcmask 122880   ;;  %vm1467_vm6 = vsmask.f32 256 }
   0xd   : > { %s1655_s27 = smul.u32 44, %s2043_s13  ;;  %vm1468_vm7 = vmand %vm1466_vm5, %vm1467_vm6 }
   0xe   : > { %s1734_s17 = scalar_lea.vmem %s2038_s0, %s1654_s14 }
   0xf   : > { %v1668_v0 = vld [vmem:[%s1734_s17 + $0x20] sm:$0x1f]   ;;  %v1738_v1 = vld [vmem:[%s1734_s17 + $0x28] sm:$0x1f]   ;;  %v1670_v2 = vld [vmem:[%s1734_s17 + $0x30] sm:$0x1f]   ;;  %s2011_s30 = scalar_lea.vmem %s2041_s3, %s1655_s27 }
  0x10   : > { %386 = vrot.lane.b32.xlu1 %v1668_v0, %s1696_s18  ;;  %388 = vrot.lane.b32.xlu0 %v1738_v1, %s1696_s18  ;;  %v1745_v3 = vld [vmem:[%s1734_s17 + $0x18] sm:$0x1f]   ;;  %v1754_v7 = vld [vmem:[%s1734_s17 + $0x28] sm:$0x1f]   ;;  %v434_v8 = vshrl.u32 %v1670_v2, 16  ;;  %v436_v9 = vshll.u32 %v1670_v2, 16 }
  0x11   : > { %v1748_v4 = vld [vmem:[%s1734_s17 + $0x38] sm:$0x1f]   ;;  %v276_v5 = vshrl.u32 %v1745_v3, 16  ;;  %v278_v6 = vshll.u32 %v1745_v3, 16  ;;  %v422_v10 = vshll.u32 %v1668_v0, 16  ;;  %v290_v12 = vshrl.u32 %v1754_v7, 16 }
  0x12   : > { %v292_v13 = vshll.u32 %v1754_v7, 16  ;;  %v438_v14 = vrot.slane %v436_v9, 1  ;;  %v420_v15 = vshrl.u32 %v1668_v0, 16  ;;  %v1759_v16 = vld [vmem:[%s1734_s17 + $0x30] sm:$0x1f]   ;;  %v429_v31 = vshll.u32 %v1738_v1, 16 }
  0x13   : > { %v280_v11 = vrot.slane %v278_v6, 1  ;;  %v1762_v18 = vld [vmem:[%s1734_s17 + $0x20] sm:$0x1f]   ;;  %v424_v21 = vrot.slane %v422_v10, 1  ;;  %v297_v22 = vshrl.u32 %v1759_v16, 16  ;;  %v299_v23 = vshll.u32 %v1759_v16, 16 }
  0x14   : > { %390 = vrot.lane.b32.xlu1 %v1670_v2, %s1696_s18  ;;  %v294_v19 = vrot.slane %v292_v13, 1  ;;  %v439_v20 = vor.u32 %v438_v14, %v434_v8  ;;  %v285_v24 = vshll.u32 %v1762_v18, 16  ;;  %v1771_v25 = vld [vmem:[%s1734_s17 + $0x38] sm:$0x1f]   ;;  %v1677_v32 = vld [vmem:[%s1734_s17 + $0x40] sm:$0x1f]  }
  0x15   : > { %v281_v17 = vor.u32 %v280_v11, %v276_v5  ;;  %v301_v27 = vrot.slane %v299_v23, 1  ;;  %v306_v28 = vshll.u32 %v1771_v25, 16  ;;  %v425_v29 = vor.u32 %v424_v21, %v420_v15  ;;  %v1781_v37 = vld [vmem:[%s1734_s17 + $0x10] sm:$0x1f]   ;;  %v1788_v44 = vld [vmem:[%s1734_s17 + $0x8] sm:$0x1f]  }
  0x16   : > { %v295_v26 = vor.u32 %v294_v19, %v290_v12  ;;  %v304_v30 = vshrl.u32 %v1771_v25, 16  ;;  %v283_v34 = vshrl.u32 %v1762_v18, 16  ;;  %v287_v35 = vrot.slane %v285_v24, 1  ;;  %v1792_v46 = vld [vmem:[%s1734_s17 + $0x10] sm:$0x1f]   ;;  %v1687_v13 = vld [vmem:[%s2039_s1] sm:$0xff]  }
  0x17   : > { %323 = vrot.lane.b32.xlu0 %v281_v17, %s1697_s19  ;;  %v302_v33 = vor.u32 %v301_v27, %v297_v22  ;;  %v308_v36 = vrot.slane %v306_v28, 1  ;;  %v427_v38 = vshrl.u32 %v1738_v1, 16  ;;  %v431_v40 = vrot.slane %v429_v31, 1  ;;  %v1802_v57 = vld [vmem:[%s1734_s17 + $0x40] sm:$0x1f]  }
  0x18   : > { %392 = vrot.lane.b32.xlu1 %v1748_v4, %s1696_s18  ;;  %v443_v41 = vshll.u32 %v1748_v4, 16  ;;  %v450_v42 = vshll.u32 %v1677_v32, 16  ;;  %v288_v43 = vor.u32 %v287_v35, %v283_v34  ;;  %v408_v45 = vshll.u32 %v1781_v37, 16  ;;  %v1807_v61 = vld [vmem:[%s1734_s17] sm:$0x1f]  }
  0x19   : > { %v309_v39 = vor.u32 %v308_v36, %v304_v30  ;;  %v448_v47 = vshrl.u32 %v1677_v32, 16  ;;  %v432_v49 = vor.u32 %v431_v40, %v427_v38  ;;  %v441_v50 = vshrl.u32 %v1748_v4, 16  ;;  %v1683_v2 = vld [vmem:[%s1734_s17 + $0x8] sm:$0x1f]   ;;  %v1684_v12 = vld [vmem:[%s1734_s17 + $0x18] sm:$0x1f]  }
  0x1a   : > { %v452_v48 = vrot.slane %v450_v42, 1  ;;  %v445_v51 = vrot.slane %v443_v41, 1  ;;  %v264_v52 = vshll.u32 %v1788_v44, 16  ;;  %v406_v53 = vshrl.u32 %v1781_v37, 16  ;;  %v1686_v4 = vld [vmem:[%s2039_s1 + $0x8] sm:$0xff]  }
  0x1b   : > { %327 = vrot.lane.b32.xlu0 %v295_v26, %s1697_s19  ;;  %v410_v54 = vrot.slane %v408_v45, 1  ;;  %v271_v55 = vshll.u32 %v1792_v46, 16  ;;  %v262_v59 = vshrl.u32 %v1788_v44, 16  ;;  %v269_v63 = vshrl.u32 %v1792_v46, 16  ;;  %1650 = vmatprep.subr.bf16.mxu1 %v1686_v4  ;;  %v1685_v27 = vld [vmem:[%s1734_s17 + $0x48] sm:$0x1f]  }
  0x1c   : > { %471 = vrot.lane.b32.xlu1 %v439_v20, %s1698_s20  ;;  %v453_v56 = vor.u32 %v452_v48, %v448_v47  ;;  %v446_v58 = vor.u32 %v445_v51, %v441_v50  ;;  %v266_v60 = vrot.slane %v264_v52, 1  ;;  %v313_v1 = vshll.u32 %v1802_v57, 16  ;;  %1634 = vmatprep.subr.bf16.mxu0 %v1686_v4 }
  0x1d   : > { %v411_v62 = vor.u32 %v410_v54, %v406_v53  ;;  %v273_v0 = vrot.slane %v271_v55, 1  ;;  %v257_v6 = vshll.u32 %v1807_v61, 16  ;;  %1652 = vmatpush3.bf16.msra.mxu1 %v1686_v4  ;;  %1635 = vmatpush3.bf16.msra.mxu0 %v1686_v4  ;;  %v311_v9 = vshrl.u32 %v1802_v57, 16 }
  0x1e   : > { %v267_v5 = vor.u32 %v266_v60, %v262_v59  ;;  %v315_v10 = vrot.slane %v313_v1, 1  ;;  %v401_v11 = vshll.u32 %v1683_v2, 16  ;;  %v255_v14 = vshrl.u32 %v1807_v61, 16  ;;  %1651 = vmatprep.subr.bf16.mxu1 %v1687_v13  ;;  %1636 = vmatprep.subr.bf16.mxu0 %v1687_v13 }
  0x1f   : > { %467 = vrot.lane.b32.xlu0 %v425_v29, %s1698_s20  ;;  %v274_v8 = vor.u32 %v273_v0, %v269_v63  ;;  %v259_v15 = vrot.slane %v257_v6, 1  ;;  %v399_v19 = vshrl.u32 %v1683_v2, 16  ;;  %v415_v21 = vshll.u32 %v1684_v12, 16 }
  0x20   : > { %329 = vrot.lane.b32.xlu1 %v302_v33, %s1697_s19  ;;  %v316_v17 = vor.u32 %v315_v10, %v311_v9  ;;  %v403_v20 = vrot.slane %v401_v11, 1  ;;  %v413_v24 = vshrl.u32 %v1684_v12, 16  ;;  %v457_v29 = vshll.u32 %v1685_v27, 16 }
  0x21   : > { %1653 = vmatpush3.bf16.msra.mxu1 %v1687_v13  ;;  %1637 = vmatpush3.bf16.msra.mxu0 %v1687_v13  ;;  %v260_v22 = vor.u32 %v259_v15, %v255_v14  ;;  %v417_v26 = vrot.slane %v415_v21, 1  ;;  %v455_v30 = vshrl.u32 %v1685_v27, 16  ;;  %v1699_v36 = vmov 1966171168  }
  0x22   : > { %v404_v23 = vor.u32 %v403_v20, %v399_v19  ;;  %v459_v31 = vrot.slane %v457_v29, 1  ;;  %v549_v38 = vlaneseq }
  0x23   : > { %325 = vrot.lane.b32.xlu0 %v288_v43, %s1697_s19  ;;  %v418_v28 = vor.u32 %v417_v26, %v413_v24 }
  0x24   : > { %331 = vrot.lane.b32.xlu1 %v309_v39, %s1697_s19  ;;  %v550_v42 = vshrl.u32 %v549_v38, 7 }
  0x27   : > { %469 = vrot.lane.b32.xlu0 %v432_v49, %s1698_s20 }
  0x28   : > { %394 = vrot.lane.b32.xlu1 %v1677_v32, %s1696_s18  ;;  %v460_v32 = vor.u32 %v459_v31, %v455_v30 }
  0x2b   : > { %473 = vrot.lane.b32.xlu0 %v446_v58, %s1698_s20 }
  0x2c   : > { %475 = vrot.lane.b32.xlu1 %v453_v56, %s1698_s20 }
  0x2f   : > { %319 = vrot.lane.b32.xlu0 %v267_v5, %s1697_s19 }
  0x30   : > { %463 = vrot.lane.b32.xlu1 %v411_v62, %s1698_s20 }
  0x33   : > { %382 = vrot.lane.b32.xlu0 %v1781_v37, %s1696_s18  ;;  %v547_v37 = vunpack.c.l.s4 %v1699_v36 }
  0x34   : > { %321 = vrot.lane.b32.xlu1 %v274_v8, %s1697_s19 }
  0x35   : > { %v548_v41 = vunpack.c.0.s8 %v547_v37 }
  0x37   : > { %317 = vrot.lane.b32.xlu0 %v260_v22, %s1697_s19  ;;  %v1838_v47 = vsub.s32 %v548_v41, %v550_v42 }
  0x38   : > { %333 = vrot.lane.b32.xlu1 %v316_v17, %s1697_s19 }
  0x3b   : > { %380 = vrot.lane.b32.xlu0 %v1683_v2, %s1696_s18 }
  0x3c   : > { %461 = vrot.lane.b32.xlu1 %v404_v23, %s1698_s20 }
  0x3f   : > { %384 = vrot.lane.b32.xlu0 %v1684_v12, %s1696_s18 }
  0x40   : > { %465 = vrot.lane.b32.xlu1 %v418_v28, %s1698_s20 }
  0x43   : > { %396 = vrot.lane.b32.xlu0 %v1685_v27, %s1696_s18 }
  0x47   : > { %477 = vrot.lane.b32.xlu0 %v460_v32, %s1698_s20 }
  0x82   : > { %v387_v33 = vpop.permute.xlu1 %386  ;;  %v389_v34 = vpop.permute.xlu0 %388 }
  0x86   : > { %v391_v35 = vpop.permute.xlu1 %390 }
  0x89   : > { %v324_v40 = vpop.permute.xlu0 %323 }
  0x8a   : > { %v393_v39 = vpop.permute.xlu1 %392  ;;  %v487_v48 = vsel %vm479_vm0, %v1745_v3, %v324_v40 }
  0x8b   : > { %v506_v55 = vsel %vm498_vm2, %v487_v48, %v387_v33 }
  0x8d   : > { %v328_v45 = vpop.permute.xlu0 %327 }
  0x8e   : > { %v472_v43 = vpop.permute.xlu1 %471  ;;  %v491_v49 = vsel %vm479_vm0, %v1754_v7, %v328_v45 }
  0x8f   : > { %v510_v50 = vsel %vm498_vm2, %v491_v49, %v391_v35 }
  0x90   : > { %v529_v51 = vsel %vm517_vm1, %v510_v50, %v472_v43 }
  0x91   : > { %v740_v53 = vcombine.high %v529_v51, %v529_v51  ;;  %v747_v54 = vrot.slane %v529_v51, %v1838_v47  ;;  %v468_v56 = vpop.permute.xlu0 %467 }
  0x92   : > { %v330_v52 = vpop.permute.xlu1 %329  ;;  %v525_v58 = vsel %vm517_vm1, %v506_v55, %v468_v56 }
  0x93   : > { %v755_v59 = vcombine.high %v747_v54, %v747_v54  ;;  %v1850_v3 = vrot.slane %v747_v54, %v1838_v47  ;;  %v662_v60 = vcombine.high %v525_v58, %v525_v58  ;;  %v493_v7 = vsel %vm479_vm0, %v1759_v16, %v330_v52 }
  0x94   : > { %v754_v62 = vrot.slane %v740_v53, %v1838_v47  ;;  %v669_v63 = vrot.slane %v525_v58, %v1838_v47  ;;  %v512_v9 = vsel %vm498_vm2, %v493_v7, %v393_v39 }
  0x95   : > { %v776_v1 = vrot.slane %v755_v59, %v1838_v47  ;;  %v777_v2 = vcombine.high %v1850_v3, %v1850_v3  ;;  %v326_v4 = vpop.permute.xlu0 %325  ;;  %v676_v5 = vrot.slane %v662_v60, %v1838_v47  ;;  %v942_v14 = vunpack.i.h.s16 %v1850_v3 }
  0x96   : > { %v332_v0 = vpop.permute.xlu1 %331  ;;  %v677_v6 = vcombine.high %v669_v63, %v669_v63  ;;  %v1861_v8 = vrot.slane %v669_v63, %v1838_v47  ;;  %v489_v12 = vsel %vm479_vm0, %v1762_v18, %v326_v4  ;;  %v769_v13 = vrot.slane %v754_v62, %v1838_v47 }
  0x97   : > { %v778_v16 = vcombine.high %v776_v1, %v776_v1  ;;  %v944_v10 = vunpack.i.h.s16 %v776_v1  ;;  %v946_v11 = vunpack.i.h.s16 %v777_v2  ;;  %v495_v23 = vsel %vm479_vm0, %v1771_v25, %v332_v0 }
  0x98   : > { %v698_v15 = vrot.slane %v677_v6, %v1838_v47  ;;  %v699_v17 = vcombine.high %v1861_v8, %v1861_v8  ;;  %v924_v22 = vunpack.i.h.s16 %v1861_v8  ;;  %v691_v18 = vrot.slane %v676_v5, %v1838_v47 }
  0x99   : > { %v1583_v20 = vpack.i.b16 %v777_v2, %v944_v10  ;;  %v1584_v21 = vpack.i.b16 %v778_v16, %v946_v11  ;;  %v470_v24 = vpop.permute.xlu0 %469  ;;  %v508_v28 = vsel %vm498_vm2, %v489_v12, %v389_v34  ;;  %v948_v32 = vunpack.i.h.s16 %v778_v16 }
  0x9a   : > { %v395_v19 = vpop.permute.xlu1 %394  ;;  %v700_v26 = vcombine.high %v698_v15, %v698_v15  ;;  %v926_v27 = vunpack.i.h.s16 %v698_v15  ;;  %v527_v30 = vsel %vm517_vm1, %v508_v28, %v470_v24  ;;  %v928_v33 = vunpack.i.h.s16 %v699_v17 }
  0x9b   : > { %v1176_v29 = vcombine.low %v1583_v20, %v1584_v21  ;;  %v514_v31 = vsel %vm498_vm2, %v495_v23, %v395_v19  ;;  %v701_v36 = vcombine.high %v527_v30, %v527_v30  ;;  %v708_v37 = vrot.slane %v527_v30, %v1838_v47 }
  0x9c   : > { %v930_v35 = vunpack.i.h.s16 %v700_v26  ;;  %v1879_v25 = vpack.i.b16 %v776_v1, %v942_v14  ;;  %v1881_v39 = vpack.i.b16 %v698_v15, %v924_v22  ;;  %v1883_v40 = vpack.i.b16 %v699_v17, %v926_v27 }
  0x9d   : > { %v474_v41 = vpop.permute.xlu0 %473  ;;  %v715_v43 = vrot.slane %v701_v36, %v1838_v47  ;;  %v716_v45 = vcombine.high %v708_v37, %v708_v37  ;;  %v1585_v48 = vpack.i.b16 %v769_v13, %v948_v32  ;;  %v1890_v49 = vrot.slane %v1176_v29, %v1838_v47 }
  0x9e   : > { %v476_v38 = vpop.permute.xlu1 %475  ;;  %v1886_v42 = vpack.i.b16 %v691_v18, %v930_v35  ;;  %v531_v50 = vsel %vm517_vm1, %v512_v9, %v474_v41  ;;  %v1579_v58 = vpack.i.b16 %v700_v26, %v928_v33  ;;  %v1081_v59 = vcombine.low %v1881_v39, %v1883_v40 }
  0x9f   : > { %v533_v34 = vsel %vm517_vm1, %v514_v31, %v476_v38  ;;  %v730_v53 = vrot.slane %v715_v43, %v1838_v47  ;;  %v779_v54 = vcombine.high %v531_v50, %v531_v50  ;;  %v786_v55 = vrot.slane %v531_v50, %v1838_v47 }
  0xa0   : > { %v818_v51 = vcombine.high %v533_v34, %v533_v34  ;;  %v825_v52 = vrot.slane %v533_v34, %v1838_v47  ;;  %v723_v0 = vrot.slane %v708_v37, %v1838_v47  ;;  %v737_v1 = vrot.slane %v716_v45, %v1838_v47 }
  0xa1   : > { %v320_v63 = vpop.permute.xlu0 %319  ;;  %v793_v2 = vrot.slane %v779_v54, %v1838_v47  ;;  %v1127_v4 = vcombine.low %v1579_v58, %v1886_v42  ;;  %v1581_v5 = vpack.i.b16 %v1850_v3, %v730_v53  ;;  %v794_v6 = vcombine.high %v786_v55, %v786_v55 }
  0xa2   : > { %v464_v56 = vpop.permute.xlu1 %463  ;;  %v832_v60 = vrot.slane %v818_v51, %v1838_v47  ;;  %v833_v7 = vcombine.high %v825_v52, %v825_v52  ;;  %v840_v62 = vrot.slane %v825_v52, %v1838_v47  ;;  %v801_v9 = vrot.slane %v786_v55, %v1838_v47 }
  0xa3   : > { %v808_v10 = vrot.slane %v793_v2, %v1838_v47  ;;  %v815_v15 = vrot.slane %v794_v6, %v1838_v47  ;;  %v483_v24 = vsel %vm479_vm0, %v1788_v44, %v320_v63  ;;  %v1128_v29 = vcombine.low %v723_v0, %v737_v1 }
  0xa4   : > { %v854_v16 = vrot.slane %v833_v7, %v1838_v47  ;;  %v847_v11 = vrot.slane %v832_v60, %v1838_v47  ;;  %v855_v12 = vcombine.high %v840_v62, %v840_v62  ;;  %v960_v13 = vunpack.i.h.s16 %v840_v62 }
  0xa5   : > { %v816_v17 = vcombine.high %v801_v9, %v801_v9  ;;  %v1177_v19 = vcombine.low %v1585_v48, %v801_v9  ;;  %v383_v21 = vpop.permute.xlu0 %382  ;;  %v1586_v23 = vpack.i.b16 %v840_v62, %v808_v10  ;;  %v817_v18 = vcombine.high %v815_v15, %v815_v15 }
  0xa6   : > { %v322_v14 = vpop.permute.xlu1 %321  ;;  %v856_v20 = vcombine.high %v854_v16, %v854_v16  ;;  %v962_v22 = vunpack.i.h.s16 %v854_v16  ;;  %v964_v3 = vunpack.i.h.s16 %v855_v12  ;;  %v1592_v30 = vcombine.high %v723_v0, %v737_v1 }
  0xa7   : > { %v1178_v26 = vcombine.low %v815_v15, %v816_v17  ;;  %v1193_v27 = vrot.slane %v1177_v19, %v1838_v47  ;;  %v1913_v31 = vpack.i.b16 %v854_v16, %v960_v13  ;;  %v502_v32 = vsel %vm498_vm2, %v483_v24, %v383_v21 }
  0xa8   : > { %v966_v28 = vunpack.i.h.s16 %v856_v20  ;;  %v1916_v35 = vpack.i.b16 %v855_v12, %v962_v22  ;;  %v1918_v36 = vpack.i.b16 %v856_v20, %v964_v3  ;;  %v1179_v38 = vcombine.low %v817_v18, %v1586_v23 }
  0xa9   : > { %v318_v44 = vpop.permute.xlu0 %317  ;;  %v1200_v41 = vrot.slane %v1178_v26, %v1838_v47  ;;  %v1208_v34 = vcombine.low %v1890_v49, %v1193_v27  ;;  %v521_v42 = vsel %vm517_vm1, %v502_v32, %v464_v56  ;;  %v485_v43 = vsel %vm479_vm0, %v1792_v46, %v322_v14 }
  0xaa   : > { %v334_v33 = vpop.permute.xlu1 %333  ;;  %v1920_v37 = vpack.i.b16 %v847_v11, %v966_v28  ;;  %v1207_v45 = vrot.slane %v1179_v38, %v1838_v47  ;;  %v584_v48 = vcombine.high %v521_v42, %v521_v42  ;;  %v591_v50 = vrot.slane %v521_v42, %v1838_v47 }
  0xab   : > { %v481_v51 = vsel %vm479_vm0, %v1807_v61, %v318_v44  ;;  %v497_v52 = vsel %vm479_vm0, %v1802_v57, %v334_v33  ;;  %v1130_v53 = vcombine.low %v1581_v5, %v1879_v25  ;;  %v1137_v49 = vrot.slane %v1127_v4, %v1838_v47 }
  0xac   : > { %v1144_v54 = vrot.slane %v1128_v29, %v1838_v47  ;;  %v1226_v46 = vcombine.low %v1918_v36, %v1920_v37  ;;  %v599_v56 = vcombine.high %v591_v50, %v591_v50  ;;  %v606_v58 = vrot.slane %v591_v50, %v1838_v47 }
  0xad   : > { %v1151_v60 = vrot.slane %v1592_v30, %v1838_v47  ;;  %v381_v61 = vpop.permute.xlu0 %380  ;;  %v1158_v7 = vrot.slane %v1130_v53, %v1838_v47  ;;  %v1209_v25 = vcombine.low %v1200_v41, %v1207_v45  ;;  %v598_v63 = vrot.slane %v584_v48, %v1838_v47 }
  0xae   : > { %v462_v55 = vpop.permute.xlu1 %461  ;;  %v1159_v62 = vcombine.low %v1137_v49, %v1144_v54  ;;  %v500_v57 = vsel %vm498_vm2, %v481_v51, %v381_v61  ;;  %v620_v0 = vrot.slane %v599_v56, %v1838_v47  ;;  %v621_v1 = vcombine.high %v606_v58, %v606_v58 }
  0xaf   : > { %v906_v2 = vunpack.i.h.s16 %v606_v58  ;;  %v1160_v4 = vcombine.low %v1151_v60, %v1158_v7  ;;  %v519_v6 = vsel %vm517_vm1, %v500_v57, %v462_v55  ;;  %v1216_v9 = vrot.slane %v1208_v34, %v1838_v47 }
  0xb0   : > { %v1167_v5 = vrot.slane %v1159_v62, %v1838_v47  ;;  %v545_v16 = vcombine.high %v519_v6, %v519_v6  ;;  %v552_v10 = vrot.slane %v519_v6, %v1838_v47  ;;  %v1223_v11 = vrot.slane %v1209_v25, %v1838_v47 }
  0xb1   : > { %v385_v12 = vpop.permute.xlu0 %384  ;;  %v622_v14 = vcombine.high %v620_v0, %v620_v0  ;;  %v1174_v15 = vrot.slane %v1160_v4, %v1838_v47  ;;  %v908_v19 = vunpack.i.h.s16 %v620_v0  ;;  %v910_v20 = vunpack.i.h.s16 %v621_v1 }
  0xb2   : > { %v466_v13 = vpop.permute.xlu1 %465  ;;  %v504_v17 = vsel %vm498_vm2, %v485_v43, %v385_v12  ;;  %v613_v21 = vrot.slane %v598_v63, %v1838_v47  ;;  %v559_v22 = vrot.slane %v545_v16, %v1838_v47  ;;  %v560_v3 = vcombine.high %v552_v10, %v552_v10 }
  0xb3   : > { %v1224_v23 = vcombine.low %v1216_v9, %v1223_v11  ;;  %v1175_v24 = vcombine.low %v1167_v5, %v1174_v15  ;;  %v567_v18 = vrot.slane %v552_v10, %v1838_v47  ;;  %v523_v26 = vsel %vm517_vm1, %v504_v17, %v466_v13 }
  0xb4   : > { %v912_v27 = vunpack.i.h.s16 %v622_v14  ;;  %v574_v28 = vrot.slane %v559_v22, %v1838_v47  ;;  %v581_v29 = vrot.slane %v560_v3, %v1838_v47  ;;  %v623_v30 = vcombine.high %v523_v26, %v523_v26 }
  0xb5   : > { %v630_v32 = vrot.slane %v523_v26, %v1838_v47  ;;  %v397_v33 = vpop.permute.xlu0 %396  ;;  %1642 = vmatprep.mubr.msk.bf16.mxu1 %vm1300_vm3, %v1175_v24  ;;  %v1572_v44 = vpack.i.b16 %v620_v0, %v906_v2  ;;  %v1573_v41 = vpack.i.b16 %v621_v1, %v908_v19  ;;  %v1574_v34 = vpack.i.b16 %v622_v14, %v910_v20 }
  0xb6   : > { %v1575_v38 = vpack.i.b16 %v613_v21, %v912_v27  ;;  %v1571_v42 = vpack.i.b16 %v606_v58, %v574_v28  ;;  %v1029_v43 = vcombine.low %v567_v18, %v581_v29  ;;  %v1591_v45 = vcombine.high %v567_v18, %v581_v29  ;;  %1643 = vmatmul.mubr.msk.bf16.vlgmr.msra.gmra.mxu1 %vm1300_vm3, %v1224_v23 }
  0xb7   : > { %v637_v48 = vrot.slane %v623_v30, %v1838_v47  ;;  %v638_v50 = vcombine.high %v630_v32, %v630_v32  ;;  %v645_v51 = vrot.slane %v630_v32, %v1838_v47  ;;  %v516_v53 = vsel %vm498_vm2, %v497_v52, %v397_v33 }
  0xb8   : > { %v1032_v49 = vcombine.low %v1573_v41, %v1574_v34  ;;  %v1031_v56 = vcombine.low %v1571_v42, %v1572_v44  ;;  %v1039_v60 = vrot.slane %v1029_v43, %v1838_v47  ;;  %v1046_v58 = vrot.slane %v1591_v45, %v1838_v47 }
  0xb9   : > { %v652_v54 = vrot.slane %v637_v48, %v1838_v47  ;;  %v478_v55 = vpop.permute.xlu0 %477  ;;  %v659_v61 = vrot.slane %v638_v50, %v1838_v47  ;;  %v660_v7 = vcombine.high %v645_v51, %v645_v51  ;;  %v1078_v62 = vcombine.low %v1575_v38, %v645_v51  ;;  %v1570_v38 = vld [vmem:[%s2040_s2] ss:$0 sm:$0xff] }
  0xba   : > { %v535_v57 = vsel %vm517_vm1, %v516_v53, %v478_v55  ;;  %v1053_v0 = vrot.slane %v1031_v56, %v1838_v47  ;;  %v1225_v1 = vcombine.low %v1913_v31, %v1916_v35  ;;  %v1060_v5 = vrot.slane %v1032_v49, %v1838_v47 }
  0xbb   : > { %v1576_v25 = vpack.i.b16 %v1861_v8, %v652_v54  ;;  %v857_v63 = vcombine.high %v535_v57, %v535_v57  ;;  %v864_v52 = vrot.slane %v535_v57, %v1838_v47  ;;  %v661_v2 = vcombine.high %v659_v61, %v659_v61 }
  0xbc   : > { %v1079_v4 = vcombine.low %v659_v61, %v660_v7  ;;  %v1242_v6 = vrot.slane %v1226_v46, %v1838_v47  ;;  %v1061_v16 = vcombine.low %v1039_v60, %v1046_v58  ;;  %v1088_v11 = vrot.slane %v1078_v62, %v1838_v47 }
  0xbd   : > { %v871_v9 = vrot.slane %v857_v63, %v1838_v47  ;;  %v872_v8 = vcombine.high %v864_v52, %v864_v52  ;;  %v1080_v10 = vcombine.low %v661_v2, %v1576_v25  ;;  %v1062_v13 = vcombine.low %v1053_v0, %v1060_v5 }
  0xbe   : > { %v1095_v12 = vrot.slane %v1079_v4, %v1838_v47  ;;  %v879_v31 = vrot.slane %v864_v52, %v1838_v47  ;;  %v1109_v36 = vrot.slane %v1081_v59, %v1838_v47  ;;  %v1069_v15 = vrot.slane %v1061_v16, %v1838_v47 }
  0xbf   : > { %v886_v35 = vrot.slane %v871_v9, %v1838_v47  ;;  %v893_v14 = vrot.slane %v872_v8, %v1838_v47  ;;  %v1102_v37 = vrot.slane %v1080_v10, %v1838_v47  ;;  %v1076_v17 = vrot.slane %v1062_v13, %v1838_v47  ;;  %v1469_v10 = vld [vmem:[%s2011_s30 + $0x28] sm:$0x1] }
  0xc0   : > { %v1110_v46 = vcombine.low %v1088_v11, %v1095_v12  ;;  %v1235_v21 = vrot.slane %v1225_v1, %v1838_v47 }
  0xc1   : > { %v1227_v19 = vcombine.low %v879_v31, %v893_v14  ;;  %v1593_v20 = vcombine.high %v879_v31, %v893_v14  ;;  %v976_v22 = vunpack.i.l.s16 %v886_v35  ;;  %v1077_v3 = vcombine.low %v1069_v15, %v1076_v17 }
  0xc2   : > { %v1111_v23 = vcombine.low %v1102_v37, %v1109_v36  ;;  %v1257_v39 = vcombine.low %v1235_v21, %v1242_v6  ;;  %v1118_v40 = vrot.slane %v1110_v46, %v1838_v47 }
  0xc3   : > { %v1249_v24 = vrot.slane %v1227_v19, %v1838_v47  ;;  %v1256_v18 = vrot.slane %v1593_v20, %v1838_v47  ;;  %1638 = vmatprep.mubr.msk.bf16.mxu0 %vm1300_vm3, %v1077_v3  ;;  %v1280_v27 = vrot.slane %v976_v22, %v1838_v47 }
  0xc4   : > { %v1125_v59 = vrot.slane %v1111_v23, %v1838_v47  ;;  %v1265_v29 = vrot.slane %v1257_v39, %v1838_v47 }
  0xc5   : > { %v1258_v26 = vcombine.low %v1249_v24, %v1256_v18  ;;  %v1287_v33 = vrot.slane %v1280_v27, %v1838_v47 }
  0xc6   : > { %v1126_v28 = vcombine.low %v1118_v40, %v1125_v59 }
  0xc7   : > { %v1272_v30 = vrot.slane %v1258_v26, %v1838_v47 }
  0xc8   : > { %1639 = vmatmul.mubr.msk.bf16.vlgmr.msra.gmra.mxu0 %vm1300_vm3, %v1126_v28 }
  0xc9   : > { %v1273_v32 = vcombine.low %v1265_v29, %v1272_v30 }
  0xcb   : > { %1646 = vmatprep.mubr.msk.bf16.mxu1 %vm1300_vm3, %v1273_v32 }
  0xcc   : > { %1647 = vmatmul.mubr.msk.bf16.gmra.mxu1 %vm1300_vm3, %v1287_v33 }
 0x176   : > { %v1644_v44 = vpop.f32.mrf.mxu1 }
 0x177   : > { %v1378_v41 = vadd.f32 %v1644_v44, %v1570_v38 }
 0x178   : > { %v1369_v34 = vpop.f32.mrf.mxu1 }
 0x179   : > { %v1405_v42 = vmax.f32 %v1378_v41, 0.0  ;;  %v1370_v43 = vadd.f32 %v1570_v38, %v1369_v34 }
 0x17a   : > { %v1645_v47 = vpop.f32.mrf.mxu1 }
 0x17b   : > { %v1621_v45 = vpack.c.bf16 %v1405_v42, %v1405_v42  ;;  %v1403_v48 = vmax.f32 %v1370_v43, 0.0  ;;  %v1381_v50 = vadd.f32 %v1645_v47, %v1570_v38 }
 0x17c   : > { %v1372_v51 = vpop.f32.mrf.mxu1 }
 0x17d   : > { %1462 = vst.msk [vmem:[%s2011_s30 + $0x18] sm:$0xf] %vm1455_vm4, %v1621_v45  ;;  %v1619_v53 = vpack.c.bf16 %v1403_v48, %v1403_v48  ;;  %v1406_v49 = vmax.f32 %v1381_v50, 0.0  ;;  %v1373_v54 = vadd.f32 %v1570_v38, %v1372_v51 }
 0x17f   : > { %1460 = vst.msk [vmem:[%s2011_s30 + $0x10] sm:$0xf] %vm1455_vm4, %v1619_v53  ;;  %v1622_v55 = vpack.c.bf16 %v1406_v49, %v1406_v49  ;;  %v1404_v56 = vmax.f32 %v1373_v54, 0.0 }
 0x181   : > { %1463 = vst.msk [vmem:[%s2011_s30 + $0x1c] sm:$0xf] %vm1455_vm4, %v1622_v55  ;;  %v1620_v60 = vpack.c.bf16 %v1404_v56, %v1404_v56 }
 0x183   : > { %1461 = vst.msk [vmem:[%s2011_s30 + $0x14] sm:$0xf] %vm1455_vm4, %v1620_v60 }
 0x188   : > { %v1640_v58 = vpop.f32.mrf.mxu0 }
 0x189   : > { %v1362_v61 = vadd.f32 %v1640_v58, %v1570_v38 }
 0x18a   : > { %v1353_v7 = vpop.f32.mrf.mxu0 }
 0x18b   : > { %v1401_v62 = vmax.f32 %v1362_v61, 0.0  ;;  %v1354_v57 = vadd.f32 %v1570_v38, %v1353_v7 }
 0x18c   : > { %v1641_v25 = vpop.f32.mrf.mxu0  ;;  %v1648_v63 = vpop.f32.mrf.mxu1 }
 0x18d   : > { %v1617_v52 = vpack.c.bf16 %v1401_v62, %v1401_v62  ;;  %v1399_v0 = vmax.f32 %v1354_v57, 0.0  ;;  %v1365_v1 = vadd.f32 %v1641_v25, %v1570_v38  ;;  %v1394_v2 = vadd.f32 %v1648_v63, %v1570_v38 }
 0x18e   : > { %v1356_v4 = vpop.f32.mrf.mxu0  ;;  %v1385_v5 = vpop.f32.mrf.mxu1 }
 0x18f   : > { %1458 = vst.msk [vmem:[%s2011_s30 + $0x8] sm:$0xf] %vm1455_vm4, %v1617_v52  ;;  %v1615_v6 = vpack.c.bf16 %v1399_v0, %v1399_v0  ;;  %v1402_v9 = vmax.f32 %v1365_v1, 0.0  ;;  %v1409_v8 = vmax.f32 %v1394_v2, 0.0  ;;  %v1357_v16 = vadd.f32 %v1570_v38, %v1356_v4 }
 0x190   : > { %v1386_v11 = vadd.f32 %v1570_v38, %v1385_v5  ;;  %v1649_v12 = vpop.f32.mrf.mxu1 }
 0x191   : > { %1456 = vst.msk [vmem:[%s2011_s30] sm:$0xf] %vm1455_vm4, %v1615_v6  ;;  %v1618_v13 = vpack.c.bf16 %v1402_v9, %v1402_v9  ;;  %v1625_v31 = vpack.c.bf16 %v1409_v8, %v1409_v8  ;;  %v1400_v35 = vmax.f32 %v1357_v16, 0.0 }
 0x192   : > { %v1407_v14 = vmax.f32 %v1386_v11, 0.0  ;;  %v1388_v36 = vpop.f32.mrf.mxu1 }
 0x193   : > { %1459 = vst.msk [vmem:[%s2011_s30 + $0xc] sm:$0xf] %vm1455_vm4, %v1618_v13  ;;  %v1470_v37 = vsel %vm1468_vm7, %v1625_v31, %v1469_v10  ;;  %v1616_v46 = vpack.c.bf16 %v1400_v35, %v1400_v35  ;;  %v1389_v15 = vadd.f32 %v1570_v38, %v1388_v36 }
 0x194   : > { %1471 = vst [vmem:[%s2011_s30 + $0x28] sm:$0x1] %v1470_v37  ;;  %v1623_v17 = vpack.c.bf16 %v1407_v14, %v1407_v14 }
 0x195   : > { %1457 = vst.msk [vmem:[%s2011_s30 + $0x4] sm:$0xf] %vm1455_vm4, %v1616_v46  ;;  %v1408_v19 = vmax.f32 %v1389_v15, 0.0 }
 0x196   : > { %1464 = vst.msk [vmem:[%s2011_s30 + $0x20] sm:$0xf] %vm1455_vm4, %v1623_v17 }
 0x197   : > { %v1624_v20 = vpack.c.bf16 %v1408_v19, %v1408_v19 }
 0x199   : > { %1465 = vst.msk [vmem:[%s2011_s30 + $0x24] sm:$0xf] %vm1455_vm4, %v1624_v20 }
 0x19a PF: > { %s13_s12 = sadd.s32 1, %s1694_s12  }
 0x19b   : > { %p10_p4 = scmp.ge.s32.totalorder %s13_s12, 6  }
 0x19d   :  { %12 = sbr.rel (!%p10_p4) target bundleno = 1 (0x1), region = 63 }

// kernel: _lambda_.10
= control target key start
LH: loop header
LB: loop body
LE: loop exit
PB: predicated region body
PF: predicated region fallthrough
CT: control target
= control target key end

     0   :  { %s4929_s12 = smov 0   ;;  %s6329_s0 = inlined_call_operand.vmem [shape: bf16[4,18,18,4], index: 0, kind: input, shape index: {}]   ;;  %s6330_s1 = inlined_call_operand.vmem [shape: bf16[16,12], index: 1, kind: input, shape index: {}]   ;;  %s6331_s2 = inlined_call_operand.vmem [shape: f32[1,12], index: 2, kind: input, shape index: {}]   ;;  %s6332_s3 = inlined_call_operand.vmem [shape: bf16[4,289,12], index: 3, kind: output, shape index: {}]  }
   0x1 LB: > { %s4374_s13 = sadd.s32 4294967295, %s4901_s12   ;;  %p4378_p0 = scmp.ge.s32.totalorder %s4901_s12, 1  ;;  %s4901_s12 = sphi %s4929_s12, %s13_s12  }
   0x2   : > { %p137_p1 = scmp.lt.s32.totalorder %s4901_s12, 5 }
   0x4   : > { %p138_p2 = pnand %p4378_p0, %p137_p1 }
   0x6   : > { %141 = sbr.rel (%p138_p2) target bundleno = 555 (0x22b), region = 32 }
   0xb   : > { %p161_p3 = scmp.lt.s32.totalorder %s4374_s13, 3  ;;  %vm411_vm0 = vsmask.f32 7424  ;;  %s4903_s18 = smov 8   ;;  %vm4907_vm1 = vmmov 0   ;;  %vm1297_vm2 = vcmask 64512  }
   0xc   : > { %s4904_s19 = smov 4   ;;  %s4905_s20 = smov 12   ;;  %vm1228_vm3 = vcmask 31744   ;;  %vm1366_vm4 = vcmask 97280   ;;  %vm3885_vm5 = vcmask 130048   ;;  %vm4276_vm6 = vcmask 93184  }
   0xd   : > { %s6370_s13 = smov (!%p161_p3, %s4374_s13), 3  ;;  %vm4313_vm7 = vcmask 90112   ;;  %vm4314_vm8 = vsmask.f32 256 }
   0xe   : > { %s4779_s14 = smul.u32 216, %s6370_s13  ;;  %vm4315_vm9 = vmand %vm4313_vm7, %vm4314_vm8 }
   0xf   : > { %s4780_s23 = smul.u32 148, %s6370_s13 }
  0x10   : > { %s4943_s17 = scalar_lea.vmem %s6329_s0, %s4779_s14 }
  0x11   : > { %v4795_v0 = vld [vmem:[%s4943_s17 + $0x18] sm:$0xff]   ;;  %v4796_v1 = vld [vmem:[%s4943_s17 + $0xc] sm:$0xff]   ;;  %v4798_v5 = vld [vmem:[%s4943_s17 + $0x8] ss:$0 sps:$4 sm:$0x11]   ;;  %s6214_s28 = scalar_lea.vmem %s6332_s3, %s4780_s23 }
  0x12   : > { %858 = vrot.lane.b32.xlu1 %v4795_v0, %s4903_s18  ;;  %v939_v2 = vshll.u32 %v4795_v0, 16  ;;  %v4797_v3 = vld [vmem:[%s4943_s17 + $0x78] sm:$0xff]   ;;  %854 = vrot.lane.b32.xlu0 %v4796_v1, %s4903_s18  ;;  %v925_v4 = vshll.u32 %v4796_v1, 16  ;;  %v4952_v7 = vld [vmem:[%s4943_s17 + $0x14] ss:$0 sps:$4 sm:$0x11]  }
  0x13   : > { %v1051_v6 = vshll.u32 %v4797_v3, 16  ;;  %v424_v8 = vshrl.u32 %v4798_v5, 16  ;;  %v923_v9 = vshrl.u32 %v4796_v1, 16  ;;  %v4955_v11 = vld [vmem:[%s4943_s17] sm:$0xff]   ;;  %v930_v12 = vshll.u32 %v4952_v7, 16  ;;  %v4963_v19 = vld [vmem:[%s4943_s17 + $0xc] sm:$0xff]  }
  0x14   : > { %v927_v10 = vrot.slane %v925_v4, 1  ;;  %v420_v13 = vshll.u32 %v4798_v5, 16  ;;  %v413_v15 = vshrl.u32 %v4955_v11, 16  ;;  %v415_v16 = vshll.u32 %v4955_v11, 16  ;;  %v4969_v22 = vld [vmem:[%s4943_s17 + $0x6c] sm:$0xff]   ;;  %v4807_v32 = vld [vmem:[%s4943_s17 + $0x78] sm:$0xff]  }
  0x15   : > { %v932_v17 = vrot.slane %v930_v12, 1  ;;  %v4966_v20 = vld [vmem:[%s4943_s17 + $0x14] ss:$0 sps:$4 sm:$0x11]   ;;  %v427_v24 = vshrl.u32 %v4963_v19, 16  ;;  %v429_v25 = vshll.u32 %v4963_v19, 16 }
  0x16   : > { %890 = vrot.lane.b32.xlu0 %v4797_v3, %s4903_s18  ;;  %652 = vrot.lane.b32.xlu1 %v424_v8, %s4904_s19  ;;  %v928_v14 = vor.u32 %v927_v10, %v923_v9  ;;  %v422_v18 = vrot.slane %v420_v13, 1  ;;  %v417_v21 = vrot.slane %v415_v16, 1  ;;  %v434_v26 = vshll.u32 %v4966_v20, 16  ;;  %v4804_v28 = vld [vmem:[%s4943_s17 + $0x74] ss:$0 sps:$4 sm:$0x11]  }
  0x17   : > { %v539_v29 = vshrl.u32 %v4969_v22, 16  ;;  %v541_v30 = vshll.u32 %v4969_v22, 16  ;;  %v937_v31 = vshrl.u32 %v4795_v0, 16  ;;  %v431_v33 = vrot.slane %v429_v25, 1  ;;  %v4809_v55 = vld [vmem:[%s4943_s17 + $0x84] sm:$0xff]   ;;  %v4813_v4 = vld [vmem:[%s4943_s17 + $0x18] sm:$0xff]  }
  0x18   : > { %v933_v23 = vsel %vm411_vm0, %v928_v14, %v932_v17  ;;  %v418_v27 = vor.u32 %v417_v21, %v413_v15  ;;  %v436_v34 = vrot.slane %v434_v26, 1  ;;  %v941_v35 = vrot.slane %v939_v2, 1  ;;  %v4982_v40 = vld [vmem:[%s4943_s17 + $0x20] ss:$0 sps:$4 sm:$0x11]  }
  0x19   : > { %v1049_v36 = vshrl.u32 %v4797_v3, 16  ;;  %v543_v38 = vrot.slane %v541_v30, 1  ;;  %v546_v39 = vshll.u32 %v4804_v28, 16  ;;  %v1053_v41 = vrot.slane %v1051_v6, 1  ;;  %v4811_v3 = vld [vmem:[%s4943_s17 + $0x84] sm:$0xff]  }
  0x1a   : > { %1160 = vrot.lane.b32.xlu1 %v933_v23, %s4905_s20  ;;  %v423_v37 = vsel %vm411_vm0, %v418_v27, %v422_v18  ;;  %v432_v42 = vor.u32 %v431_v33, %v427_v24  ;;  %v4986_v43 = vld [vmem:[%s4943_s17 + $0x80] ss:$0 sps:$4 sm:$0x11]   ;;  %v942_v46 = vor.u32 %v941_v35, %v937_v31  ;;  %v944_v47 = vshll.u32 %v4982_v40, 16  ;;  %v4815_v24 = vld [vmem:[%s4943_s17 + $0x24] sm:$0xff]  }
  0x1b   : > { %650 = vrot.lane.b32.xlu0 %v423_v37, %s4904_s19  ;;  %v544_v44 = vor.u32 %v543_v38, %v539_v29  ;;  %v548_v45 = vrot.slane %v546_v39, 1  ;;  %v1054_v49 = vor.u32 %v1053_v41, %v1049_v36  ;;  %v1056_v50 = vshll.u32 %v4986_v43, 16  ;;  %v4992_v51 = vld [vmem:[%s4943_s17 + $0x80] ss:$0 sps:$4 sm:$0x11]   ;;  %v4817_v29 = vld [vmem:[%s4943_s17 + $0x90] sm:$0xff]  }
  0x1c   : > { %v437_v48 = vsel %vm411_vm0, %v432_v42, %v436_v34  ;;  %v946_v53 = vrot.slane %v944_v47, 1  ;;  %v555_v54 = vshll.u32 %v4807_v32, 16  ;;  %v553_v57 = vshrl.u32 %v4807_v32, 16  ;;  %v5005_v2 = vld [vmem:[%s4943_s17 + $0x8c] ss:$0 sps:$4 sm:$0x11]  }
  0x1d   : > { %v549_v52 = vsel %vm411_vm0, %v544_v44, %v548_v45  ;;  %v1058_v56 = vrot.slane %v1056_v50, 1  ;;  %v560_v58 = vshll.u32 %v4992_v51, 16  ;;  %v934_v62 = vshrl.u32 %v4952_v7, 16  ;;  %v5011_v9 = vld [vmem:[%s4943_s17 + $0x8c] ss:$0 sps:$4 sm:$0x11]  }
  0x1e   : > { %654 = vrot.lane.b32.xlu1 %v437_v48, %s4904_s19  ;;  %v947_v59 = vsel %vm411_vm0, %v942_v46, %v946_v53  ;;  %v557_v60 = vrot.slane %v555_v54, 1  ;;  %v1065_v63 = vshll.u32 %v4809_v55, 16  ;;  %v550_v5 = vshrl.u32 %v4804_v28, 16  ;;  %v5018_v14 = vld [vmem:[%s4943_s17 + $0x20] ss:$0 sps:$4 sm:$0x11]  }
  0x1f   : > { %686 = vrot.lane.b32.xlu0 %v549_v52, %s4904_s19  ;;  %v1059_v61 = vsel %vm411_vm0, %v1054_v49, %v1058_v56  ;;  %v562_v1 = vrot.slane %v560_v58, 1  ;;  %v1063_v6 = vshrl.u32 %v4809_v55, 16  ;;  %v1070_v12 = vshll.u32 %v5005_v2, 16  ;;  %v5028_v28 = vld [vmem:[%s4943_s17 + $0x2c] ss:$0 sps:$4 sm:$0x11]  }
  0x20   : > { %v558_v0 = vor.u32 %v557_v60, %v553_v57  ;;  %v1067_v8 = vrot.slane %v1065_v63, 1  ;;  %v569_v13 = vshll.u32 %v4811_v3, 16  ;;  %v443_v15 = vshll.u32 %v4813_v4, 16  ;;  %v5039_v42 = vld [vmem:[%s4943_s17 + $0x98] ss:$0 sps:$4 sm:$0x11]  }
  0x21   : > { %v567_v17 = vshrl.u32 %v4811_v3, 16  ;;  %v1072_v18 = vrot.slane %v1070_v12, 1  ;;  %v441_v23 = vshrl.u32 %v4813_v4, 16  ;;  %v448_v26 = vshll.u32 %v5018_v14, 16  ;;  %v4819_v44 = vld [vmem:[%s4943_s17 + $0x24] sm:$0xff]   ;;  %v4821_v57 = vld [vmem:[%s4943_s17 + $0x30] sm:$0xff]  }
  0x22   : > { %1164 = vrot.lane.b32.xlu1 %v947_v59, %s4905_s20  ;;  %v563_v10 = vsel %vm411_vm0, %v558_v0, %v562_v1  ;;  %v1068_v16 = vor.u32 %v1067_v8, %v1063_v6  ;;  %v571_v21 = vrot.slane %v569_v13, 1  ;;  %v445_v25 = vrot.slane %v443_v15, 1  ;;  %v5048_v52 = vld [vmem:[%s4943_s17 + $0x2c] ss:$0 sps:$4 sm:$0x11]   ;;  %v4823_v13 = vld [vmem:[%s4943_s17 + $0x90] sm:$0xff]  }
  0x23   : > { %1196 = vrot.lane.b32.xlu0 %v1059_v61, %s4905_s20  ;;  %v1060_v27 = vshrl.u32 %v4986_v43, 16  ;;  %v953_v33 = vshll.u32 %v4815_v24, 16  ;;  %v450_v35 = vrot.slane %v448_v26, 1  ;;  %v951_v36 = vshrl.u32 %v4815_v24, 16 }
  0x24   : > { %v1073_v30 = vsel %vm411_vm0, %v1068_v16, %v1072_v18  ;;  %v572_v31 = vor.u32 %v571_v21, %v567_v17  ;;  %v446_v34 = vor.u32 %v445_v25, %v441_v23  ;;  %v958_v37 = vshll.u32 %v5028_v28, 16  ;;  %v5072_v15 = vld [vmem:[%s4943_s17 + $0x98] ss:$0 sps:$4 sm:$0x11]   ;;  %v4825_v21 = vld [vmem:[%s4943_s17 + $0x9c] sm:$0xff]  }
  0x25   : > { %v1079_v38 = vshll.u32 %v4817_v29, 16  ;;  %v955_v41 = vrot.slane %v953_v33, 1  ;;  %v438_v45 = vshrl.u32 %v4966_v20, 16  ;;  %v1077_v47 = vshrl.u32 %v4817_v29, 16 }
  0x26   : > { %1162 = vrot.lane.b32.xlu1 %v934_v62, %s4905_s20  ;;  %v960_v46 = vrot.slane %v958_v37, 1  ;;  %v1084_v50 = vshll.u32 %v5039_v42, 16  ;;  %v457_v53 = vshll.u32 %v4819_v44, 16  ;;  %v455_v56 = vshrl.u32 %v4819_v44, 16 }
  0x27   : > { %856 = vrot.lane.b32.xlu0 %v4952_v7, %s4903_s18  ;;  %v574_v7 = vshll.u32 %v5011_v9, 16  ;;  %v1081_v48 = vrot.slane %v1079_v38, 1  ;;  %v956_v49 = vor.u32 %v955_v41, %v951_v36  ;;  %v462_v59 = vshll.u32 %v5048_v52, 16  ;;  %v5059_v62 = vld [vmem:[%s4943_s17 + $0x38] ss:$0 sps:$4 sm:$0x11]  }
  0x28   : > { %v1086_v20 = vrot.slane %v1084_v50, 1  ;;  %v459_v58 = vrot.slane %v457_v53, 1  ;;  %v967_v61 = vshll.u32 %v4821_v57, 16  ;;  %v948_v1 = vshrl.u32 %v4982_v40, 16 }
  0x29   : > { %v576_v32 = vrot.slane %v574_v7, 1  ;;  %v961_v54 = vsel %vm411_vm0, %v956_v49, %v960_v46  ;;  %v464_v0 = vrot.slane %v462_v59, 1  ;;  %v965_v3 = vshrl.u32 %v4821_v57, 16  ;;  %v5106_v36 = vld [vmem:[%s4943_s17 + $0x38] ss:$0 sps:$4 sm:$0x11]  }
  0x2a   : > { %690 = vrot.lane.b32.xlu1 %v563_v10, %s4904_s19  ;;  %v460_v63 = vor.u32 %v459_v58, %v455_v56  ;;  %v969_v4 = vrot.slane %v967_v61, 1  ;;  %v564_v8 = vshrl.u32 %v4992_v51, 16  ;;  %v583_v16 = vshll.u32 %v4823_v13, 16  ;;  %v5112_v38 = vld [vmem:[%s4943_s17 + $0x44] ss:$0 sps:$4 sm:$0x11]  }
  0x2b   : > { %688 = vrot.lane.b32.xlu0 %v550_v5, %s4904_s19  ;;  %v577_v39 = vsel %vm411_vm0, %v572_v31, %v576_v32  ;;  %v972_v5 = vshll.u32 %v5059_v62, 16  ;;  %v452_v17 = vshrl.u32 %v5018_v14, 16  ;;  %v1074_v18 = vshrl.u32 %v5005_v2, 16  ;;  %v4831_v46 = vld [vmem:[%s4943_s17 + $0x9c] sm:$0xff]  }
  0x2c   : > { %v465_v6 = vsel %vm411_vm0, %v460_v63, %v464_v0  ;;  %v970_v10 = vor.u32 %v969_v4, %v965_v3  ;;  %v581_v51 = vshrl.u32 %v4823_v13, 16  ;;  %v585_v7 = vrot.slane %v583_v16, 1  ;;  %v5129_v59 = vld [vmem:[%s4943_s17 + $0x44] ss:$0 sps:$4 sm:$0x11]   ;;  %v4833_v3 = vld [vmem:[%s4943_s17 + $0xa8] sm:$0xff]  }
  0x2d   : > { %v974_v12 = vrot.slane %v972_v5, 1  ;;  %v588_v23 = vshll.u32 %v5072_v15, 16  ;;  %v962_v25 = vshrl.u32 %v5028_v28, 16  ;;  %v6333_v26 = vmov 0.0  }
  0x2e   : > { %894 = vrot.lane.b32.xlu1 %v4809_v55, %s4903_s18  ;;  %v1082_v55 = vor.u32 %v1081_v48, %v1077_v47  ;;  %4699 = vmatprep.subr.bf16.mxu0 %v6333_v26  ;;  %v586_v14 = vor.u32 %v585_v7, %v581_v51  ;;  %v578_v31 = vshrl.u32 %v5011_v9, 16  ;;  %v1091_v32 = vshrl.u32 %v4825_v21, 16  ;;  %v5143_v16 = vld [vmem:[%s4943_s17 + $0xb0] ss:$0 sps:$4 sm:$0x11]  }
  0x2f   : > { %892 = vrot.lane.b32.xlu0 %v4986_v43, %s4903_s18  ;;  %v451_v43 = vsel %vm411_vm0, %v446_v34, %v450_v35  ;;  %4777 = vmatprep.subr.bf16.mxu1 %v6333_v26  ;;  %v4827_v34 = vld [vmem:[%s4943_s17 + $0x3c] sm:$0xff]   ;;  %v1088_v47 = vshrl.u32 %v5039_v42, 16  ;;  %v986_v48 = vshll.u32 %v5112_v38, 16  ;;  %v597_v56 = vshll.u32 %v4831_v46, 16 }
  0x30   : > { %v1087_v60 = vsel %vm411_vm0, %v1082_v55, %v1086_v20  ;;  %4701 = vmatprep.mubr.msk.bf16.mxu0 %vm4907_vm1, %v6333_v26  ;;  %4741 = vmatprep.mubr.msk.bf16.mxu1 %vm4907_vm1, %v6333_v26  ;;  %v979_v53 = vshrl.u32 %v4827_v34, 16  ;;  %v5124_v55 = vld [vmem:[%s4943_s17 + $0xa4] ss:$0 sps:$4 sm:$0x11]   ;;  %v466_v5 = vshrl.u32 %v5048_v52, 16  ;;  %v490_v13 = vshll.u32 %v5129_v59, 16 }
  0x31   : > { %v988_v58 = vrot.slane %v986_v48, 1  ;;  %v602_v61 = vshll.u32 %v5124_v55, 16  ;;  %v599_v0 = vrot.slane %v597_v56, 1  ;;  %v5175_v48 = vld [vmem:[%s4943_s17 + $0xbc] ss:$0 sps:$4 sm:$0x11]  }
  0x32   : > { %1200 = vrot.lane.b32.xlu1 %v1073_v30, %s4905_s20  ;;  %v4828_v30 = vld [vmem:[%s4943_s17 + $0x30] sm:$0xff]   ;;  %v492_v51 = vrot.slane %v490_v13, 1 }
  0x33   : > { %1198 = vrot.lane.b32.xlu0 %v1060_v27, %s4905_s20  ;;  %v590_v27 = vrot.slane %v588_v23, 1  ;;  %v471_v37 = vshll.u32 %v4828_v30, 16  ;;  %v469_v44 = vshrl.u32 %v4828_v30, 16  ;;  %v1112_v23 = vshll.u32 %v5143_v16, 16 }
  0x34   : > { %v976_v30 = vshrl.u32 %v5059_v62, 16 }
  0x35   : > { %v591_v35 = vsel %vm411_vm0, %v586_v14, %v590_v27  ;;  %v5152_v14 = vld [vmem:[%s4943_s17 + $0x50] ss:$0 sps:$4 sm:$0x11]  }
  0x36   : > { %694 = vrot.lane.b32.xlu1 %v577_v39, %s4904_s19 }
  0x37   : > { %658 = vrot.lane.b32.xlu0 %v451_v43, %s4904_s19  ;;  %v981_v43 = vshll.u32 %v4827_v34, 16 }
  0x3a   : > { %656 = vrot.lane.b32.xlu1 %v438_v45, %s4904_s19  ;;  %v473_v45 = vrot.slane %v471_v37, 1  ;;  %v1473_v37 = vlaneseq }
  0x3b   : > { %862 = vrot.lane.b32.xlu0 %v4815_v24, %s4903_s18  ;;  %v5085_v24 = vld [vmem:[%s4943_s17 + $0xa4] ss:$0 sps:$4 sm:$0x11]  }
  0x3c   : > { %v1098_v33 = vshll.u32 %v5085_v24, 16  ;;  %v474_v20 = vor.u32 %v473_v45, %v469_v44 }
  0x3e   : > { %1168 = vrot.lane.b32.xlu1 %v961_v54, %s4905_s20  ;;  %v1100_v41 = vrot.slane %v1098_v33, 1  ;;  %v983_v54 = vrot.slane %v981_v43, 1  ;;  %v1114_v33 = vrot.slane %v1112_v23, 1  ;;  %v5166_v43 = vld [vmem:[%s4943_s17 + $0xb4] sm:$0xff]   ;;  %v5210_v23 = vld [vmem:[%s4943_s17 + $0xc0] sm:$0xff]  }
  0x3f   : > { %898 = vrot.lane.b32.xlu0 %v4817_v29, %s4903_s18  ;;  %v1093_v29 = vshll.u32 %v4825_v21, 16  ;;  %v1121_v56 = vshll.u32 %v5166_v43, 16 }
  0x41   : > { %v1095_v9 = vrot.slane %v1093_v29, 1  ;;  %v4839_v29 = vld [vmem:[%s4943_s17 + $0xa8] sm:$0xff]  }
  0x42   : > { %1204 = vrot.lane.b32.xlu1 %v1087_v60, %s4905_s20  ;;  %v984_v60 = vor.u32 %v983_v54, %v979_v53  ;;  %v609_v53 = vshrl.u32 %v4839_v29, 16 }
  0x43   : > { %860 = vrot.lane.b32.xlu0 %v4982_v40, %s4903_s18  ;;  %v975_v40 = vsel %vm411_vm0, %v970_v10, %v974_v12  ;;  %v1096_v39 = vor.u32 %v1095_v9, %v1091_v32  ;;  %v4842_v32 = vld [vmem:[%s4943_s17 + $0x48] sm:$0xff]   ;;  %v1000_v9 = vshll.u32 %v5152_v14, 16 }
  0x44   : > { %v989_v4 = vsel %vm411_vm0, %v984_v60, %v988_v58  ;;  %v499_v44 = vshll.u32 %v4842_v32, 16  ;;  %v497_v58 = vshrl.u32 %v4842_v32, 16  ;;  %v5222_v32 = vld [vmem:[%s4943_s17 + $0x5c] ss:$0 sps:$4 sm:$0x11]  }
  0x45   : > { %v1101_v49 = vsel %vm411_vm0, %v1096_v39, %v1100_v41  ;;  %v5163_v39 = vld [vmem:[%s4943_s17 + $0xb0] ss:$0 sps:$4 sm:$0x11]   ;;  %v611_v41 = vshll.u32 %v4839_v29, 16  ;;  %v494_v29 = vshrl.u32 %v5129_v59, 16 }
  0x46   : > { %1166 = vrot.lane.b32.xlu1 %v948_v1, %s4905_s20  ;;  %v501_v60 = vrot.slane %v499_v44, 1 }
  0x47   : > { %662 = vrot.lane.b32.xlu0 %v465_v6, %s4904_s19  ;;  %v604_v6 = vrot.slane %v602_v61, 1  ;;  %v613_v54 = vrot.slane %v611_v41, 1  ;;  %v5185_v61 = vld [vmem:[%s4943_s17 + $0x5c] ss:$0 sps:$4 sm:$0x11]  }
  0x48   : > { %v5236_v41 = vld [vmem:[%s4943_s17 + $0x68] ss:$0 sps:$4 sm:$0x11]  }
  0x4a   : > { %866 = vrot.lane.b32.xlu1 %v4821_v57, %s4903_s18  ;;  %v4834_v57 = vld [vmem:[%s4943_s17 + $0x3c] sm:$0xff]  }
  0x4b   : > { %692 = vrot.lane.b32.xlu0 %v564_v8, %s4904_s19  ;;  %v485_v1 = vshll.u32 %v4834_v57, 16  ;;  %v483_v10 = vshrl.u32 %v4834_v57, 16 }
  0x4d   : > { %v487_v12 = vrot.slane %v485_v1, 1  ;;  %v1126_v1 = vshll.u32 %v5175_v48, 16 }
  0x4e   : > { %1172 = vrot.lane.b32.xlu1 %v975_v40, %s4905_s20  ;;  %v1107_v40 = vshll.u32 %v4833_v3, 16 }
  0x4f   : > { %896 = vrot.lane.b32.xlu0 %v5005_v2, %s4903_s18  ;;  %v4849_v2 = vld [vmem:[%s6330_s1] sm:$0xff]   ;;  %v488_v52 = vor.u32 %v487_v12, %v483_v10  ;;  %v1116_v10 = vshrl.u32 %v5143_v16, 16  ;;  %v614_v12 = vor.u32 %v613_v54, %v609_v53 }
  0x50   : > { %4700 = vmatpush3.bf16.msra.mxu0 %v4849_v2  ;;  %4778 = vmatpush3.bf16.msra.mxu1 %v4849_v2  ;;  %v1109_v7 = vrot.slane %v1107_v40, 1  ;;  %v592_v2 = vshrl.u32 %v5072_v15, 16  ;;  %v1123_v40 = vrot.slane %v1121_v56, 1 }
  0x51   : > { %v493_v27 = vsel %vm411_vm0, %v488_v52, %v492_v51  ;;  %v502_v52 = vor.u32 %v501_v60, %v497_v58  ;;  %v518_v58 = vshll.u32 %v5222_v32, 16 }
  0x52   : > { %660 = vrot.lane.b32.xlu1 %v452_v17, %s4904_s19  ;;  %v4837_v17 = vld [vmem:[%s4943_s17 + $0x48] sm:$0xff]  }
  0x53   : > { %1202 = vrot.lane.b32.xlu0 %v1074_v18, %s4905_s20 }
  0x56   : > { %1170 = vrot.lane.b32.xlu1 %v962_v25, %s4905_s20  ;;  %v995_v25 = vshll.u32 %v4837_v17, 16 }
  0x57   : > { %864 = vrot.lane.b32.xlu0 %v5028_v28, %s4903_s18  ;;  %v476_v28 = vshll.u32 %v5106_v36, 16 }
  0x59   : > { %v478_v50 = vrot.slane %v476_v28, 1  ;;  %v5170_v28 = vld [vmem:[%s4943_s17 + $0x50] ss:$0 sps:$4 sm:$0x11]  }
  0x5a   : > { %698 = vrot.lane.b32.xlu1 %v591_v35, %s4904_s19  ;;  %v997_v35 = vrot.slane %v995_v25, 1  ;;  %v1128_v25 = vrot.slane %v1126_v1, 1 }
  0x5b   : > { %696 = vrot.lane.b32.xlu0 %v578_v31, %s4904_s19  ;;  %v479_v63 = vsel %vm411_vm0, %v474_v20, %v478_v50  ;;  %v1474_v50 = vshrl.u32 %v1473_v37, 7  ;;  %v616_v20 = vshll.u32 %v5163_v39, 16 }
  0x5d   : > { %v618_v13 = vrot.slane %v616_v20, 1  ;;  %v5251_v20 = vld [vmem:[%s4943_s17 + $0xc8] ss:$0 sps:$4 sm:$0x11]  }
  0x5e   : > { %902 = vrot.lane.b32.xlu1 %v4825_v21, %s4903_s18  ;;  %v1105_v21 = vshrl.u32 %v4833_v3, 16  ;;  %6342 = vst [vmem:[#allocation2_spill] sm:$0xff] %v5251_v20 }
  0x5f   : > { %900 = vrot.lane.b32.xlu0 %v5039_v42, %s4903_s18  ;;  %v595_v42 = vshrl.u32 %v4831_v46, 16 }
  0x60   : > { %v1110_v31 = vor.u32 %v1109_v7, %v1105_v21  ;;  %v1014_v7 = vshll.u32 %v5185_v61, 16 }
  0x61   : > { %v600_v8 = vor.u32 %v599_v0, %v595_v42  ;;  %v504_v42 = vshll.u32 %v5170_v28, 16  ;;  %v480_v0 = vshrl.u32 %v5106_v36, 16  ;;  %v1119_v36 = vshrl.u32 %v5166_v43, 16 }
  0x62   : > { %1208 = vrot.lane.b32.xlu1 %v1101_v49, %s4905_s20  ;;  %v1115_v45 = vsel %vm411_vm0, %v1110_v31, %v1114_v33  ;;  %v5178_v49 = vld [vmem:[%s4943_s17 + $0x54] sm:$0xff]   ;;  %v5225_v33 = vld [vmem:[%s4943_s17 + $0xbc] ss:$0 sps:$4 sm:$0x11]   ;;  %v1016_v44 = vrot.slane %v1014_v7, 1 }
  0x63   : > { %1206 = vrot.lane.b32.xlu0 %v1088_v47, %s4905_s20  ;;  %v605_v18 = vsel %vm411_vm0, %v600_v8, %v604_v6  ;;  %v1002_v47 = vrot.slane %v1000_v9, 1  ;;  %v990_v6 = vshrl.u32 %v5112_v38, 16  ;;  %v606_v8 = vshrl.u32 %v5124_v55, 16 }
  0x64   : > { %v506_v51 = vrot.slane %v504_v42, 1  ;;  %v1007_v21 = vshrl.u32 %v5178_v49, 16 }
  0x66   : > { %870 = vrot.lane.b32.xlu1 %v4827_v34, %s4903_s18  ;;  %v993_v34 = vshrl.u32 %v4837_v17, 16 }
  0x67   : > { %666 = vrot.lane.b32.xlu0 %v479_v63, %s4904_s19 }
  0x68   : > { %v998_v46 = vor.u32 %v997_v35, %v993_v34  ;;  %v5230_v35 = vsel %vm411_vm0, %v614_v12, %v618_v13  ;;  %v1133_v12 = vshrl.u32 %v5210_v23, 16 }
  0x6a   : > { %1176 = vrot.lane.b32.xlu1 %v989_v4, %s4905_s20  ;;  %v1003_v63 = vsel %vm411_vm0, %v998_v46, %v1002_v47  ;;  %v5193_v4 = vld [vmem:[%s4943_s17 + $0x54] sm:$0xff]   ;;  %v1135_v46 = vshll.u32 %v5210_v23, 16  ;;  %v5244_v47 = vld [vmem:[%s4943_s17 + $0xc8] ss:$0 sps:$4 sm:$0x11]  }
  0x6b   : > { %664 = vrot.lane.b32.xlu0 %v466_v5, %s4904_s19  ;;  %v1102_v5 = vshrl.u32 %v5085_v24, 16 }
  0x6c   : > { %v1137_v13 = vrot.slane %v1135_v46, 1 }
  0x6e   : > { %868 = vrot.lane.b32.xlu1 %v5059_v62, %s4903_s18  ;;  %v4908_v62 = vmov 1966171168   ;;  %v1138_v60 = vor.u32 %v1137_v13, %v1133_v12 }
  0x6f   : > { %702 = vrot.lane.b32.xlu0 %v605_v18, %s4904_s19  ;;  %v1471_v15 = vunpack.c.l.s4 %v4908_v62  ;;  %v5204_v18 = vld [vmem:[%s4943_s17 + $0xb4] sm:$0xff]  }
  0x70   : > { %v625_v37 = vshll.u32 %v5204_v18, 16  ;;  %v623_v42 = vshrl.u32 %v5204_v18, 16 }
  0x71   : > { %v1472_v57 = vunpack.c.0.s8 %v1471_v15  ;;  %v1124_v15 = vor.u32 %v1123_v40, %v1119_v36  ;;  %v1140_v36 = vshll.u32 %v5244_v47, 16 }
  0x72   : > { %906 = vrot.lane.b32.xlu1 %v4833_v3, %s4903_s18  ;;  %v1009_v3 = vshll.u32 %v5178_v49, 16 }
  0x73   : > { %670 = vrot.lane.b32.xlu0 %v493_v27, %s4904_s19  ;;  %v5219_v31 = vsub.s32 %v1472_v57, %v1474_v50  ;;  %v5248_v50 = vsel %vm411_vm0, %v502_v52, %v506_v51  ;;  %v5255_v57 = vld [vmem:[%s4943_s17 + $0x60] sm:$0xff]   ;;  %v5274_v52 = vsel %vm411_vm0, %v1124_v15, %v1128_v25 }
  0x74   : > { %v1011_v27 = vrot.slane %v1009_v3, 1  ;;  %v527_v7 = vshll.u32 %v5255_v57, 16 }
  0x76   : > { %700 = vrot.lane.b32.xlu1 %v592_v2, %s4904_s19  ;;  %v513_v2 = vshll.u32 %v5193_v4, 16  ;;  %v1012_v53 = vor.u32 %v1011_v27, %v1007_v21  ;;  %v5278_v21 = vld [vmem:[%s4943_s17 + $0x68] ss:$0 sps:$4 sm:$0x11]  }
  0x77   : > { %1174 = vrot.lane.b32.xlu0 %v976_v30, %s4905_s20  ;;  %v5217_v30 = vld [vmem:[%s4943_s17 + $0xc0] sm:$0xff]   ;;  %6343 = vst [vmem:[#allocation3_spill] sm:$0xff] %v5278_v21 }
  0x78   : > { %v515_v54 = vrot.slane %v513_v2, 1  ;;  %v639_v56 = vshll.u32 %v5217_v30, 16  ;;  %v637_v40 = vshrl.u32 %v5217_v30, 16  ;;  %v5282_v27 = vsel %vm411_vm0, %v1012_v53, %v1016_v44  ;;  %v5293_v53 = vld [vmem:[%s4943_s17 + $0xcc] sm:$0xff]  }
  0x79   : > { %v520_v30 = vrot.slane %v518_v58, 1  ;;  %v1142_v44 = vrot.slane %v1140_v36, 1 }
  0x7a   : > { %1212 = vrot.lane.b32.xlu1 %v1115_v45, %s4905_s20  ;;  %v641_v51 = vrot.slane %v639_v56, 1 }
  0x7b   : > { %874 = vrot.lane.b32.xlu0 %v4837_v17, %s4903_s18  ;;  %v5201_v17 = vld [vmem:[%s4943_s17 + $0x60] sm:$0xff]  }
  0x7c   : > { %v1023_v9 = vshll.u32 %v5201_v17, 16  ;;  %v1021_v1 = vshrl.u32 %v5201_v17, 16 }
  0x7e   : > { %1180 = vrot.lane.b32.xlu1 %v1003_v63, %s4905_s20  ;;  %v630_v63 = vshll.u32 %v5225_v33, 16  ;;  %v1025_v3 = vrot.slane %v1023_v9, 1  ;;  %v5286_v9 = vld [vmem:[%s4943_s17 + $0x6c] sm:$0xff]  }
  0x7f   : > { %904 = vrot.lane.b32.xlu0 %v5085_v24, %s4903_s18  ;;  %v511_v24 = vshrl.u32 %v5193_v4, 16  ;;  %v1028_v4 = vshll.u32 %v5236_v41, 16 }
  0x80   : > { %v632_v25 = vrot.slane %v630_v63, 1  ;;  %v1026_v15 = vor.u32 %v1025_v3, %v1021_v1  ;;  %v532_v63 = vshll.u32 %v5278_v21, 16  ;;  %v4865_v21 = vld [vmem:[%s4943_s17 + $0x78] sm:$0xff]  }
  0x81   : > { %v516_v2 = vor.u32 %v515_v54, %v511_v24  ;;  %v1030_v46 = vrot.slane %v1028_v4, 1  ;;  %v525_v24 = vshrl.u32 %v5255_v57, 16  ;;  %v642_v54 = vor.u32 %v641_v51, %v637_v40  ;;  %v5306_v4 = vld [vmem:[%s4943_s17 + $0xd4] ss:$0 sps:$4 sm:$0x11]  }
  0x82   : > { %668 = vrot.lane.b32.xlu1 %v480_v0, %s4904_s19  ;;  %v627_v0 = vrot.slane %v625_v37, 1  ;;  %v1037_v57 = vshll.u32 %v5286_v9, 16  ;;  %v5322_v51 = vsel %vm411_vm0, %v1138_v60, %v1142_v44 }
  0x83   : > { %1210 = vrot.lane.b32.xlu0 %v1102_v5, %s4905_s20 }
  0x84   : > { %v5227_v34 = vpop.permute.xlu1 %858  ;;  %v5239_v62 = vpop.permute.xlu0 %854  ;;  %v628_v37 = vor.u32 %v627_v0, %v623_v42  ;;  %v529_v42 = vrot.slane %v527_v7, 1  ;;  %v5300_v0 = vsel %vm411_vm0, %v516_v2, %v520_v30  ;;  %v1149_v7 = vshll.u32 %v5293_v53, 16 }
  0x86   : > { %1178 = vrot.lane.b32.xlu1 %v990_v6, %s4905_s20  ;;  %v644_v6 = vshll.u32 %v5251_v20, 16  ;;  %v5309_v55 = vsel %vm411_vm0, %v628_v37, %v632_v25  ;;  %v534_v37 = vrot.slane %v532_v63, 1  ;;  %v1154_v25 = vshll.u32 %v5306_v4, 16 }
  0x87   : > { %872 = vrot.lane.b32.xlu0 %v5112_v38, %s4903_s18 }
  0x88   : > { %v5264_v5 = vpop.permute.xlu1 %652  ;;  %v5271_v18 = vpop.permute.xlu0 %890  ;;  %v646_v58 = vrot.slane %v644_v6, 1 }
  0x8a   : > { %908 = vrot.lane.b32.xlu1 %v5143_v16, %s4903_s18  ;;  %v5331_v30 = vsel %vm411_vm0, %v642_v54, %v646_v58  ;;  %v5334_v16 = vld [vmem:[%s4943_s17 + $0x74] ss:$0 sps:$4 sm:$0x11]  }
  0x8b   : > { %704 = vrot.lane.b32.xlu0 %v606_v8, %s4904_s19  ;;  %v5312_v8 = vsel %vm411_vm0, %v1026_v15, %v1030_v46  ;;  %6344 = vst [vmem:[#allocation4_spill] sm:$0xff] %v5334_v16  ;;  %v1035_v15 = vshrl.u32 %v5286_v9, 16  ;;  %v1039_v46 = vrot.slane %v1037_v57, 1 }
  0x8c   : > { %v1161_v56 = vpop.permute.xlu1 %1160 }
  0x8d   : > { %v651_v12 = vpop.permute.xlu0 %650 }
  0x8e   : > { %v1230_v40 = vsel %vm1228_vm3, %v4955_v11, %v651_v12  ;;  %1214 = vrot.lane.b32.xlu1 %v1116_v10, %s4905_s20  ;;  %v530_v11 = vor.u32 %v529_v42, %v525_v24  ;;  %v1147_v24 = vshrl.u32 %v5293_v53, 16 }
  0x8f   : > { %v1299_v2 = vsel %vm1297_vm2, %v1230_v40, %v5239_v62  ;;  %706 = vrot.lane.b32.xlu0 %v5230_v35, %s4904_s19  ;;  %v1042_v40 = vshll.u32 %v5334_v16, 16  ;;  %v4866_v16 = vld [vmem:[%s4943_s17 + $0x74] ss:$0 sps:$4 sm:$0x11]  }
  0x90   : > { %v1368_v10 = vsel %vm1366_vm4, %v1299_v2, %v1161_v56  ;;  %v655_v60 = vpop.permute.xlu1 %654  ;;  %v1151_v56 = vrot.slane %v1149_v7, 1  ;;  %v5358_v7 = vrot.slane %v1154_v25, 1  ;;  %v5360_v2 = vor.u32 %v1039_v46, %v1035_v15 }
  0x91   : > { %v1469_v44 = vcombine.high %v1368_v10, %v1368_v10  ;;  %v1476_v62 = vrot.slane %v1368_v10, %v5219_v31  ;;  %v1234_v35 = vsel %vm1228_vm3, %v4963_v19, %v655_v60  ;;  %v687_v54 = vpop.permute.xlu0 %686  ;;  %v5353_v19 = vsel %vm411_vm0, %v530_v11, %v534_v37 }
  0x92   : > { %v1266_v58 = vsel %vm1228_vm3, %v4969_v22, %v687_v54  ;;  %910 = vrot.lane.b32.xlu1 %v5166_v43, %s4903_s18  ;;  %v1303_v22 = vsel %vm1297_vm2, %v1234_v35, %v5227_v34  ;;  %v5373_v15 = vor.u32 %v1151_v56, %v1147_v24 }
  0x93   : > { %v1483_v57 = vrot.slane %v1469_v44, %v5219_v31  ;;  %v1484_v12 = vcombine.high %v1476_v62, %v1476_v62  ;;  %674 = vrot.lane.b32.xlu0 %v5248_v50, %s4904_s19  ;;  %v1335_v11 = vsel %vm1297_vm2, %v1266_v58, %v5271_v18  ;;  %v1492_v46 = vrot.slane %v1476_v62, %v5219_v31  ;;  %v4864_v62 = vld [vmem:[%s4943_s17 + $0x8] ss:$0 sps:$4 sm:$0x11]  }
  0x94   : > { %v1165_v43 = vpop.permute.xlu1 %1164  ;;  %v5381_v18 = vrot.slane %v1042_v40, 1  ;;  %v1232_v56 = vsel %vm1228_vm3, %v4864_v62, %v5264_v5 }
  0x95   : > { %v1485_v60 = vcombine.high %v1483_v57, %v1483_v57  ;;  %v5364_v44 = vrot.slane %v1484_v12, %v5219_v31  ;;  %v1372_v50 = vsel %vm1366_vm4, %v1303_v22, %v1165_v43  ;;  %v1197_v37 = vpop.permute.xlu0 %1196 }
  0x96   : > { %v1532_v54 = vcombine.high %v1372_v50, %v1372_v50  ;;  %v1539_v34 = vrot.slane %v1372_v50, %v5219_v31  ;;  %v1404_v25 = vsel %vm1366_vm4, %v1335_v11, %v1197_v37  ;;  %1216 = vrot.lane.b32.xlu1 %v5274_v52, %s4905_s20 }
  0x97   : > { %v5377_v35 = vrot.slane %v1485_v60, %v5219_v31  ;;  %v2036_v12 = vcombine.high %v1404_v25, %v1404_v25  ;;  %878 = vrot.lane.b32.xlu0 %v5178_v49, %s4903_s18  ;;  %v2043_v52 = vrot.slane %v1404_v25, %v5219_v31  ;;  %v5394_v60 = vrot.slane %v1483_v57, %v5219_v31 }
  0x98   : > { %v1546_v58 = vrot.slane %v1532_v54, %v5219_v31  ;;  %v1547_v22 = vcombine.high %v1539_v34, %v1539_v34  ;;  %v5385_v43 = vrot.slane %v1539_v34, %v5219_v31  ;;  %v5388_v24 = vpop.permute.xlu1 %1162  ;;  %v2983_v49 = vcombine.low %v1492_v46, %v5364_v44 }
  0x99   : > { %v4573_v40 = vcombine.high %v1492_v46, %v5364_v44  ;;  %v857_v50 = vpop.permute.xlu0 %856  ;;  %v2050_v25 = vrot.slane %v2036_v12, %v5219_v31  ;;  %v2051_v44 = vcombine.high %v2043_v52, %v2043_v52  ;;  %v5413_v6 = vrot.slane %v2043_v52, %v5219_v31 }
  0x9a   : > { %v1548_v11 = vcombine.high %v1546_v58, %v1546_v58  ;;  %v1562_v37 = vrot.slane %v1546_v58, %v5219_v31  ;;  %v1569_v54 = vrot.slane %v1547_v22, %v5219_v31  ;;  %v1577_v34 = vcombine.high %v5385_v43, %v5385_v43  ;;  %1184 = vrot.lane.b32.xlu1 %v5282_v27, %s4905_s20 }
  0x9b   : > { %v2558_v57 = vunpack.i.h.s16 %v5385_v43  ;;  %672 = vrot.lane.b32.xlu0 %v494_v29, %s4904_s19  ;;  %v2052_v42 = vcombine.high %v2050_v25, %v2050_v25  ;;  %6345 = vst [vmem:[#allocation5_spill] sm:$0xff] %v5413_v6  ;;  %v4574_v59 = vcombine.high %v5394_v60, %v5377_v35  ;;  %v2066_v26 = vrot.slane %v2050_v25, %v5219_v31 }
  0x9c   : > { %v1576_v46 = vrot.slane %v1548_v11, %v5219_v31  ;;  %v1578_v58 = vcombine.high %v1562_v37, %v1562_v37  ;;  %v1579_v22 = vcombine.high %v1569_v54, %v1569_v54  ;;  %v2560_v62 = vunpack.i.h.s16 %v1569_v54  ;;  %v691_v10 = vpop.permute.xlu1 %690 }
  0x9d   : > { %v2562_v63 = vunpack.i.h.s16 %v1577_v34  ;;  %v2566_v27 = vunpack.i.h.s16 %v1562_v37  ;;  %v689_v36 = vpop.permute.xlu0 %688  ;;  %v2081_v25 = vcombine.high %v5413_v6, %v5413_v6  ;;  %v2702_v6 = vunpack.i.h.s16 %v2066_v26 }
  0x9e   : > { %v5415_v13 = vcombine.high %v1576_v46, %v1576_v46  ;;  %v2564_v12 = vunpack.i.h.s16 %v1579_v22  ;;  %v2568_v3 = vunpack.i.h.s16 %v1576_v46  ;;  %v2570_v1 = vunpack.i.h.s16 %v1578_v58  ;;  %678 = vrot.lane.b32.xlu1 %v5300_v0, %s4904_s19 }
  0x9f   : > { %v5421_v29 = vpack.i.b16 %v1577_v34, %v2560_v62  ;;  %v5423_v11 = vpack.i.b16 %v1579_v22, %v2562_v63  ;;  %876 = vrot.lane.b32.xlu0 %v5152_v14, %s4903_s18  ;;  %v5436_v0 = vrot.slane %v2051_v44, %v5219_v31  ;;  %v2993_v34 = vrot.slane %v2983_v49, %v5219_v31 }
  0xa0   : > { %v5428_v52 = vpack.i.b16 %v1562_v37, %v2564_v12  ;;  %v5430_v38 = vpack.i.b16 %v1578_v58, %v2568_v3  ;;  %v5433_v5 = vpack.i.b16 %v5415_v13, %v2570_v1  ;;  %v895_v45 = vpop.permute.xlu1 %894  ;;  %v2080_v63 = vrot.slane %v2052_v42, %v5219_v31 }
  0xa1   : > { %6346 = vst [vmem:[#allocation6_spill] sm:$0xff] %v5436_v0  ;;  %v2082_v22 = vcombine.high %v2066_v26, %v2066_v26  ;;  %v893_v62 = vpop.permute.xlu0 %892  ;;  %v3000_v37 = vrot.slane %v4573_v40, %v5219_v31  ;;  %v4502_v3 = vpack.i.b16 %v1569_v54, %v2558_v57  ;;  %v5443_v58 = vpack.i.b16 %v1576_v46, %v2566_v27 }
  0xa2   : > { %v2083_v1 = vcombine.high %v5436_v0, %v5436_v0  ;;  %v6347_v44 = vshrl.u32 %v5163_v39, 16  ;;  %v2696_v49 = vunpack.i.h.s16 %v5436_v0  ;;  %v2698_v12 = vunpack.i.h.s16 %v2081_v25 }
  0xa3   : > { %v6348_v40 = vshrl.u32 %v5152_v14, 16  ;;  %v2704_v57 = vunpack.i.h.s16 %v2080_v63  ;;  %v1301_v46 = vsel %vm1297_vm2, %v1232_v56, %v857_v50  ;;  %v2706_v42 = vunpack.i.h.s16 %v2082_v22 }
  0xa4   : > { %708 = vrot.lane.b32.xlu1 %v6347_v44, %s4904_s19  ;;  %v1201_v27 = vpop.permute.xlu1 %1200  ;;  %v2700_v44 = vunpack.i.h.s16 %v2083_v1  ;;  %v5461_v0 = vpack.i.b16 %v2081_v25, %v2696_v49  ;;  %v5463_v20 = vpack.i.b16 %v2083_v1, %v2698_v12  ;;  %v1370_v54 = vsel %vm1366_vm4, %v1301_v46, %v5388_v24 }
  0xa5   : > { %1182 = vrot.lane.b32.xlu0 %v6348_v40, %s4905_s20  ;;  %v1199_v14 = vpop.permute.xlu0 %1198  ;;  %v5465_v40 = vpack.i.b16 %v2080_v63, %v2702_v6  ;;  %v1270_v39 = vsel %vm1228_vm3, %v4865_v21, %v691_v10  ;;  %v1268_v56 = vsel %vm1228_vm3, %v4866_v16, %v689_v36  ;;  %v1524_v25 = vrot.slane %v1370_v54, %v5219_v31 }
  0xa6   : > { %v3427_v50 = vcombine.low %v5461_v0, %v5463_v20  ;;  %v1339_v6 = vsel %vm1297_vm2, %v1270_v39, %v895_v45  ;;  %v6349_v24 = vcombine.low %v5394_v60, %v5377_v35  ;;  %v1337_v21 = vsel %vm1297_vm2, %v1268_v56, %v893_v62  ;;  %v6208_v20 = vld [vmem:[%s6331_s2] ss:$0 sm:$0xff] }
  0xa7   : > { %v3014_v36 = vrot.slane %v4574_v59, %v5219_v31  ;;  %v1408_v16 = vsel %vm1366_vm4, %v1339_v6, %v1201_v27  ;;  %v1531_v49 = vrot.slane %v1524_v25, %v5219_v31  ;;  %v2084_v54 = vcombine.high %v2080_v63, %v2080_v63 }
  0xa8   : > { %882 = vrot.lane.b32.xlu1 %v5201_v17, %s4903_s18  ;;  %v3007_v1 = vrot.slane %v6349_v24, %v5219_v31  ;;  %v3015_v17 = vcombine.low %v2993_v34, %v3000_v37  ;;  %v695_v10 = vpop.permute.xlu1 %694  ;;  %v2099_v12 = vcombine.high %v1408_v16, %v1408_v16  ;;  %v2106_v45 = vrot.slane %v1408_v16, %v5219_v31 }
  0xa9   : > { %710 = vrot.lane.b32.xlu0 %v5309_v55, %s4904_s19  ;;  %v659_v39 = vpop.permute.xlu0 %658  ;;  %v5490_v35 = vpack.i.b16 %v2066_v26, %v2700_v44  ;;  %v5492_v60 = vpack.i.b16 %v2082_v22, %v2704_v57  ;;  %v1406_v62 = vsel %vm1366_vm4, %v1337_v21, %v1199_v14  ;;  %v4501_v59 = vpack.i.b16 %v5385_v43, %v1531_v49 }
  0xaa   : > { %v3016_v55 = vcombine.low %v3007_v1, %v3014_v36  ;;  %v2113_v34 = vrot.slane %v2099_v12, %v5219_v31  ;;  %v2114_v37 = vcombine.high %v2106_v45, %v2106_v45  ;;  %v2122_v46 = vrot.slane %v2106_v45, %v5219_v31  ;;  %v4867_v45 = vld [vmem:[%s4943_s17 + $0x84] sm:$0xff]  }
  0xab   : > { %v3023_v26 = vrot.slane %v3015_v17, %v5219_v31  ;;  %v4544_v22 = vpack.i.b16 %v2084_v54, %v2706_v42  ;;  %v2091_v57 = vrot.slane %v1406_v62, %v5219_v31  ;;  %v2708_v14 = vunpack.i.h.s16 %v2084_v54 }
  0xac   : > { %914 = vrot.lane.b32.xlu1 %v5210_v23, %s4903_s18  ;;  %v3030_v63 = vrot.slane %v3016_v55, %v5219_v31  ;;  %v5505_v27 = vpop.permute.xlu1 %656  ;;  %v3032_v23 = vcombine.low %v4501_v59, %v4502_v3  ;;  %v2115_v44 = vcombine.high %v2113_v34, %v2113_v34  ;;  %v2136_v43 = vrot.slane %v2114_v37, %v5219_v31 }
  0xad   : > { %912 = vrot.lane.b32.xlu0 %v5175_v48, %s4903_s18  ;;  %v863_v56 = vpop.permute.xlu0 %862  ;;  %v2129_v6 = vrot.slane %v2113_v34, %v5219_v31  ;;  %v2144_v24 = vcombine.high %v2122_v46, %v2122_v46  ;;  %v2098_v1 = vrot.slane %v2091_v57, %v5219_v31  ;;  %v6350_v42 = vshrl.u32 %v5175_v48, 16 }
  0xae   : > { %v3031_v25 = vcombine.low %v3023_v26, %v3030_v63  ;;  %v3473_v3 = vcombine.low %v5490_v35, %v5465_v40  ;;  %v3042_v21 = vrot.slane %v3032_v23, %v5219_v31  ;;  %v2146_v36 = vcombine.high %v2136_v43, %v2136_v43  ;;  %v4868_v35 = vld [vmem:[%s4943_s17 + $0x18] sm:$0xff]  }
  0xaf   : > { %v1158_v17 = vshrl.u32 %v5306_v4, 16  ;;  %v3476_v16 = vcombine.low %v2136_v43, %v2144_v24  ;;  %v3474_v49 = vcombine.low %v5492_v60, %v4544_v22  ;;  %v4545_v12 = vpack.i.b16 %v2098_v1, %v2708_v14 }
  0xb0   : > { %1218 = vrot.lane.b32.xlu1 %v6350_v42, %s4905_s20  ;;  %4702 = vmatmul.mubr.msk.bf16.vlgmr.msra.gmra.mxu0 %vm3885_vm5, %v3031_v25  ;;  %v1274_v48 = vsel %vm1228_vm3, %v4867_v45, %v695_v10  ;;  %v1169_v54 = vpop.permute.xlu1 %1168  ;;  %v5524_v40 = vrot.slane %v2115_v44, %v5219_v31  ;;  %v1238_v55 = vsel %vm1228_vm3, %v4868_v35, %v659_v39  ;;  %v6351_v62 = vmov 0.0  }
  0xb1   : > { %1188 = vrot.lane.b32.xlu0 %v5312_v8, %s4905_s20  ;;  %4705 = vmatprep.mubr.msk.bf16.mxu0 %vm4907_vm1, %v6351_v62  ;;  %v6352_v8 = vcombine.low %v5421_v29, %v5423_v11  ;;  %v6353_v60 = vcombine.low %v5428_v52, %v5443_v58  ;;  %v899_v34 = vpop.permute.xlu0 %898  ;;  %v2145_v37 = vcombine.high %v2129_v6, %v2129_v6  ;;  %v6355_v57 = vshrl.u32 %v5170_v28, 16 }
  0xb2   : > { %v3475_v26 = vcombine.low %v4545_v12, %v2122_v46  ;;  %v6354_v39 = vcombine.low %v5430_v38, %v5433_v5  ;;  %v1307_v22 = vsel %vm1297_vm2, %v1238_v55, %v863_v56  ;;  %v3504_v29 = vrot.slane %v3476_v16, %v5219_v31 }
  0xb3   : > { %v3049_v59 = vrot.slane %v6352_v8, %v5219_v31  ;;  %v3056_v10 = vrot.slane %v6353_v60, %v5219_v31  ;;  %v5547_v11 = vcombine.low %v2146_v36, %v2129_v6  ;;  %v1376_v58 = vsel %vm1366_vm4, %v1307_v22, %v1169_v54 }
  0xb4   : > { %v3063_v63 = vrot.slane %v6354_v39, %v5219_v31  ;;  %676 = vrot.lane.b32.xlu1 %v6355_v57, %s4904_s19  ;;  %v3497_v46 = vrot.slane %v3475_v26, %v5219_v31  ;;  %v1595_v5 = vcombine.high %v1376_v58, %v1376_v58  ;;  %v1602_v23 = vrot.slane %v1376_v58, %v5219_v31  ;;  %v1205_v44 = vpop.permute.xlu1 %1204 }
  0xb5   : > { %v3064_v52 = vcombine.low %v3042_v21, %v3049_v59  ;;  %1220 = vrot.lane.b32.xlu0 %v5322_v51, %s4905_s20  ;;  %v1343_v43 = vsel %vm1297_vm2, %v1274_v48, %v899_v34  ;;  %v861_v14 = vpop.permute.xlu0 %860  ;;  %v3483_v56 = vrot.slane %v3473_v3, %v5219_v31  ;;  %v3490_v25 = vrot.slane %v3474_v49, %v5219_v31 }
  0xb6   : > { %v3065_v38 = vcombine.low %v3056_v10, %v3063_v63  ;;  %v1609_v51 = vrot.slane %v1595_v5, %v5219_v31  ;;  %v1610_v24 = vcombine.high %v1602_v23, %v1602_v23  ;;  %v5561_v1 = vrot.slane %v1602_v23, %v5219_v31 }
  0xb7   : > { %v3072_v28 = vrot.slane %v3064_v52, %v5219_v31  ;;  %v6356_v42 = vshrl.u32 %v5185_v61, 16  ;;  %v5567_v21 = vcombine.low %v5524_v40, %v2145_v37  ;;  %v1412_v36 = vsel %vm1366_vm4, %v1343_v43, %v1205_v44 }
  0xb8   : > { %v3079_v6 = vrot.slane %v3065_v38, %v5219_v31  ;;  %v3505_v3 = vcombine.low %v3483_v56, %v3490_v25  ;;  %v3506_v16 = vcombine.low %v3497_v46, %v3504_v29  ;;  %v1611_v12 = vcombine.high %v1609_v51, %v1609_v51  ;;  %v1167_v54 = vpop.permute.xlu1 %1166 }
  0xb9   : > { %1186 = vrot.lane.b32.xlu1 %v6356_v42, %s4905_s20  ;;  %880 = vrot.lane.b32.xlu0 %v5185_v61, %s4903_s18  ;;  %v1625_v45 = vrot.slane %v1609_v51, %v5219_v31  ;;  %v1632_v48 = vrot.slane %v1610_v24, %v5219_v31  ;;  %v1640_v35 = vcombine.high %v5561_v1, %v5561_v1  ;;  %v663_v60 = vpop.permute.xlu0 %662  ;;  %v6357_v58 = vshrl.u32 %v5225_v33, 16 }
  0xba   : > { %v3080_v49 = vcombine.low %v3072_v28, %v3079_v6  ;;  %v2162_v55 = vcombine.high %v1412_v36, %v1412_v36  ;;  %v2169_v8 = vrot.slane %v1412_v36, %v5219_v31  ;;  %v3513_v59 = vrot.slane %v3505_v3, %v5219_v31 }
  0xbb   : > { %v5580_v61 = vrot.slane %v1611_v12, %v5219_v31  ;;  %v1641_v10 = vcombine.high %v1625_v45, %v1625_v45  ;;  %v1642_v34 = vcombine.high %v1632_v48, %v1632_v48  ;;  %v3520_v37 = vrot.slane %v3506_v16, %v5219_v31 }
  0xbc   : > { %4706 = vmatmul.mubr.msk.bf16.gmra.mxu0 %vm3885_vm5, %v3080_v49  ;;  %v2176_v26 = vrot.slane %v2162_v55, %v5219_v31  ;;  %v2177_v39 = vcombine.high %v2169_v8, %v2169_v8  ;;  %v5585_v63 = vrot.slane %v2169_v8, %v5219_v31  ;;  %v5592_v22 = vsel %vm411_vm0, %v5373_v15, %v5358_v7  ;;  %v867_v46 = vpop.permute.xlu1 %866 }
  0xbd   : > { %916 = vrot.lane.b32.xlu1 %v5244_v47, %s4903_s18  ;;  %v5594_v57 = vcombine.low %v1632_v48, %v1640_v35  ;;  %v5596_v29 = vcombine.low %v1642_v34, %v1625_v45  ;;  %v3521_v52 = vcombine.low %v3513_v59, %v3520_v37  ;;  %712 = vrot.lane.b32.xlu0 %v6357_v58, %s4904_s19  ;;  %v693_v44 = vpop.permute.xlu0 %692  ;;  %v6358_v24 = vshrl.u32 %v5222_v32, 16  ;;  %v4870_v59 = vld [vmem:[%s4943_s17 + $0x24] sm:$0xff]  }
  0xbe   : > { %v5604_v38 = vsel %vm411_vm0, %v5360_v2, %v5381_v18  ;;  %v5607_v5 = vcombine.low %v5580_v61, %v1641_v10  ;;  %v2178_v7 = vcombine.high %v2176_v26, %v2176_v26  ;;  %v2192_v15 = vrot.slane %v2176_v26, %v5219_v31  ;;  %4709 = vmatprep.mubr.msk.bf16.mxu0 %vm4907_vm1, %v6351_v62  ;;  %v4869_v2 = vld [vmem:[%s4943_s17 + $0x14] ss:$0 sps:$4 sm:$0x11]  }
  0xbf   : > { %v2199_v23 = vrot.slane %v2177_v39, %v5219_v31  ;;  %v3532_v33 = vrot.slane %v5547_v11, %v5219_v31  ;;  %v3539_v28 = vrot.slane %v5567_v21, %v5219_v31  ;;  %v1236_v18 = vsel %vm1228_vm3, %v4869_v2, %v5505_v27  ;;  %4742 = vmatmul.mubr.msk.bf16.vlgmr.msra.gmra.mxu1 %vm3885_vm5, %v3521_v52 }
  0xc0   : > { %v2207_v43 = vcombine.high %v5585_v63, %v5585_v63  ;;  %v5624_v56 = vrot.slane %v2178_v7, %v5219_v31  ;;  %v2728_v6 = vunpack.i.h.s16 %v5585_v63  ;;  %v1305_v51 = vsel %vm1297_vm2, %v1236_v18, %v861_v14  ;;  %4745 = vmatprep.mubr.msk.bf16.mxu1 %vm4907_vm1, %v6351_v62  ;;  %v1173_v14 = vpop.permute.xlu1 %1172 }
  0xc1   : > { %v2209_v25 = vcombine.high %v2199_v23, %v2199_v23  ;;  %680 = vrot.lane.b32.xlu1 %v6358_v24, %s4904_s19  ;;  %v1643_v27 = vcombine.high %v5580_v61, %v5580_v61  ;;  %v3098_v42 = vrot.slane %v5594_v57, %v5219_v31  ;;  %v2730_v36 = vunpack.i.h.s16 %v2199_v23  ;;  %v897_v48 = vpop.permute.xlu0 %896  ;;  %v4872_v24 = vld [vmem:[%s4943_s17 + $0x20] ss:$0 sps:$4 sm:$0x11]  }
  0xc2   : > { %v2732_v3 = vunpack.i.h.s16 %v2207_v43  ;;  %v6359_v16 = vshrl.u32 %v5244_v47, 16  ;;  %v3105_v32 = vrot.slane %v5596_v29, %v5219_v31  ;;  %v3112_v49 = vrot.slane %v5607_v5, %v5219_v31 }
  0xc3   : > { %v2736_v12 = vunpack.i.h.s16 %v2192_v15  ;;  %v1374_v45 = vsel %vm1366_vm4, %v1305_v51, %v1167_v54  ;;  %v2734_v35 = vunpack.i.h.s16 %v2209_v25  ;;  %v2738_v55 = vunpack.i.h.s16 %v5624_v56 }
  0xc4   : > { %1222 = vrot.lane.b32.xlu0 %v6359_v16, %s4905_s20  ;;  %v1587_v8 = vrot.slane %v1374_v45, %v5219_v31  ;;  %v1242_v47 = vsel %vm1228_vm3, %v4870_v59, %v663_v60  ;;  %v5649_v10 = vcombine.high %v2192_v15, %v2192_v15  ;;  %v5651_v34 = vpack.i.b16 %v2199_v23, %v2728_v6  ;;  %v661_v60 = vpop.permute.xlu1 %660 }
  0xc5   : > { %v2572_v37 = vunpack.i.h.s16 %v5415_v13  ;;  %v1311_v26 = vsel %vm1297_vm2, %v1242_v47, %v867_v46  ;;  %714 = vrot.lane.b32.xlu1 %v5331_v30, %s4904_s19  ;;  %v5657_v54 = vpack.i.b16 %v2207_v43, %v2730_v36  ;;  %v5659_v39 = vpack.i.b16 %v2209_v25, %v2732_v3  ;;  %v4871_v13 = vld [vmem:[%s4943_s17 + $0x80] ss:$0 sps:$4 sm:$0x11]   ;;  %v1203_v7 = vpop.permute.xlu0 %1202 }
  0xc6   : > { %v1594_v29 = vrot.slane %v1587_v8, %v5219_v31  ;;  %v1380_v52 = vsel %vm1366_vm4, %v1311_v26, %v1173_v14  ;;  %v5666_v58 = vpack.i.b16 %v5624_v56, %v2736_v12  ;;  %v1272_v46 = vsel %vm1228_vm3, %v4871_v13, %v693_v44 }
  0xc7   : > { %v1658_v30 = vcombine.high %v1380_v52, %v1380_v52  ;;  %v1665_v5 = vrot.slane %v1380_v52, %v5219_v31  ;;  %v5671_v23 = vpack.i.b16 %v2192_v15, %v2734_v35  ;;  %v5674_v2 = vpack.i.b16 %v5649_v10, %v2738_v55 }
  0xc8   : > { %682 = vrot.lane.b32.xlu0 %v5353_v19, %s4904_s19  ;;  %v4509_v18 = vpack.i.b16 %v1594_v29, %v2572_v37  ;;  %v1341_v19 = vsel %vm1297_vm2, %v1272_v46, %v897_v48  ;;  %v3525_v15 = vcombine.low %v5651_v34, %v5657_v54  ;;  %v1240_v36 = vsel %vm1228_vm3, %v4872_v24, %v661_v60  ;;  %v1171_v16 = vpop.permute.xlu1 %1170 }
  0xc9   : > { %v1672_v43 = vrot.slane %v1658_v30, %v5219_v31  ;;  %v1673_v25 = vcombine.high %v1665_v5, %v1665_v5  ;;  %v5679_v6 = vrot.slane %v1665_v5, %v5219_v31  ;;  %v1410_v44 = vsel %vm1366_vm4, %v1341_v19, %v1203_v7  ;;  %886 = vrot.lane.b32.xlu1 %v5286_v9, %s4903_s18  ;;  %v865_v48 = vpop.permute.xlu0 %864 }
  0xca   : > { %v3081_v51 = vcombine.low %v4509_v18, %v5561_v1  ;;  %v2154_v3 = vrot.slane %v1410_v44, %v5219_v31  ;;  %v2147_v1 = vcombine.high %v5524_v40, %v5524_v40  ;;  %v1309_v55 = vsel %vm1297_vm2, %v1240_v36, %v865_v48  ;;  %v4874_v48 = vld [vmem:[%s4943_s17 + $0x8c] ss:$0 sps:$4 sm:$0x11]  }
  0xcb   : > { %v1674_v14 = vcombine.high %v1672_v43, %v1672_v43  ;;  %v1688_v12 = vrot.slane %v1672_v43, %v5219_v31  ;;  %v1695_v45 = vrot.slane %v1673_v25, %v5219_v31  ;;  %v1703_v9 = vcombine.high %v5679_v6, %v5679_v6 }
  0xcc   : > { %884 = vrot.lane.b32.xlu0 %v5236_v41, %s4903_s18  ;;  %v2161_v35 = vrot.slane %v2154_v3, %v5219_v31  ;;  %v3114_v8 = vcombine.low %v3105_v32, %v3112_v49  ;;  %v3091_v59 = vrot.slane %v3081_v51, %v5219_v31  ;;  %v6360_v26 = vshrl.u32 %v5236_v41, 16  ;;  %v699_v32 = vpop.permute.xlu1 %698 }
  0xcd   : > { %v5702_v47 = vrot.slane %v1674_v14, %v5219_v31  ;;  %v1705_v34 = vcombine.high %v1695_v45, %v1695_v45  ;;  %v2594_v37 = vunpack.i.h.s16 %v1695_v45  ;;  %v2592_v54 = vunpack.i.h.s16 %v5679_v6  ;;  %v697_v30 = vpop.permute.xlu0 %696 }
  0xce   : > { %1190 = vrot.lane.b32.xlu1 %v6360_v26, %s4905_s20  ;;  %v2596_v29 = vunpack.i.h.s16 %v1703_v9  ;;  %v2600_v40 = vunpack.i.h.s16 %v1688_v12  ;;  %v4546_v52 = vpack.i.b16 %v5585_v63, %v2161_v35  ;;  %v5711_v49 = vcombine.high %v1688_v12, %v1688_v12 }
  0xcf   : > { %v2598_v60 = vunpack.i.h.s16 %v1705_v34  ;;  %v2602_v13 = vunpack.i.h.s16 %v5702_v47  ;;  %v1378_v46 = vsel %vm1366_vm4, %v1309_v55, %v1171_v16  ;;  %v4512_v41 = vpack.i.b16 %v1703_v9, %v2594_v37 }
  0xd0   : > { %918 = vrot.lane.b32.xlu0 %v5293_v53, %s4903_s18  ;;  %v4513_v5 = vpack.i.b16 %v1705_v34, %v2596_v29  ;;  %v3524_v7 = vcombine.low %v2147_v1, %v4546_v52  ;;  %v1650_v18 = vrot.slane %v1378_v46, %v5219_v31  ;;  %v4515_v63 = vpack.i.b16 %v5702_v47, %v2600_v40  ;;  %v903_v36 = vpop.permute.xlu1 %902  ;;  %v6361_v1 = vld [vmem:[#allocation4_spill] sm:$0xff] }
  0xd1   : > { %v4514_v19 = vpack.i.b16 %v1688_v12, %v2598_v60  ;;  %v4516_v43 = vpack.i.b16 %v5711_v49, %v2602_v13  ;;  %v3113_v53 = vcombine.low %v3091_v59, %v3098_v42  ;;  %v3571_v25 = vcombine.low %v5659_v39, %v5671_v23  ;;  %v4873_v23 = vld [vmem:[%s4943_s17 + $0x90] sm:$0xff]  }
  0xd2   : > { %1224 = vrot.lane.b32.xlu1 %v5592_v22, %s4905_s20  ;;  %v4511_v44 = vpack.i.b16 %v1695_v45, %v2592_v54  ;;  %v1657_v51 = vrot.slane %v1650_v18, %v5219_v31  ;;  %v3128_v24 = vrot.slane %v3114_v8, %v5219_v31  ;;  %v3546_v42 = vrot.slane %v3524_v7, %v5219_v31  ;;  %v901_v22 = vpop.permute.xlu0 %900  ;;  %v6362_v8 = vld [vmem:[#allocation3_spill] sm:$0xff] }
  0xd3   : > { %v3132_v3 = vcombine.low %v4513_v5, %v4514_v19  ;;  %v3133_v57 = vcombine.low %v4515_v63, %v4516_v43  ;;  %v3121_v16 = vrot.slane %v3113_v53, %v5219_v31  ;;  %v1278_v12 = vsel %vm1228_vm3, %v4873_v23, %v699_v32  ;;  %v6364_v32 = vld [vmem:[#allocation2_spill] sm:$0xff] }
  0xd4   : > { %1192 = vrot.lane.b32.xlu0 %v5604_v38, %s4905_s20  ;;  %v3131_v14 = vcombine.low %v4511_v44, %v4512_v41  ;;  %v4510_v39 = vpack.i.b16 %v5679_v6, %v1657_v51  ;;  %v2210_v45 = vcombine.high %v5624_v56, %v5624_v56  ;;  %v1276_v38 = vsel %vm1228_vm3, %v4874_v48, %v697_v30  ;;  %v1209_v34 = vpop.permute.xlu1 %1208 }
  0xd5   : > { %v3129_v9 = vcombine.low %v3121_v16, %v3128_v24  ;;  %v3553_v35 = vrot.slane %v3525_v15, %v5219_v31  ;;  %v3554_v6 = vcombine.low %v3532_v33, %v3539_v28  ;;  %v1347_v55 = vsel %vm1297_vm2, %v1278_v12, %v903_v36 }
  0xd6   : > { %888 = vrot.lane.b32.xlu1 %v6361_v1, %s4903_s18  ;;  %v3130_v56 = vcombine.low %v1643_v27, %v4510_v39  ;;  %v6363_v59 = vshrl.u32 %v6362_v8, 16  ;;  %v3154_v15 = vrot.slane %v3132_v3, %v5219_v31  ;;  %v3161_v37 = vrot.slane %v3133_v57, %v5219_v31  ;;  %v1207_v33 = vpop.permute.xlu0 %1206 }
  0xd7   : > { %4710 = vmatmul.mubr.msk.bf16.gmra.mxu0 %vm3885_vm5, %v3129_v9  ;;  %v1345_v11 = vsel %vm1297_vm2, %v1276_v38, %v901_v22  ;;  %v1416_v21 = vsel %vm1366_vm4, %v1347_v55, %v1209_v34  ;;  %v2740_v61 = vunpack.i.h.s16 %v5649_v10  ;;  %v3555_v28 = vcombine.low %v3546_v42, %v3553_v35  ;;  %v6367_v42 = vld [vmem:[#allocation5_spill] sm:$0xff] }
  0xd8   : > { %684 = vrot.lane.b32.xlu0 %v6363_v59, %s4904_s19  ;;  %v3140_v27 = vrot.slane %v3130_v56, %v5219_v31  ;;  %v2232_v26 = vrot.slane %v1416_v21, %v5219_v31  ;;  %v1414_v54 = vsel %vm1366_vm4, %v1345_v11, %v1207_v33  ;;  %4713 = vmatprep.mubr.msk.bf16.mxu0 %vm4907_vm1, %v6351_v62  ;;  %v6365_v60 = vshrl.u32 %v6364_v32, 16  ;;  %v871_v5 = vpop.permute.xlu1 %870 }
  0xd9   : > { %v3147_v29 = vrot.slane %v3131_v14, %v5219_v31  ;;  %v2217_v40 = vrot.slane %v1414_v54, %v5219_v31  ;;  %v3562_v52 = vrot.slane %v3554_v6, %v5219_v31  ;;  %v3569_v10 = vrot.slane %v3555_v28, %v5219_v31  ;;  %v6368_v6 = vld [vmem:[#allocation6_spill] sm:$0xff] }
  0xda   : > { %716 = vrot.lane.b32.xlu1 %v6365_v60, %s4904_s19  ;;  %v3163_v13 = vcombine.low %v3154_v15, %v3161_v37  ;;  %v3572_v46 = vcombine.low %v5666_v58, %v5674_v2  ;;  %v2240_v30 = vcombine.high %v2232_v26, %v2232_v26  ;;  %v6366_v41 = vshrl.u32 %v6361_v1, 16  ;;  %v667_v53 = vpop.permute.xlu0 %666  ;;  %v4875_v58 = vld [vmem:[%s4943_s17 + $0x30] sm:$0xff]  }
  0xdb   : > { %v3162_v7 = vcombine.low %v3140_v27, %v3147_v29  ;;  %v2742_v18 = vunpack.i.h.s16 %v2210_v45  ;;  %v4553_v19 = vpack.i.b16 %v2210_v45, %v2740_v61  ;;  %v2224_v63 = vrot.slane %v2217_v40, %v5219_v31  ;;  %v4876_v29 = vld [vmem:[%s4943_s17 + $0x2c] ss:$0 sps:$4 sm:$0x11]  }
  0xdc   : > { %1194 = vrot.lane.b32.xlu0 %v6366_v41, %s4905_s20  ;;  %v3570_v43 = vcombine.low %v3562_v52, %v3569_v10  ;;  %v5779_v44 = vrot.slane %v2232_v26, %v5219_v31  ;;  %v5782_v51 = vrot.slane %v2240_v30, %v5219_v31  ;;  %v1246_v2 = vsel %vm1228_vm3, %v4875_v58, %v667_v53  ;;  %v1177_v14 = vpop.permute.xlu1 %1176  ;;  %v4877_v41 = vld [vmem:[%s4943_s17 + $0x9c] sm:$0xff]  }
  0xdd   : > { %v3581_v24 = vrot.slane %v3571_v25, %v5219_v31  ;;  %v4554_v36 = vpack.i.b16 %v2224_v63, %v2742_v18  ;;  %v3170_v3 = vrot.slane %v3162_v7, %v5219_v31  ;;  %v3177_v57 = vrot.slane %v3163_v13, %v5219_v31 }
  0xde   : > { %4746 = vmatmul.mubr.msk.bf16.gmra.mxu1 %vm3885_vm5, %v3570_v43  ;;  %1226 = vrot.lane.b32.xlu1 %v1158_v17, %s4905_s20  ;;  %v2694_v16 = vunpack.i.h.s16 %v6367_v42  ;;  %v3574_v22 = vcombine.low %v5779_v44, %v5782_v51  ;;  %v1315_v39 = vsel %vm1297_vm2, %v1246_v2, %v871_v5  ;;  %v3588_v25 = vrot.slane %v3572_v46, %v5219_v31  ;;  %v665_v45 = vpop.permute.xlu0 %664 }
  0xdf   : > { %4749 = vmatprep.mubr.msk.bf16.mxu1 %vm4907_vm1, %v6351_v62  ;;  %v3573_v23 = vcombine.low %v4553_v19, %v4554_v36  ;;  %v3178_v12 = vcombine.low %v3170_v3, %v3177_v57  ;;  %v1384_v17 = vsel %vm1366_vm4, %v1315_v39, %v1177_v14  ;;  %v2225_v9 = vcombine.high %v1416_v21, %v1416_v21 }
  0xe0   : > { %920 = vrot.lane.b32.xlu0 %v5306_v4, %s4903_s18  ;;  %v3602_v48 = vrot.slane %v3574_v22, %v5219_v31  ;;  %v1721_v1 = vcombine.high %v1384_v17, %v1384_v17  ;;  %v869_v35 = vpop.permute.xlu1 %868  ;;  %v3603_v4 = vcombine.low %v3581_v24, %v3588_v25  ;;  %v5809_v56 = vpack.i.b16 %v6368_v6, %v2694_v16  ;;  %v4878_v22 = vld [vmem:[%s4943_s17 + $0x3c] sm:$0xff]  }
  0xe1   : > { %v3595_v38 = vrot.slane %v3573_v23, %v5219_v31  ;;  %4714 = vmatmul.mubr.msk.bf16.gmra.mxu0 %vm3885_vm5, %v3178_v12  ;;  %v2239_v59 = vrot.slane %v2225_v9, %v5219_v31  ;;  %v1728_v34 = vrot.slane %v1384_v17, %v5219_v31  ;;  %v1244_v40 = vsel %vm1228_vm3, %v4876_v29, %v665_v45 }
  0xe2   : > { %4717 = vmatprep.mubr.msk.bf16.mxu0 %vm4907_vm1, %v6351_v62  ;;  %v1735_v55 = vrot.slane %v1721_v1, %v5219_v31  ;;  %v703_v8 = vpop.permute.xlu0 %702  ;;  %v3611_v21 = vrot.slane %v3603_v4, %v5219_v31  ;;  %v1313_v10 = vsel %vm1297_vm2, %v1244_v40, %v869_v35  ;;  %v1706_v7 = vcombine.high %v5702_v47, %v5702_v47 }
  0xe3   : > { %v3604_v15 = vcombine.low %v3595_v38, %v3602_v48  ;;  %v2241_v28 = vcombine.high %v2239_v59, %v2239_v59  ;;  %v1736_v27 = vcombine.high %v1728_v34, %v1728_v34  ;;  %v1282_v5 = vsel %vm1228_vm3, %v4877_v41, %v703_v8 }
  0xe4   : > { %v1737_v37 = vcombine.high %v1735_v55, %v1735_v55  ;;  %v907_v11 = vpop.permute.xlu1 %906  ;;  %v5827_v13 = vrot.slane %v1735_v55, %v5219_v31  ;;  %v2255_v19 = vrot.slane %v2239_v59, %v5219_v31  ;;  %v1744_v63 = vrot.slane %v1728_v34, %v5219_v31 }
  0xe5   : > { %v3618_v61 = vrot.slane %v3604_v15, %v5219_v31  ;;  %v2269_v60 = vrot.slane %v2241_v28, %v5219_v31  ;;  %v1758_v46 = vrot.slane %v1736_v27, %v5219_v31  ;;  %v1351_v53 = vsel %vm1297_vm2, %v1282_v5, %v907_v11 }
  0xe6   : > { %v671_v33 = vpop.permute.xlu0 %670  ;;  %v5817_v54 = vrot.slane %v1737_v37, %v5219_v31  ;;  %v2604_v39 = vunpack.i.h.s16 %v5711_v49  ;;  %v2606_v25 = vunpack.i.h.s16 %v1706_v7  ;;  %v4579_v23 = vcombine.high %v5779_v44, %v5782_v51 }
  0xe7   : > { %v3619_v26 = vcombine.low %v3611_v21, %v3618_v61  ;;  %v3621_v3 = vcombine.low %v2255_v19, %v2269_v60  ;;  %v4575_v57 = vcombine.high %v1744_v63, %v1758_v46  ;;  %v1250_v14 = vsel %vm1228_vm3, %v4878_v22, %v671_v33 }
  0xe8   : > { %v701_v52 = vpop.permute.xlu1 %700  ;;  %v3182_v43 = vcombine.low %v5827_v13, %v5817_v54  ;;  %v4580_v35 = vcombine.high %v2255_v19, %v2269_v60  ;;  %v3180_v55 = vcombine.low %v1744_v63, %v1758_v46  ;;  %v4517_v44 = vpack.i.b16 %v1706_v7, %v2604_v39  ;;  %v4879_v46 = vld [vmem:[%s4943_s17 + $0x98] ss:$0 sps:$4 sm:$0x11]  }
  0xe9   : > { %4750 = vmatmul.mubr.msk.bf16.gmra.mxu1 %vm3885_vm5, %v3619_v26  ;;  %v5853_v4 = vrot.slane %v3621_v3, %v5219_v31  ;;  %v3203_v49 = vrot.slane %v4575_v57, %v5219_v31  ;;  %v5859_v59 = vrot.slane %v4579_v23, %v5219_v31 }
  0xea   : > { %v1175_v32 = vpop.permute.xlu0 %1174  ;;  %4753 = vmatprep.mubr.msk.bf16.mxu1 %vm4907_vm1, %v6351_v62  ;;  %v3210_v12 = vrot.slane %v3182_v43, %v5219_v31  ;;  %v5869_v27 = vrot.slane %v4580_v35, %v5219_v31  ;;  %v3196_v40 = vrot.slane %v3180_v55, %v5219_v31 }
  0xeb   : > { %v1382_v30 = vsel %vm1366_vm4, %v1313_v10, %v1175_v32  ;;  %v3652_v26 = vcombine.low %v5859_v59, %v5853_v4 }
  0xec   : > { %v1713_v18 = vrot.slane %v1382_v30, %v5219_v31  ;;  %v1213_v58 = vpop.permute.xlu1 %1212  ;;  %v3212_v34 = vcombine.low %v3203_v49, %v3210_v12  ;;  %v1280_v30 = vsel %vm1228_vm3, %v4879_v46, %v701_v52 }
  0xed   : > { %v1420_v24 = vsel %vm1366_vm4, %v1351_v53, %v1213_v58 }
  0xee   : > { %v1720_v2 = vrot.slane %v1713_v18, %v5219_v31  ;;  %v875_v36 = vpop.permute.xlu0 %874  ;;  %v2288_v47 = vcombine.high %v1420_v24, %v1420_v24  ;;  %v2295_v16 = vrot.slane %v1420_v24, %v5219_v31  ;;  %v3226_v52 = vrot.slane %v3212_v34, %v5219_v31 }
  0xef   : > { %v1319_v17 = vsel %vm1297_vm2, %v1250_v14, %v875_v36 }
  0xf0   : > { %v1181_v45 = vpop.permute.xlu1 %1180  ;;  %v4518_v9 = vpack.i.b16 %v1720_v2, %v2606_v25  ;;  %v2303_v48 = vcombine.high %v2295_v16, %v2295_v16  ;;  %v2302_v6 = vrot.slane %v2288_v47, %v5219_v31  ;;  %v5862_v15 = vrot.slane %v2295_v16, %v5219_v31 }
  0xf1   : > { %v1388_v38 = vsel %vm1366_vm4, %v1319_v17, %v1181_v45 }
  0xf2   : > { %v905_v1 = vpop.permute.xlu0 %904  ;;  %v1784_v51 = vcombine.high %v1388_v38, %v1388_v38  ;;  %v1791_v8 = vrot.slane %v1388_v38, %v5219_v31  ;;  %v3179_v11 = vcombine.low %v4517_v44, %v4518_v9  ;;  %v5865_v21 = vrot.slane %v2303_v48, %v5219_v31  ;;  %v4880_v9 = vld [vmem:[%s4943_s17 + $0x38] ss:$0 sps:$4 sm:$0x11]  }
  0xf3   : > { %v2304_v29 = vcombine.high %v2302_v6, %v2302_v6  ;;  %v5875_v10 = vrot.slane %v2302_v6, %v5219_v31  ;;  %v5884_v41 = vcombine.high %v5862_v15, %v5862_v15  ;;  %v2762_v2 = vunpack.i.h.s16 %v5862_v15 }
  0xf4   : > { %v669_v37 = vpop.permute.xlu1 %668  ;;  %v1798_v61 = vrot.slane %v1784_v51, %v5219_v31  ;;  %v1799_v33 = vcombine.high %v1791_v8, %v1791_v8  ;;  %v5878_v60 = vrot.slane %v1791_v8, %v5219_v31  ;;  %v3189_v19 = vrot.slane %v3179_v11, %v5219_v31 }
  0xf5   : > { %v2335_v63 = vcombine.high %v5865_v21, %v5865_v21  ;;  %v2332_v58 = vrot.slane %v2304_v29, %v5219_v31  ;;  %v2334_v3 = vcombine.high %v5875_v10, %v5875_v10  ;;  %v2764_v22 = vunpack.i.h.s16 %v5865_v21 }
  0xf6   : > { %v1211_v28 = vpop.permute.xlu0 %1210  ;;  %v1800_v32 = vcombine.high %v1798_v61, %v1798_v61  ;;  %v5887_v5 = vrot.slane %v1798_v61, %v5219_v31  ;;  %v1821_v7 = vrot.slane %v1799_v33, %v5219_v31  ;;  %v1829_v43 = vcombine.high %v5878_v60, %v5878_v60  ;;  %v4881_v61 = vld [vmem:[%s4943_s17 + $0xa4] ss:$0 sps:$4 sm:$0x11]  }
  0xf7   : > { %v2766_v14 = vunpack.i.h.s16 %v5884_v41  ;;  %v2770_v39 = vunpack.i.h.s16 %v5875_v10  ;;  %v2768_v12 = vunpack.i.h.s16 %v2335_v63  ;;  %v1349_v45 = vsel %vm1297_vm2, %v1280_v30, %v905_v1 }
  0xf8   : > { %v1179_v18 = vpop.permute.xlu1 %1178  ;;  %v1831_v24 = vcombine.high %v1821_v7, %v1821_v7  ;;  %v2628_v36 = vunpack.i.h.s16 %v1821_v7  ;;  %v5901_v57 = vrot.slane %v1800_v32, %v5219_v31  ;;  %v2630_v47 = vunpack.i.h.s16 %v1829_v43 }
  0xf9   : > { %v2634_v16 = vunpack.i.h.s16 %v5887_v5  ;;  %v1248_v48 = vsel %vm1228_vm3, %v4880_v9, %v669_v37  ;;  %v1418_v6 = vsel %vm1366_vm4, %v1349_v45, %v1211_v28  ;;  %v3211_v34 = vcombine.low %v3189_v19, %v3196_v40 }
  0xfa   : > { %v873_v53 = vpop.permute.xlu0 %872  ;;  %v2632_v25 = vunpack.i.h.s16 %v1831_v24  ;;  %v4521_v17 = vpack.i.b16 %v1829_v43, %v2628_v36  ;;  %v4522_v35 = vpack.i.b16 %v1831_v24, %v2630_v47  ;;  %v2280_v51 = vrot.slane %v1418_v6, %v5219_v31 }
  0xfb   : > { %v1317_v55 = vsel %vm1297_vm2, %v1248_v48, %v873_v53  ;;  %v4524_v44 = vpack.i.b16 %v5901_v57, %v2634_v16  ;;  %v2772_v11 = vunpack.i.h.s16 %v2332_v58  ;;  %v2626_v1 = vunpack.i.h.s16 %v5878_v60 }
  0xfc   : > { %v909_v23 = vpop.permute.xlu1 %908  ;;  %v4523_v49 = vpack.i.b16 %v5887_v5, %v2632_v25  ;;  %v1386_v8 = vsel %vm1366_vm4, %v1317_v55, %v1179_v18  ;;  %v2287_v28 = vrot.slane %v2280_v51, %v5219_v31  ;;  %v3219_v46 = vrot.slane %v3211_v34, %v5219_v31 }
  0xfd   : > { %v1776_v37 = vrot.slane %v1386_v8, %v5219_v31  ;;  %v2774_v53 = vunpack.i.h.s16 %v2334_v3  ;;  %v4556_v40 = vpack.i.b16 %v5865_v21, %v2762_v2  ;;  %v3230_v24 = vcombine.low %v4521_v17, %v4522_v35 }
  0xfe   : > { %v705_v38 = vpop.permute.xlu0 %704  ;;  %v3231_v32 = vcombine.low %v4523_v49, %v4524_v44  ;;  %v4555_v36 = vpack.i.b16 %v5862_v15, %v2287_v28  ;;  %v3227_v47 = vcombine.low %v3219_v46, %v3226_v52  ;;  %v2336_v16 = vcombine.high %v2332_v58, %v2332_v58  ;;  %v4882_v49 = vld [vmem:[%s4943_s17 + $0xa8] sm:$0xff]  }
  0xff   : > { %v1284_v33 = vsel %vm1228_vm3, %v4881_v61, %v705_v38  ;;  %v1783_v18 = vrot.slane %v1776_v37, %v5219_v31  ;;  %v4576_v25 = vcombine.high %v5827_v13, %v5817_v54  ;;  %v4520_v45 = vpack.i.b16 %v1821_v7, %v2626_v1  ;;  %v4883_v1 = vld [vmem:[%s4943_s17 + $0x48] sm:$0xff]  }
 0x100   : > { %v1215_v29 = vpop.permute.xlu1 %1214  ;;  %v1353_v30 = vsel %vm1297_vm2, %v1284_v33, %v909_v23  ;;  %v4557_v21 = vpack.i.b16 %v5884_v41, %v2764_v22  ;;  %v4559_v2 = vpack.i.b16 %v5875_v10, %v2768_v12  ;;  %v3623_v38 = vcombine.low %v4555_v36, %v4556_v40  ;;  %4718 = vmatmul.mubr.msk.bf16.gmra.mxu0 %vm3885_vm5, %v3227_v47 }
 0x101   : > { %v1422_v19 = vsel %vm1366_vm4, %v1353_v30, %v1215_v29  ;;  %v4519_v9 = vpack.i.b16 %v5878_v60, %v1783_v18  ;;  %v3259_v52 = vrot.slane %v3231_v32, %v5219_v31  ;;  %v4558_v17 = vpack.i.b16 %v2335_v63, %v2766_v14  ;;  %4721 = vmatprep.mubr.msk.bf16.mxu0 %vm4907_vm1, %v6351_v62 }
 0x102   : > { %v707_v43 = vpop.permute.xlu0 %706  ;;  %v2343_v23 = vrot.slane %v1422_v19, %v5219_v31  ;;  %v4560_v35 = vpack.i.b16 %v2332_v58, %v2770_v39  ;;  %v4561_v54 = vpack.i.b16 %v2334_v3, %v2772_v11  ;;  %v3651_v60 = vrot.slane %v3623_v38, %v5219_v31 }
 0x103   : > { %v3229_v13 = vcombine.low %v4519_v9, %v4520_v45  ;;  %v4562_v7 = vpack.i.b16 %v2336_v16, %v2774_v53  ;;  %v1286_v41 = vsel %vm1228_vm3, %v4882_v49, %v707_v43  ;;  %v3252_v10 = vrot.slane %v3230_v24, %v5219_v31  ;;  %v4884_v49 = vld [vmem:[%s4943_s17 + $0x44] ss:$0 sps:$4 sm:$0x11]  }
 0x104   : > { %v911_v48 = vpop.permute.xlu1 %910  ;;  %v3238_v22 = vrot.slane %v4576_v25, %v5219_v31  ;;  %v2350_v63 = vrot.slane %v2343_v23, %v5219_v31  ;;  %v3670_v14 = vcombine.low %v4559_v2, %v4560_v35  ;;  %v3653_v39 = vcombine.low %v5869_v27, %v3651_v60 }
 0x105   : > { %v3245_v12 = vrot.slane %v3229_v13, %v5219_v31  ;;  %v1355_v58 = vsel %vm1297_vm2, %v1286_v41, %v911_v48  ;;  %v3261_v44 = vcombine.low %v3252_v10, %v3259_v52  ;;  %v3669_v51 = vcombine.low %v4557_v21, %v4558_v17 }
 0x106   : > { %v675_v15 = vpop.permute.xlu0 %674  ;;  %v2776_v8 = vunpack.i.h.s16 %v2336_v16  ;;  %v3660_v61 = vrot.slane %v3652_v26, %v5219_v31  ;;  %v3667_v33 = vrot.slane %v3653_v39, %v5219_v31  ;;  %v3671_v27 = vcombine.low %v4561_v54, %v4562_v7 }
 0x107   : > { %v3260_v11 = vcombine.low %v3238_v22, %v3245_v12  ;;  %v1254_v37 = vsel %vm1228_vm3, %v4883_v1, %v675_v15  ;;  %v3275_v53 = vrot.slane %v3261_v44, %v5219_v31  ;;  %v3686_v4 = vrot.slane %v3670_v14, %v5219_v31 }
 0x108   : > { %v1217_v3 = vpop.permute.xlu1 %1216  ;;  %v4563_v29 = vpack.i.b16 %v2350_v63, %v2776_v8  ;;  %v3668_v43 = vcombine.low %v3660_v61, %v3667_v33  ;;  %v1830_v59 = vcombine.high %v5887_v5, %v5887_v5  ;;  %v3679_v26 = vrot.slane %v3669_v51, %v5219_v31 }
 0x109   : > { %v1424_v6 = vsel %vm1366_vm4, %v1355_v58, %v1217_v3  ;;  %v3268_v46 = vrot.slane %v3260_v11, %v5219_v31  ;;  %v3693_v16 = vrot.slane %v3671_v27, %v5219_v31  ;;  %v2636_v21 = vunpack.i.h.s16 %v5901_v57 }
 0x10a   : > { %v879_v55 = vpop.permute.xlu0 %878  ;;  %v2358_v34 = vrot.slane %v1424_v6, %v5219_v31  ;;  %4754 = vmatmul.mubr.msk.bf16.gmra.mxu1 %vm3885_vm5, %v3668_v43  ;;  %v3701_v48 = vcombine.low %v3679_v26, %v3686_v4  ;;  %v2638_v15 = vunpack.i.h.s16 %v1830_v59  ;;  %v1832_v35 = vcombine.high %v5901_v57, %v5901_v57  ;;  %v4885_v26 = vld [vmem:[%s4943_s17 + $0x54] sm:$0xff]  }
 0x10b   : > { %v1323_v28 = vsel %vm1297_vm2, %v1254_v37, %v879_v55  ;;  %v3276_v24 = vcombine.low %v3268_v46, %v3275_v53  ;;  %4757 = vmatprep.mubr.msk.bf16.mxu1 %vm4907_vm1, %v6351_v62  ;;  %v2351_v54 = vcombine.high %v1424_v6, %v1424_v6  ;;  %v4525_v57 = vpack.i.b16 %v1830_v59, %v2636_v21 }
 0x10c   : > { %v5956_v32 = vrot.slane %v2358_v34, %v5219_v31  ;;  %v1185_v30 = vpop.permute.xlu1 %1184  ;;  %v2366_v45 = vcombine.high %v2358_v34, %v2358_v34  ;;  %v3709_v22 = vrot.slane %v3701_v48, %v5219_v31  ;;  %v4526_v14 = vpack.i.b16 %v1832_v35, %v2638_v15  ;;  %v4886_v15 = vld [vmem:[%s4943_s17 + $0xb4] sm:$0xff]  }
 0x10d   : > { %v1392_v40 = vsel %vm1366_vm4, %v1323_v28, %v1185_v30  ;;  %4722 = vmatmul.mubr.msk.bf16.gmra.mxu0 %vm3885_vm5, %v3276_v24  ;;  %v2365_v6 = vrot.slane %v2351_v54, %v5219_v31  ;;  %v2640_v37 = vunpack.i.h.s16 %v1832_v35  ;;  %v4887_v54 = vld [vmem:[%s4943_s17 + $0xb0] ss:$0 sps:$4 sm:$0x11]  }
 0x10e   : > { %v673_v18 = vpop.permute.xlu0 %672  ;;  %v3672_v19 = vcombine.low %v4563_v29, %v5956_v32  ;;  %v1847_v36 = vcombine.high %v1392_v40, %v1392_v40  ;;  %v1854_v47 = vrot.slane %v1392_v40, %v5219_v31  ;;  %4725 = vmatprep.mubr.msk.bf16.mxu0 %vm4907_vm1, %v6351_v62  ;;  %v2388_v60 = vrot.slane %v2366_v45, %v5219_v31 }
 0x10f   : > { %v1252_v41 = vsel %vm1228_vm3, %v4884_v49, %v673_v18  ;;  %v2381_v33 = vrot.slane %v2365_v6, %v5219_v31  ;;  %v3277_v29 = vcombine.low %v4525_v57, %v4526_v14  ;;  %v2367_v30 = vcombine.high %v2365_v6, %v2365_v6 }
 0x110   : > { %v679_v25 = vpop.permute.xlu1 %678  ;;  %v3700_v9 = vrot.slane %v3672_v19, %v5219_v31  ;;  %v1862_v5 = vcombine.high %v1854_v47, %v1854_v47  ;;  %v1861_v2 = vrot.slane %v1847_v36, %v5219_v31  ;;  %v1870_v38 = vrot.slane %v1854_v47, %v5219_v31 }
 0x111   : > { %v2398_v11 = vcombine.high %v2388_v60, %v2388_v60  ;;  %v2396_v43 = vcombine.high %v5956_v32, %v5956_v32  ;;  %v1258_v19 = vsel %vm1228_vm3, %v4885_v26, %v679_v25  ;;  %v3287_v47 = vrot.slane %v3277_v29, %v5219_v31 }
 0x112   : > { %v877_v23 = vpop.permute.xlu0 %876  ;;  %v3702_v52 = vcombine.low %v3693_v16, %v3700_v9  ;;  %v1884_v17 = vrot.slane %v1862_v5, %v5219_v31  ;;  %v5987_v12 = vrot.slane %v1861_v2, %v5219_v31  ;;  %v1892_v63 = vcombine.high %v1870_v38, %v1870_v38 }
 0x113   : > { %v1321_v58 = vsel %vm1297_vm2, %v1252_v41, %v877_v23  ;;  %v3719_v40 = vcombine.low %v2398_v11, %v2381_v33  ;;  %v1863_v18 = vcombine.high %v1861_v2, %v1861_v2  ;;  %v6009_v45 = vrot.slane %v2367_v30, %v5219_v31 }
 0x114   : > { %v1894_v7 = vcombine.high %v1884_v17, %v1884_v17  ;;  %v3716_v3 = vrot.slane %v3702_v52, %v5219_v31  ;;  %v3279_v1 = vcombine.low %v1884_v17, %v1892_v63  ;;  %v2397_v32 = vcombine.high %v2381_v33, %v2381_v33 }
 0x115   : > { %v3718_v9 = vcombine.low %v2388_v60, %v2396_v43  ;;  %v3735_v48 = vrot.slane %v3719_v40, %v5219_v31  ;;  %v6014_v21 = vrot.slane %v1863_v18, %v5219_v31 }
 0x116   : > { %v709_v13 = vpop.permute.xlu1 %708  ;;  %v3280_v55 = vcombine.low %v1894_v7, %v5987_v12  ;;  %v3717_v8 = vcombine.low %v3709_v22, %v3716_v3  ;;  %v3301_v4 = vrot.slane %v3279_v1, %v5219_v31  ;;  %v6033_v57 = vcombine.low %v6009_v45, %v2397_v32 }
 0x117   : > { %v1183_v10 = vpop.permute.xlu0 %1182  ;;  %v1288_v60 = vsel %vm1228_vm3, %v4887_v54, %v709_v13  ;;  %v3728_v6 = vrot.slane %v3718_v9, %v5219_v31  ;;  %v1895_v30 = vcombine.high %v6014_v21, %v6014_v21  ;;  %v4888_v9 = vld [vmem:[%s4943_s17 + $0x50] ss:$0 sps:$4 sm:$0x11]  }
 0x118   : > { %v1390_v39 = vsel %vm1366_vm4, %v1321_v58, %v1183_v10  ;;  %4758 = vmatmul.mubr.msk.bf16.gmra.mxu1 %vm3885_vm5, %v3717_v8  ;;  %v3308_v27 = vrot.slane %v3280_v55, %v5219_v31 }
 0x119   : > { %v1839_v44 = vrot.slane %v1390_v39, %v5219_v31  ;;  %4761 = vmatprep.mubr.msk.bf16.mxu1 %vm4907_vm1, %v6351_v62  ;;  %v6048_v29 = vcombine.low %v3728_v6, %v3735_v48 }
 0x11a   : > { %v883_v51 = vpop.permute.xlu1 %882  ;;  %v3310_v16 = vcombine.low %v3301_v4, %v3308_v27 }
 0x11b   : > { %v711_v34 = vpop.permute.xlu0 %710  ;;  %v1846_v61 = vrot.slane %v1839_v44, %v5219_v31  ;;  %v1327_v5 = vsel %vm1297_vm2, %v1258_v19, %v883_v51  ;;  %v3758_v32 = vrot.slane %v6048_v29, %v5219_v31 }
 0x11c   : > { %v1290_v52 = vsel %vm1228_vm3, %v4886_v15, %v711_v34  ;;  %v3324_v10 = vrot.slane %v3310_v16, %v5219_v31 }
 0x11d   : > { %v4527_v28 = vpack.i.b16 %v1846_v61, %v2640_v37 }
 0x11e   : > { %v915_v46 = vpop.permute.xlu1 %914 }
 0x11f   : > { %v913_v53 = vpop.permute.xlu0 %912  ;;  %v3278_v59 = vcombine.low %v4527_v28, %v1870_v38  ;;  %v1893_v38 = vcombine.high %v5987_v12, %v5987_v12  ;;  %v1359_v7 = vsel %vm1297_vm2, %v1290_v52, %v915_v46  ;;  %v2399_v28 = vcombine.high %v6009_v45, %v6009_v45 }
 0x120   : > { %v1357_v22 = vsel %vm1297_vm2, %v1288_v60, %v913_v53  ;;  %v3742_v46 = vrot.slane %v6033_v57, %v5219_v31 }
 0x121   : > { %v3294_v24 = vrot.slane %v3278_v59, %v5219_v31  ;;  %v6040_v51 = vcombine.low %v6014_v21, %v1893_v38 }
 0x122   : > { %v1219_v36 = vpop.permute.xlu1 %1218 }
 0x123   : > { %v1189_v23 = vpop.permute.xlu0 %1188  ;;  %v3309_v2 = vcombine.low %v3287_v47, %v3294_v24  ;;  %v1426_v13 = vsel %vm1366_vm4, %v1357_v22, %v1219_v36  ;;  %v3336_v36 = vrot.slane %v6040_v51, %v5219_v31 }
 0x124   : > { %v1396_v25 = vsel %vm1366_vm4, %v1327_v5, %v1189_v23  ;;  %v2406_v37 = vrot.slane %v1426_v13, %v5219_v31 }
 0x125   : > { %v1910_v17 = vcombine.high %v1396_v25, %v1396_v25  ;;  %v1917_v35 = vrot.slane %v1396_v25, %v5219_v31  ;;  %v3317_v41 = vrot.slane %v3309_v2, %v5219_v31 }
 0x126   : > { %v677_v49 = vpop.permute.xlu1 %676  ;;  %v2413_v47 = vrot.slane %v2406_v37, %v5219_v31 }
 0x127   : > { %v1924_v12 = vrot.slane %v1910_v17, %v5219_v31  ;;  %v1925_v63 = vcombine.high %v1917_v35, %v1917_v35  ;;  %v6030_v58 = vrot.slane %v1917_v35, %v5219_v31  ;;  %v1221_v3 = vpop.permute.xlu0 %1220  ;;  %v3325_v39 = vcombine.low %v3317_v41, %v3324_v10 }
 0x128   : > { %v1428_v14 = vsel %vm1366_vm4, %v1359_v7, %v1221_v3  ;;  %v1256_v5 = vsel %vm1228_vm3, %v4888_v9, %v677_v49 }
 0x129   : > { %v1926_v55 = vcombine.high %v1924_v12, %v1924_v12  ;;  %v1947_v44 = vrot.slane %v1925_v63, %v5219_v31  ;;  %v1955_v8 = vcombine.high %v6030_v58, %v6030_v58  ;;  %v2414_v34 = vcombine.high %v1428_v14, %v1428_v14  ;;  %4726 = vmatmul.mubr.msk.bf16.gmra.mxu0 %vm3885_vm5, %v3325_v39 }
 0x12a   : > { %v2421_v11 = vrot.slane %v1428_v14, %v5219_v31  ;;  %v1940_v61 = vrot.slane %v1924_v12, %v5219_v31  ;;  %4729 = vmatprep.mubr.msk.bf16.mxu0 %vm4907_vm1, %v6351_v62  ;;  %v2660_v40 = vunpack.i.h.s16 %v6030_v58 }
 0x12b   : > { %v1187_v1 = vpop.permute.xlu1 %1186  ;;  %v1957_v33 = vcombine.high %v1947_v44, %v1947_v44  ;;  %v881_v27 = vpop.permute.xlu0 %880  ;;  %v2428_v43 = vrot.slane %v2414_v34, %v5219_v31  ;;  %v6060_v53 = vrot.slane %v1926_v55, %v5219_v31  ;;  %v2662_v18 = vunpack.i.h.s16 %v1947_v44 }
 0x12c   : > { %v2429_v4 = vcombine.high %v2421_v11, %v2421_v11  ;;  %v2664_v59 = vunpack.i.h.s16 %v1955_v8  ;;  %v2437_v24 = vrot.slane %v2421_v11, %v5219_v31  ;;  %v2668_v16 = vunpack.i.h.s16 %v1940_v61 }
 0x12d   : > { %v2666_v26 = vunpack.i.h.s16 %v1957_v33  ;;  %v2430_v19 = vcombine.high %v2428_v43, %v2428_v43  ;;  %v2444_v23 = vrot.slane %v2428_v43, %v5219_v31  ;;  %v6073_v38 = vcombine.high %v1940_v61, %v1940_v61 }
 0x12e   : > { %v2451_v48 = vrot.slane %v2429_v4, %v5219_v31  ;;  %v2459_v25 = vcombine.high %v2437_v24, %v2437_v24  ;;  %v2670_v15 = vunpack.i.h.s16 %v6060_v53  ;;  %v4529_v52 = vpack.i.b16 %v1947_v44, %v2660_v40 }
 0x12f   : > { %v917_v45 = vpop.permute.xlu1 %916  ;;  %v713_v2 = vpop.permute.xlu0 %712  ;;  %v2458_v17 = vrot.slane %v2430_v19, %v5219_v31  ;;  %v4530_v35 = vpack.i.b16 %v1955_v8, %v2662_v18  ;;  %v4531_v54 = vpack.i.b16 %v1957_v33, %v2664_v59  ;;  %v4532_v60 = vpack.i.b16 %v1940_v61, %v2666_v26  ;;  %v4889_v8 = vld [vmem:[%s4943_s17 + $0xbc] ss:$0 sps:$4 sm:$0x11]  }
 0x130   : > { %v2461_v7 = vcombine.high %v2451_v48, %v2451_v48  ;;  %v6078_v49 = vpack.i.b16 %v6060_v53, %v2668_v16  ;;  %v2796_v41 = vunpack.i.h.s16 %v2437_v24  ;;  %v4564_v10 = vpack.i.b16 %v2437_v24, %v2413_v47 }
 0x131   : > { %v1325_v22 = vsel %vm1297_vm2, %v1256_v5, %v881_v27  ;;  %v2460_v63 = vcombine.high %v2444_v23, %v2444_v23  ;;  %v2798_v3 = vunpack.i.h.s16 %v2451_v48  ;;  %v2800_v13 = vunpack.i.h.s16 %v2459_v25 }
 0x132   : > { %v2802_v14 = vunpack.i.h.s16 %v2461_v7  ;;  %v2806_v6 = vunpack.i.h.s16 %v2458_v17  ;;  %v3721_v55 = vcombine.low %v2399_v28, %v4564_v10  ;;  %v1394_v44 = vsel %vm1366_vm4, %v1325_v22, %v1187_v1  ;;  %v4890_v10 = vld [vmem:[%s4943_s17 + $0x5c] ss:$0 sps:$4 sm:$0x11]  }
 0x133   : > { %v681_v12 = vpop.permute.xlu1 %680  ;;  %v1292_v34 = vsel %vm1228_vm3, %v4889_v8, %v713_v2  ;;  %v3328_v11 = vcombine.low %v4529_v52, %v4530_v35  ;;  %v3329_v37 = vcombine.low %v4531_v54, %v4532_v60  ;;  %v1902_v33 = vrot.slane %v1394_v44, %v5219_v31 }
 0x134   : > { %v4568_v61 = vpack.i.b16 %v2444_v23, %v2802_v14  ;;  %v2804_v43 = vunpack.i.h.s16 %v2444_v23  ;;  %v3749_v27 = vrot.slane %v3721_v55, %v5219_v31  ;;  %v1361_v40 = vsel %vm1297_vm2, %v1292_v34, %v917_v45  ;;  %v4891_v34 = vld [vmem:[%s4943_s17 + $0xc0] sm:$0xff]  }
 0x135   : > { %v2462_v18 = vcombine.high %v2458_v17, %v2458_v17  ;;  %v4566_v59 = vpack.i.b16 %v2459_v25, %v2798_v3  ;;  %v4567_v26 = vpack.i.b16 %v2461_v7, %v2800_v13  ;;  %v1909_v28 = vrot.slane %v1902_v33, %v5219_v31 }
 0x136   : > { %v1223_v39 = vpop.permute.xlu0 %1222  ;;  %v4565_v24 = vpack.i.b16 %v2451_v48, %v2796_v41  ;;  %v4570_v47 = vpack.i.b16 %v2460_v63, %v2806_v6  ;;  %v2808_v16 = vunpack.i.h.s16 %v2460_v63  ;;  %v3751_v45 = vcombine.low %v3742_v46, %v3749_v27 }
 0x137   : > { %v715_v4 = vpop.permute.xlu1 %714  ;;  %v1430_v1 = vsel %vm1366_vm4, %v1361_v40, %v1223_v39  ;;  %v3768_v5 = vcombine.low %v4567_v26, %v4568_v61  ;;  %v4528_v23 = vpack.i.b16 %v6030_v58, %v1909_v28  ;;  %v3357_v25 = vrot.slane %v3329_v37, %v5219_v31 }
 0x138   : > { %v2469_v9 = vrot.slane %v1430_v1, %v5219_v31  ;;  %v6096_v2 = vpack.i.b16 %v6073_v38, %v2670_v15  ;;  %v4569_v52 = vpack.i.b16 %v2458_v17, %v2804_v43  ;;  %v2810_v35 = vunpack.i.h.s16 %v2462_v18 }
 0x139   : > { %v3767_v60 = vcombine.low %v4565_v24, %v4566_v59  ;;  %v3327_v7 = vcombine.low %v1895_v30, %v4528_v23  ;;  %v3765_v58 = vrot.slane %v3751_v45, %v5219_v31  ;;  %v3350_v57 = vrot.slane %v3328_v11, %v5219_v31 }
 0x13a   : > { %v683_v19 = vpop.permute.xlu0 %682  ;;  %v2476_v48 = vrot.slane %v2469_v9, %v5219_v31  ;;  %v3769_v46 = vcombine.low %v4569_v52, %v4570_v47  ;;  %v1260_v15 = vsel %vm1228_vm3, %v4890_v10, %v681_v12  ;;  %v4571_v22 = vpack.i.b16 %v2462_v18, %v2808_v16 }
 0x13b   : > { %v887_v54 = vpop.permute.xlu1 %886  ;;  %v3343_v63 = vrot.slane %v3327_v7, %v5219_v31  ;;  %v3766_v3 = vcombine.low %v3758_v32, %v3765_v58  ;;  %v3359_v21 = vcombine.low %v3350_v57, %v3357_v25  ;;  %v3784_v30 = vrot.slane %v3768_v5, %v5219_v31 }
 0x13c   : > { %v4572_v17 = vpack.i.b16 %v2476_v48, %v2810_v35  ;;  %v3375_v13 = vcombine.low %v6078_v49, %v6096_v2  ;;  %v1958_v6 = vcombine.high %v6060_v53, %v6060_v53  ;;  %v2672_v55 = vunpack.i.h.s16 %v6073_v38 }
 0x13d   : > { %4762 = vmatmul.mubr.msk.bf16.gmra.mxu1 %vm3885_vm5, %v3766_v3  ;;  %v3358_v29 = vcombine.low %v3336_v36, %v3343_v63  ;;  %v3777_v49 = vrot.slane %v3767_v60, %v5219_v31  ;;  %v1294_v11 = vsel %vm1228_vm3, %v4891_v34, %v715_v4  ;;  %v3791_v51 = vrot.slane %v3769_v46, %v5219_v31  ;;  %v4892_v36 = vld [vmem:[%s4943_s17 + $0x60] sm:$0xff]  }
 0x13e   : > { %v885_v41 = vpop.permute.xlu0 %884  ;;  %v3770_v14 = vcombine.low %v4571_v22, %v4572_v17  ;;  %4765 = vmatprep.mubr.msk.bf16.mxu1 %vm4907_vm1, %v6351_v62  ;;  %v1262_v37 = vsel %vm1228_vm3, %v4892_v36, %v683_v19  ;;  %v3373_v61 = vrot.slane %v3359_v21, %v5219_v31  ;;  %v2674_v27 = vunpack.i.h.s16 %v1958_v6 }
 0x13f   : > { %v1329_v39 = vsel %vm1297_vm2, %v1260_v15, %v885_v41  ;;  %v3366_v38 = vrot.slane %v3358_v29, %v5219_v31  ;;  %v3799_v33 = vcombine.low %v3777_v49, %v3784_v30  ;;  %v1331_v59 = vsel %vm1297_vm2, %v1262_v37, %v887_v54  ;;  %v4894_v37 = vld [vmem:[%s4943_s17 + $0xc8] ss:$0 sps:$4 sm:$0x11]  }
 0x140   : > { %v1191_v12 = vpop.permute.xlu1 %1190  ;;  %v3798_v8 = vrot.slane %v3770_v14, %v5219_v31  ;;  %v4535_v28 = vpack.i.b16 %v1958_v6, %v2672_v55  ;;  %v3385_v41 = vrot.slane %v3375_v13, %v5219_v31  ;;  %v4893_v14 = vld [vmem:[%s4943_s17 + $0x68] ss:$0 sps:$4 sm:$0x11]  }
 0x141   : > { %v1398_v32 = vsel %vm1366_vm4, %v1329_v39, %v1191_v12  ;;  %v3374_v26 = vcombine.low %v3366_v38, %v3373_v61  ;;  %v3807_v45 = vrot.slane %v3799_v33, %v5219_v31 }
 0x142   : > { %v919_v44 = vpop.permute.xlu0 %918  ;;  %v1965_v53 = vrot.slane %v1398_v32, %v5219_v31  ;;  %v3800_v4 = vcombine.low %v3791_v51, %v3798_v8 }
 0x143   : > { %v1363_v40 = vsel %vm1297_vm2, %v1294_v11, %v919_v44  ;;  %4730 = vmatmul.mubr.msk.bf16.gmra.mxu0 %vm3885_vm5, %v3374_v26 }
 0x144   : > { %v1972_v43 = vrot.slane %v1965_v53, %v5219_v31  ;;  %v1225_v18 = vpop.permute.xlu1 %1224  ;;  %v3814_v25 = vrot.slane %v3800_v4, %v5219_v31  ;;  %4733 = vmatprep.mubr.msk.bf16.mxu0 %vm4907_vm1, %v6351_v62 }
 0x145   : > { %v1432_v1 = vsel %vm1366_vm4, %v1363_v40, %v1225_v18 }
 0x146   : > { %v1193_v24 = vpop.permute.xlu0 %1192  ;;  %v4536_v19 = vpack.i.b16 %v1972_v43, %v2674_v27  ;;  %v2477_v47 = vcombine.high %v1432_v1, %v1432_v1  ;;  %v2484_v16 = vrot.slane %v1432_v1, %v5219_v31  ;;  %v3815_v7 = vcombine.low %v3807_v45, %v3814_v25 }
 0x147   : > { %v1400_v9 = vsel %vm1366_vm4, %v1331_v59, %v1193_v24 }
 0x148   : > { %v1973_v5 = vcombine.high %v1400_v9, %v1400_v9  ;;  %v1980_v23 = vrot.slane %v1400_v9, %v5219_v31  ;;  %v3376_v2 = vcombine.low %v4535_v28, %v4536_v19  ;;  %v2491_v52 = vrot.slane %v2477_v47, %v5219_v31  ;;  %v889_v48 = vpop.permute.xlu1 %888  ;;  %4766 = vmatmul.mubr.msk.bf16.gmra.mxu1 %vm3885_vm5, %v3815_v7 }
 0x149   : > { %v2492_v35 = vcombine.high %v2484_v16, %v2484_v16  ;;  %v2500_v46 = vrot.slane %v2484_v16, %v5219_v31  ;;  %4769 = vmatprep.mubr.msk.bf16.mxu1 %vm4907_vm1, %v6351_v62 }
 0x14a   : > { %v1987_v54 = vrot.slane %v1973_v5, %v5219_v31  ;;  %v1988_v60 = vcombine.high %v1980_v23, %v1980_v23  ;;  %v685_v58 = vpop.permute.xlu0 %684  ;;  %v2493_v57 = vcombine.high %v2491_v52, %v2491_v52  ;;  %v1996_v15 = vrot.slane %v1980_v23, %v5219_v31 }
 0x14b   : > { %v2514_v10 = vrot.slane %v2492_v35, %v5219_v31  ;;  %v3392_v22 = vrot.slane %v3376_v2, %v5219_v31  ;;  %v2507_v17 = vrot.slane %v2491_v52, %v5219_v31  ;;  %v1264_v39 = vsel %vm1228_vm3, %v4893_v14, %v685_v58 }
 0x14c   : > { %v1989_v63 = vcombine.high %v1987_v54, %v1987_v54  ;;  %v2010_v3 = vrot.slane %v1988_v60, %v5219_v31  ;;  %v2521_v21 = vrot.slane %v2493_v57, %v5219_v31  ;;  %v717_v12 = vpop.permute.xlu1 %716  ;;  %v2003_v6 = vrot.slane %v1987_v54, %v5219_v31 }
 0x14d   : > { %v3816_v30 = vcombine.low %v2500_v46, %v2514_v10  ;;  %v4581_v13 = vcombine.high %v2500_v46, %v2514_v10  ;;  %v1333_v36 = vsel %vm1297_vm2, %v1264_v39, %v889_v48  ;;  %v1296_v38 = vsel %vm1228_vm3, %v4894_v37, %v717_v12 }
 0x14e   : > { %v2017_v29 = vrot.slane %v1989_v63, %v5219_v31  ;;  %v3377_v32 = vcombine.low %v1996_v15, %v2010_v3  ;;  %v4577_v55 = vcombine.high %v1996_v15, %v2010_v3  ;;  %v1195_v44 = vpop.permute.xlu0 %1194  ;;  %v3818_v49 = vcombine.low %v2507_v17, %v2521_v21 }
 0x14f   : > { %v4582_v8 = vcombine.high %v2507_v17, %v2521_v21  ;;  %v3826_v34 = vrot.slane %v3816_v30, %v5219_v31  ;;  %v3833_v11 = vrot.slane %v4581_v13, %v5219_v31  ;;  %v1402_v27 = vsel %vm1366_vm4, %v1333_v36, %v1195_v44 }
 0x150   : > { %v3399_v53 = vrot.slane %v3377_v32, %v5219_v31  ;;  %v3406_v51 = vrot.slane %v4577_v55, %v5219_v31  ;;  %v3840_v61 = vrot.slane %v3818_v49, %v5219_v31  ;;  %v1227_v40 = vpop.permute.xlu1 %1226  ;;  %v3424_v4 = vcombine.low %v2003_v6, %v2017_v29 }
 0x151   : > { %v3847_v33 = vrot.slane %v4582_v8, %v5219_v31  ;;  %v3848_v43 = vcombine.low %v3826_v34, %v3833_v11  ;;  %v4578_v59 = vcombine.high %v2003_v6, %v2017_v29  ;;  %v2028_v26 = vrot.slane %v1402_v27, %v5219_v31 }
 0x152   : > { %v3408_v18 = vcombine.low %v3399_v53, %v3406_v51  ;;  %v921_v28 = vpop.permute.xlu0 %920  ;;  %v3407_v24 = vcombine.low %v3385_v41, %v3392_v22  ;;  %v3434_v2 = vrot.slane %v3424_v4, %v5219_v31 }
 0x153   : > { %v1365_v1 = vsel %vm1297_vm2, %v1296_v38, %v921_v28  ;;  %v3849_v19 = vcombine.low %v3840_v61, %v3847_v33  ;;  %v2035_v47 = vrot.slane %v2028_v26, %v5219_v31  ;;  %v3856_v45 = vrot.slane %v3848_v43, %v5219_v31 }
 0x154   : > { %v1434_v16 = vsel %vm1366_vm4, %v1365_v1, %v1227_v40  ;;  %v3422_v9 = vrot.slane %v3408_v18, %v5219_v31  ;;  %v3415_v23 = vrot.slane %v3407_v24, %v5219_v31  ;;  %v3441_v52 = vrot.slane %v4578_v59, %v5219_v31 }
 0x155   : > { %v2532_v5 = vrot.slane %v1434_v16, %v5219_v31  ;;  %v3863_v25 = vrot.slane %v3849_v19, %v5219_v31  ;;  %v4537_v35 = vpack.i.b16 %v6367_v42, %v2035_v47  ;;  %v3455_v42 = vrot.slane %v3427_v50, %v5219_v31 }
 0x156   : > { %v3423_v54 = vcombine.low %v3415_v23, %v3422_v9  ;;  %v3456_v57 = vcombine.low %v3434_v2, %v3441_v52 }
 0x157   : > { %v2539_v48 = vrot.slane %v2532_v5, %v5219_v31  ;;  %v3864_v60 = vcombine.low %v3856_v45, %v3863_v25  ;;  %v3426_v7 = vcombine.low %v4537_v35, %v5809_v56 }
 0x158   : > { %4734 = vmatmul.mubr.msk.bf16.gmra.mxu0 %vm3885_vm5, %v3423_v54  ;;  %v3464_v15 = vrot.slane %v3456_v57, %v5219_v31 }
 0x159   : > { %v2828_v58 = vunpack.i.l.s16 %v2539_v48  ;;  %4770 = vmatmul.mubr.msk.bf16.gmra.mxu1 %vm3885_vm5, %v3864_v60  ;;  %v3448_v41 = vrot.slane %v3426_v7, %v5219_v31  ;;  %4737 = vmatprep.mubr.msk.bf16.mxu0 %vm4907_vm1, %v6351_v62 }
 0x15a   : > { %4773 = vmatprep.mubr.msk.bf16.mxu1 %vm4907_vm1, %v6351_v62 }
 0x15b   : > { %v3871_v56 = vrot.slane %v2828_v58, %v5219_v31  ;;  %v3457_v46 = vcombine.low %v3448_v41, %v3455_v42 }
 0x15d   : > { %v3878_v10 = vrot.slane %v3871_v56, %v5219_v31  ;;  %v3471_v22 = vrot.slane %v3457_v46, %v5219_v31 }
 0x15f   : > { %v3472_v17 = vcombine.low %v3464_v15, %v3471_v22 }
 0x161   : > { %4774 = vmatmul.mubr.msk.bf16.gmra.mxu1 %vm3885_vm5, %v3878_v10  ;;  %4738 = vmatmul.mubr.msk.bf16.gmra.mxu0 %vm3885_vm5, %v3472_v17 }
 0x170   : > { %v3977_v0 = vpop.f32.mrf.mxu0 }
 0x171   : > { %v3978_v50 = vadd.f32 %v6208_v20, %v3977_v0 }
 0x172   : > { %v4703_v31 = vpop.f32.mrf.mxu0 }
 0x173   : > { %v4642_v62 = vpack.c.bf16 %v3978_v50, %v3978_v50 }
 0x174   : > { %v3980_v63 = vpop.f32.mrf.mxu0 }
 0x175   : > { %4277 = vst.msk [vmem:[%s6214_s28] sm:$0xf] %vm4276_vm6, %v4642_v62  ;;  %v3981_v3 = vadd.f32 %v6208_v20, %v3980_v63 }
 0x176   : > { %v4704_v21 = vpop.f32.mrf.mxu0 }
 0x177   : > { %v4643_v30 = vpack.c.bf16 %v3981_v3, %v3981_v3 }
 0x179   : > { %4278 = vst.msk [vmem:[%s6214_s28 + $0x4] sm:$0xf] %vm4276_vm6, %v4643_v30 }
 0x17c   : > { %v3985_v13 = vpop.f32.mrf.mxu0 }
 0x17d   : > { %v3986_v14 = vadd.f32 %v6208_v20, %v3985_v13 }
 0x17e   : > { %v4707_v39 = vpop.f32.mrf.mxu0 }
 0x17f   : > { %v4644_v12 = vpack.c.bf16 %v3986_v14, %v3986_v14  ;;  %v4057_v29 = vpop.f32.mrf.mxu1 }
 0x180   : > { %v3988_v6 = vpop.f32.mrf.mxu0  ;;  %v4058_v55 = vadd.f32 %v6208_v20, %v4057_v29 }
 0x181   : > { %4279 = vst.msk [vmem:[%s6214_s28 + $0x8] sm:$0xf] %vm4276_vm6, %v4644_v12  ;;  %v3989_v32 = vadd.f32 %v6208_v20, %v3988_v6  ;;  %v4743_v49 = vpop.f32.mrf.mxu1 }
 0x182   : > { %v4708_v44 = vpop.f32.mrf.mxu0  ;;  %v4662_v34 = vpack.c.bf16 %v4058_v55, %v4058_v55 }
 0x183   : > { %v4645_v8 = vpack.c.bf16 %v3989_v32, %v3989_v32  ;;  %v4060_v11 = vpop.f32.mrf.mxu1 }
 0x184   : > { %4297 = vst.msk [vmem:[%s6214_s28 + $0x50] sm:$0xf] %vm4276_vm6, %v4662_v34  ;;  %v4061_v53 = vadd.f32 %v6208_v20, %v4060_v11 }
 0x185   : > { %4280 = vst.msk [vmem:[%s6214_s28 + $0xc] sm:$0xf] %vm4276_vm6, %v4645_v8  ;;  %v4744_v51 = vpop.f32.mrf.mxu1 }
 0x186   : > { %v4663_v36 = vpack.c.bf16 %v4061_v53, %v4061_v53 }
 0x188   : > { %4298 = vst.msk [vmem:[%s6214_s28 + $0x54] sm:$0xf] %vm4276_vm6, %v4663_v36 }
 0x197   : > { %v3993_v37 = vpop.f32.mrf.mxu0 }
 0x198   : > { %v3994_v38 = vadd.f32 %v6208_v20, %v3993_v37 }
 0x199   : > { %v4711_v61 = vpop.f32.mrf.mxu0 }
 0x19a   : > { %v4646_v33 = vpack.c.bf16 %v3994_v38, %v3994_v38 }
 0x19b   : > { %v3996_v43 = vpop.f32.mrf.mxu0 }
 0x19c   : > { %4281 = vst.msk [vmem:[%s6214_s28 + $0x10] sm:$0xf] %vm4276_vm6, %v4646_v33  ;;  %v3997_v27 = vadd.f32 %v6208_v20, %v3996_v43 }
 0x19d   : > { %v4712_v40 = vpop.f32.mrf.mxu0 }
 0x19e   : > { %v4065_v18 = vpop.f32.mrf.mxu1  ;;  %v4647_v4 = vpack.c.bf16 %v3997_v27, %v3997_v27 }
 0x19f   : > { %v4066_v59 = vadd.f32 %v6208_v20, %v4065_v18 }
 0x1a0   : > { %v4747_v26 = vpop.f32.mrf.mxu1  ;;  %4282 = vst.msk [vmem:[%s6214_s28 + $0x14] sm:$0xf] %vm4276_vm6, %v4647_v4 }
 0x1a1   : > { %v4664_v28 = vpack.c.bf16 %v4066_v59, %v4066_v59  ;;  %v4001_v24 = vpop.f32.mrf.mxu0 }
 0x1a2   : > { %v4068_v1 = vpop.f32.mrf.mxu1  ;;  %v4002_v47 = vadd.f32 %v6208_v20, %v4001_v24 }
 0x1a3   : > { %4299 = vst.msk [vmem:[%s6214_s28 + $0x58] sm:$0xf] %vm4276_vm6, %v4664_v28  ;;  %v4069_v19 = vadd.f32 %v6208_v20, %v4068_v1  ;;  %v4715_v9 = vpop.f32.mrf.mxu0 }
 0x1a4   : > { %v4748_v16 = vpop.f32.mrf.mxu1  ;;  %v4648_v23 = vpack.c.bf16 %v4002_v47, %v4002_v47 }
 0x1a5   : > { %v4665_v5 = vpack.c.bf16 %v4069_v19, %v4069_v19  ;;  %v4004_v45 = vpop.f32.mrf.mxu0 }
 0x1a6   : > { %4283 = vst.msk [vmem:[%s6214_s28 + $0x18] sm:$0xf] %vm4276_vm6, %v4648_v23  ;;  %v4005_v25 = vadd.f32 %v6208_v20, %v4004_v45 }
 0x1a7   : > { %4300 = vst.msk [vmem:[%s6214_s28 + $0x5c] sm:$0xf] %vm4276_vm6, %v4665_v5  ;;  %v4716_v2 = vpop.f32.mrf.mxu0 }
 0x1a8   : > { %v4649_v52 = vpack.c.bf16 %v4005_v25, %v4005_v25 }
 0x1a9   : > { %v4073_v35 = vpop.f32.mrf.mxu1 }
 0x1aa   : > { %4284 = vst.msk [vmem:[%s6214_s28 + $0x1c] sm:$0xf] %vm4276_vm6, %v4649_v52  ;;  %v4074_v48 = vadd.f32 %v6208_v20, %v4073_v35 }
 0x1ab   : > { %v4751_v54 = vpop.f32.mrf.mxu1 }
 0x1ac   : > { %v4666_v60 = vpack.c.bf16 %v4074_v48, %v4074_v48 }
 0x1ad   : > { %v4076_v7 = vpop.f32.mrf.mxu1 }
 0x1ae   : > { %4301 = vst.msk [vmem:[%s6214_s28 + $0x60] sm:$0xf] %vm4276_vm6, %v4666_v60  ;;  %v4077_v58 = vadd.f32 %v6208_v20, %v4076_v7 }
 0x1af   : > { %v4752_v41 = vpop.f32.mrf.mxu1 }
 0x1b0   : > { %v4667_v42 = vpack.c.bf16 %v4077_v58, %v4077_v58 }
 0x1b2   : > { %4302 = vst.msk [vmem:[%s6214_s28 + $0x64] sm:$0xf] %vm4276_vm6, %v4667_v42 }
 0x1c0   : > { %v4009_v57 = vpop.f32.mrf.mxu0 }
 0x1c1   : > { %v4010_v56 = vadd.f32 %v6208_v20, %v4009_v57 }
 0x1c2   : > { %v4719_v46 = vpop.f32.mrf.mxu0 }
 0x1c3   : > { %v4650_v10 = vpack.c.bf16 %v4010_v56, %v4010_v56 }
 0x1c4   : > { %v4012_v15 = vpop.f32.mrf.mxu0 }
 0x1c5   : > { %4285 = vst.msk [vmem:[%s6214_s28 + $0x20] sm:$0xf] %vm4276_vm6, %v4650_v10  ;;  %v4013_v22 = vadd.f32 %v6208_v20, %v4012_v15 }
 0x1c6   : > { %v4720_v17 = vpop.f32.mrf.mxu0 }
 0x1c7   : > { %v4651_v0 = vpack.c.bf16 %v4013_v22, %v4013_v22 }
 0x1c9   : > { %4286 = vst.msk [vmem:[%s6214_s28 + $0x24] sm:$0xf] %vm4276_vm6, %v4651_v0 }
 0x1ca   : > { %v4081_v50 = vpop.f32.mrf.mxu1 }
 0x1cb   : > { %v4082_v31 = vadd.f32 %v6208_v20, %v4081_v50 }
 0x1cc   : > { %v4755_v62 = vpop.f32.mrf.mxu1 }
 0x1cd   : > { %v4017_v63 = vpop.f32.mrf.mxu0  ;;  %v4668_v3 = vpack.c.bf16 %v4082_v31, %v4082_v31 }
 0x1ce   : > { %v4018_v21 = vadd.f32 %v6208_v20, %v4017_v63  ;;  %v4084_v30 = vpop.f32.mrf.mxu1 }
 0x1cf   : > { %v4723_v13 = vpop.f32.mrf.mxu0  ;;  %4303 = vst.msk [vmem:[%s6214_s28 + $0x68] sm:$0xf] %vm4276_vm6, %v4668_v3  ;;  %v4085_v14 = vadd.f32 %v6208_v20, %v4084_v30 }
 0x1d0   : > { %v4652_v39 = vpack.c.bf16 %v4018_v21, %v4018_v21  ;;  %v4756_v12 = vpop.f32.mrf.mxu1 }
 0x1d1   : > { %v4020_v6 = vpop.f32.mrf.mxu0  ;;  %v4669_v29 = vpack.c.bf16 %v4085_v14, %v4085_v14 }
 0x1d2   : > { %4287 = vst.msk [vmem:[%s6214_s28 + $0x28] sm:$0xf] %vm4276_vm6, %v4652_v39  ;;  %v4021_v32 = vadd.f32 %v6208_v20, %v4020_v6 }
 0x1d3   : > { %v4724_v55 = vpop.f32.mrf.mxu0  ;;  %4304 = vst.msk [vmem:[%s6214_s28 + $0x6c] sm:$0xf] %vm4276_vm6, %v4669_v29 }
 0x1d4   : > { %v4653_v44 = vpack.c.bf16 %v4021_v32, %v4021_v32  ;;  %v4316_v32 = vld [vmem:[%s6214_s28 + $0x90] sm:$0x1] }
 0x1d6   : > { %4288 = vst.msk [vmem:[%s6214_s28 + $0x2c] sm:$0xf] %vm4276_vm6, %v4653_v44 }
 0x1d8   : > { %v4089_v49 = vpop.f32.mrf.mxu1 }
 0x1d9   : > { %v4090_v8 = vadd.f32 %v6208_v20, %v4089_v49 }
 0x1da   : > { %v4759_v34 = vpop.f32.mrf.mxu1 }
 0x1db   : > { %v4670_v11 = vpack.c.bf16 %v4090_v8, %v4090_v8 }
 0x1dc   : > { %v4092_v53 = vpop.f32.mrf.mxu1 }
 0x1dd   : > { %4305 = vst.msk [vmem:[%s6214_s28 + $0x70] sm:$0xf] %vm4276_vm6, %v4670_v11  ;;  %v4093_v51 = vadd.f32 %v6208_v20, %v4092_v53 }
 0x1de   : > { %v4760_v36 = vpop.f32.mrf.mxu1 }
 0x1df   : > { %v4671_v37 = vpack.c.bf16 %v4093_v51, %v4093_v51 }
 0x1e1   : > { %4306 = vst.msk [vmem:[%s6214_s28 + $0x74] sm:$0xf] %vm4276_vm6, %v4671_v37 }
 0x1e9   : > { %v4025_v38 = vpop.f32.mrf.mxu0 }
 0x1ea   : > { %v4026_v61 = vadd.f32 %v6208_v20, %v4025_v38 }
 0x1eb   : > { %v4727_v33 = vpop.f32.mrf.mxu0 }
 0x1ec   : > { %v4654_v43 = vpack.c.bf16 %v4026_v61, %v4026_v61 }
 0x1ed   : > { %v4028_v27 = vpop.f32.mrf.mxu0 }
 0x1ee   : > { %4289 = vst.msk [vmem:[%s6214_s28 + $0x30] sm:$0xf] %vm4276_vm6, %v4654_v43  ;;  %v4029_v40 = vadd.f32 %v6208_v20, %v4028_v27 }
 0x1ef   : > { %v4728_v18 = vpop.f32.mrf.mxu0 }
 0x1f0   : > { %v4655_v4 = vpack.c.bf16 %v4029_v40, %v4029_v40 }
 0x1f2   : > { %4290 = vst.msk [vmem:[%s6214_s28 + $0x34] sm:$0xf] %vm4276_vm6, %v4655_v4 }
 0x1fd   : > { %v4097_v59 = vpop.f32.mrf.mxu1 }
 0x1fe   : > { %v4098_v26 = vadd.f32 %v6208_v20, %v4097_v59 }
 0x1ff   : > { %v4763_v28 = vpop.f32.mrf.mxu1 }
 0x200   : > { %v4672_v1 = vpack.c.bf16 %v4098_v26, %v4098_v26 }
 0x201   : > { %v4100_v24 = vpop.f32.mrf.mxu1 }
 0x202   : > { %4307 = vst.msk [vmem:[%s6214_s28 + $0x78] sm:$0xf] %vm4276_vm6, %v4672_v1  ;;  %v4101_v19 = vadd.f32 %v6208_v20, %v4100_v24 }
 0x203   : > { %v4033_v47 = vpop.f32.mrf.mxu0  ;;  %v4764_v16 = vpop.f32.mrf.mxu1 }
 0x204   : > { %v4673_v9 = vpack.c.bf16 %v4101_v19, %v4101_v19  ;;  %v4034_v5 = vadd.f32 %v6208_v20, %v4033_v47 }
 0x205   : > { %v4731_v23 = vpop.f32.mrf.mxu0 }
 0x206   : > { %4308 = vst.msk [vmem:[%s6214_s28 + $0x7c] sm:$0xf] %vm4276_vm6, %v4673_v9  ;;  %v4656_v45 = vpack.c.bf16 %v4034_v5, %v4034_v5 }
 0x207   : > { %v4036_v25 = vpop.f32.mrf.mxu0 }
 0x208   : > { %v4105_v2 = vpop.f32.mrf.mxu1  ;;  %4291 = vst.msk [vmem:[%s6214_s28 + $0x38] sm:$0xf] %vm4276_vm6, %v4656_v45  ;;  %v4037_v52 = vadd.f32 %v6208_v20, %v4036_v25 }
 0x209   : > { %v4106_v35 = vadd.f32 %v6208_v20, %v4105_v2  ;;  %v4732_v48 = vpop.f32.mrf.mxu0 }
 0x20a   : > { %v4767_v54 = vpop.f32.mrf.mxu1  ;;  %v4657_v60 = vpack.c.bf16 %v4037_v52, %v4037_v52 }
 0x20b   : > { %v4674_v7 = vpack.c.bf16 %v4106_v35, %v4106_v35 }
 0x20c   : > { %v4108_v58 = vpop.f32.mrf.mxu1  ;;  %4292 = vst.msk [vmem:[%s6214_s28 + $0x3c] sm:$0xf] %vm4276_vm6, %v4657_v60 }
 0x20d   : > { %4309 = vst.msk [vmem:[%s6214_s28 + $0x80] sm:$0xf] %vm4276_vm6, %v4674_v7  ;;  %v4109_v41 = vadd.f32 %v6208_v20, %v4108_v58 }
 0x20e   : > { %v4768_v42 = vpop.f32.mrf.mxu1 }
 0x20f   : > { %v4675_v57 = vpack.c.bf16 %v4109_v41, %v4109_v41 }
 0x211   : > { %4310 = vst.msk [vmem:[%s6214_s28 + $0x84] sm:$0xf] %vm4276_vm6, %v4675_v57 }
 0x218   : > { %v4041_v56 = vpop.f32.mrf.mxu0 }
 0x219   : > { %v4113_v46 = vpop.f32.mrf.mxu1  ;;  %v4042_v10 = vadd.f32 %v6208_v20, %v4041_v56 }
 0x21a   : > { %v4114_v15 = vadd.f32 %v6208_v20, %v4113_v46  ;;  %v4735_v22 = vpop.f32.mrf.mxu0 }
 0x21b   : > { %v4771_v17 = vpop.f32.mrf.mxu1  ;;  %v4658_v0 = vpack.c.bf16 %v4042_v10, %v4042_v10 }
 0x21c   : > { %v4676_v50 = vpack.c.bf16 %v4114_v15, %v4114_v15  ;;  %v4044_v31 = vpop.f32.mrf.mxu0 }
 0x21d   : > { %v4116_v62 = vpop.f32.mrf.mxu1  ;;  %4293 = vst.msk [vmem:[%s6214_s28 + $0x40] sm:$0xf] %vm4276_vm6, %v4658_v0  ;;  %v4045_v63 = vadd.f32 %v6208_v20, %v4044_v31 }
 0x21e   : > { %4311 = vst.msk [vmem:[%s6214_s28 + $0x88] sm:$0xf] %vm4276_vm6, %v4676_v50  ;;  %v4117_v3 = vadd.f32 %v6208_v20, %v4116_v62  ;;  %v4736_v21 = vpop.f32.mrf.mxu0 }
 0x21f   : > { %v4772_v30 = vpop.f32.mrf.mxu1  ;;  %v4659_v13 = vpack.c.bf16 %v4045_v63, %v4045_v63 }
 0x220   : > { %v4677_v14 = vpack.c.bf16 %v4117_v3, %v4117_v3 }
 0x221   : > { %v4121_v39 = vpop.f32.mrf.mxu1  ;;  %4294 = vst.msk [vmem:[%s6214_s28 + $0x44] sm:$0xf] %vm4276_vm6, %v4659_v13  ;;  %v4049_v12 = vpop.f32.mrf.mxu0 }
 0x222   : > { %4312 = vst.msk [vmem:[%s6214_s28 + $0x8c] sm:$0xf] %vm4276_vm6, %v4677_v14  ;;  %v4122_v6 = vadd.f32 %v6208_v20, %v4121_v39  ;;  %v4050_v29 = vadd.f32 %v6208_v20, %v4049_v12 }
 0x223   : > { %v4775_v55 = vpop.f32.mrf.mxu1  ;;  %v4739_v44 = vpop.f32.mrf.mxu0 }
 0x224   : > { %v4678_v49 = vpack.c.bf16 %v4122_v6, %v4122_v6  ;;  %v4660_v8 = vpack.c.bf16 %v4050_v29, %v4050_v29 }
 0x225   : > { %v4124_v34 = vpop.f32.mrf.mxu1  ;;  %v4052_v53 = vpop.f32.mrf.mxu0 }
 0x226   : > { %v4317_v11 = vsel %vm4315_vm9, %v4678_v49, %v4316_v32  ;;  %4295 = vst.msk [vmem:[%s6214_s28 + $0x48] sm:$0xf] %vm4276_vm6, %v4660_v8  ;;  %v4053_v51 = vadd.f32 %v6208_v20, %v4052_v53 }
 0x227   : > { %4318 = vst [vmem:[%s6214_s28 + $0x90] sm:$0x1] %v4317_v11  ;;  %v4776_v36 = vpop.f32.mrf.mxu1  ;;  %v4740_v37 = vpop.f32.mrf.mxu0 }
 0x228   : > { %v4661_v38 = vpack.c.bf16 %v4053_v51, %v4053_v51 }
 0x22a   : > { %4296 = vst.msk [vmem:[%s6214_s28 + $0x4c] sm:$0xf] %vm4276_vm6, %v4661_v38 }
 0x22b PF: > { %s13_s12 = sadd.s32 1, %s4901_s12  }
 0x22c   : > { %p10_p4 = scmp.ge.s32.totalorder %s13_s12, 6  }
 0x22e   :  { %12 = sbr.rel (!%p10_p4) target bundleno = 1 (0x1), region = 63 }

// kernel: _lambda_.11
= control target key start
LH: loop header
LB: loop body
LE: loop exit
PB: predicated region body
PF: predicated region fallthrough
CT: control target
= control target key end

     0   :  { %s1077_s12 = smov 0   ;;  %s1235_s0 = inlined_call_operand.vmem [shape: bf16[4,3,32,32], index: 0, kind: input, shape index: {}]   ;;  %s1236_s1 = inlined_call_operand.vmem [shape: f32[20,32], index: 1, kind: input, shape index: {}]   ;;  %s1237_s2 = inlined_call_operand.vmem [shape: f32[32,20], index: 2, kind: input, shape index: {}]   ;;  %s1238_s3 = inlined_call_operand.vmem [shape: f32[4,3,20,20], index: 3, kind: output, shape index: {}]  }
   0x1 LB: > { %s821_s13 = sadd.s32 4294967295, %s1053_s12   ;;  %p825_p0 = scmp.ge.s32.totalorder %s1053_s12, 1  ;;  %s1053_s12 = sphi %s1077_s12, %s13_s12  }
   0x2   : > { %p137_p1 = scmp.lt.s32.totalorder %s1053_s12, 5 }
   0x4   : > { %p138_p2 = pnand %p825_p0, %p137_p1 }
   0x5   : > { %p161_p3 = scmp.lt.s32.totalorder (!%p138_p2), %s821_s13, 3 }
   0x6   : > { %141 = sbr.rel (%p138_p2) target bundleno = 445 (0x1bd), region = 32 }
   0xb   : > { %v1055_v0 = vmov 0.0   ;;  %vm1056_vm0 = vmmov 0   ;;  %s1240_s13 = smov (!%p161_p3, %s821_s13), 3  ;;  %v1094_v1 = vld [vmem:[%s1237_s2 + $0x18] sm:$0xff]  ;;  %v1099_v2 = vld [vmem:[%s1237_s2 + $0x10] sm:$0xff]  ;;  %v1109_v3 = vld [vmem:[%s1237_s2 + $0x8] sm:$0xff] }
   0xc   : > { %933 = vmatprep.subr.mxu0 %v1055_v0  ;;  %941 = vmatprep.mubr.msk.f32.mxu0 %vm1056_vm0, %v1055_v0  ;;  %s1035_s18 = smul.u32 48, %s1240_s13  ;;  %v171_v11 = vld [vmem:[%s1236_s1] sm:$0xff]  ;;  %vm182_vm1 = vcmask 261120   ;;  %v172_v15 = vld [vmem:[%s1236_s1 + $0x8] sm:$0xff]  ;;  %v173_v18 = vld [vmem:[%s1236_s1 + $0x10] sm:$0xf] }
   0xd   : > { %950 = vmatprep.subr.mxu1 %v1055_v0  ;;  %958 = vmatprep.mubr.msk.f32.mxu1 %vm1056_vm0, %v1055_v0  ;;  %v372_v25 = vld [vmem:[%s1236_s1 + $0x10] sm:$0xf]  ;;  %v272_v27 = vld [vmem:[%s1237_s2] sm:$0xff]  ;;  %s1036_s9 = smul.u32 72, %s1240_s13  ;;  %vm365_vm2 = vcmask 162816   ;;  %vm368_vm3 = vcmask 158720  }
   0xe   : > { %951 = vmatpush3.msra.mxu1 %v1094_v1  ;;  %s1115_s23 = scalar_lea.vmem %s1235_s0, %s1035_s18  ;;  %v570_v26 = vld [vmem:[%s1236_s1 + $0x10] sm:$0xf] }
   0xf   : > { %952 = vmatprep.subr.mxu1 %v1055_v0  ;;  %v886_v4 = vld [vmem:[%s1115_s23 + $0x8] sm:$0xff]   ;;  %v863_v5 = vld [vmem:[%s1115_s23] sm:$0xff]   ;;  %v888_v9 = vld [vmem:[%s1115_s23 + $0x18] sm:$0xff]   ;;  %s170_s14 = scalar_lea.vmem %s1238_s3, %s1036_s9 }
  0x10   : > { %953 = vmatpush3.msra.mxu1 %v1099_v2  ;;  %v868_v6 = vunpack.c.l.bf16 %v886_v4  ;;  %v869_v7 = vunpack.c.h.bf16 %v886_v4  ;;  %v865_v8 = vunpack.c.h.bf16 %v863_v5  ;;  %v864_v10 = vunpack.c.l.bf16 %v863_v5  ;;  %v887_v13 = vld [vmem:[%s1115_s23 + $0x10] sm:$0xff]   ;;  %v890_v19 = vld [vmem:[%s1115_s23 + $0x28] sm:$0xff]   ;;  %v889_v21 = vld [vmem:[%s1115_s23 + $0x20] sm:$0xff]  }
  0x11   : > { %954 = vmatprep.subr.mxu1 %v1055_v0  ;;  %v877_v12 = vunpack.c.h.bf16 %v888_v9  ;;  %v876_v14 = vunpack.c.l.bf16 %v888_v9  ;;  %v873_v16 = vunpack.c.h.bf16 %v887_v13  ;;  %v872_v17 = vunpack.c.l.bf16 %v887_v13 }
  0x12   : > { %955 = vmatpush3.msra.mxu1 %v1109_v3  ;;  %934 = vmatpush3.msra.mxu0 %v869_v7  ;;  %v885_v20 = vunpack.c.h.bf16 %v890_v19  ;;  %v884_v22 = vunpack.c.l.bf16 %v890_v19  ;;  %v881_v23 = vunpack.c.h.bf16 %v889_v21  ;;  %v880_v24 = vunpack.c.l.bf16 %v889_v21 }
  0x13   : > { %956 = vmatprep.subr.mxu1 %v1055_v0  ;;  %935 = vmatprep.subr.mxu0 %v1055_v0 }
  0x14   : > { %936 = vmatpush3.msra.mxu0 %v868_v6  ;;  %957 = vmatpush3.msra.mxu1 %v272_v27 }
  0x15   : > { %937 = vmatprep.subr.mxu0 %v1055_v0  ;;  %984 = vmatprep.subr.mxu1 %v1055_v0 }
  0x16   : > { %938 = vmatpush3.msra.mxu0 %v865_v8 }
  0x17   : > { %939 = vmatprep.subr.mxu0 %v1055_v0 }
  0x18   : > { %940 = vmatpush3.msra.mxu0 %v864_v10 }
  0x19   : > { %942 = vmatmul.mubr.msk.f32.vlgmr.msra.gmra.mxu0 %vm182_vm1, %v171_v11  ;;  %967 = vmatprep.subr.mxu0 %v1055_v0 }
  0x1a   : > { %968 = vmatpush3.msra.mxu0 %v877_v12  ;;  %944 = vmatprep.mubr.msk.f32.mxu0 %vm1056_vm0, %v1055_v0 }
  0x1b   : > { %969 = vmatprep.subr.mxu0 %v1055_v0 }
  0x1c   : > { %970 = vmatpush3.msra.mxu0 %v876_v14 }
  0x1d   : > { %945 = vmatmul.mubr.msk.f32.gmra.mxu0 %vm182_vm1, %v172_v15  ;;  %971 = vmatprep.subr.mxu0 %v1055_v0 }
  0x1e   : > { %947 = vmatprep.mubr.msk.f32.mxu0 %vm1056_vm0, %v1055_v0  ;;  %972 = vmatpush3.msra.mxu0 %v873_v16 }
  0x1f   : > { %973 = vmatprep.subr.mxu0 %v1055_v0 }
  0x20   : > { %974 = vmatpush3.msra.mxu0 %v872_v17 }
  0x21   : > { %948 = vmatmul.mubr.msk.f32.gmra.mxu0 %vm182_vm1, %v173_v18  ;;  %1001 = vmatprep.subr.mxu0 %v1055_v0 }
  0x22   : > { %975 = vmatprep.mubr.msk.f32.mxu0 %vm1056_vm0, %v1055_v0 }
  0x25   : > { %976 = vmatmul.mubr.msk.f32.vlgmr.msra.gmra.mxu0 %vm182_vm1, %v171_v11 }
  0x26   : > { %1002 = vmatpush3.msra.mxu0 %v885_v20  ;;  %978 = vmatprep.mubr.msk.f32.mxu0 %vm1056_vm0, %v1055_v0 }
  0x27   : > { %1003 = vmatprep.subr.mxu0 %v1055_v0 }
  0x28   : > { %1004 = vmatpush3.msra.mxu0 %v884_v22 }
  0x29   : > { %979 = vmatmul.mubr.msk.f32.gmra.mxu0 %vm182_vm1, %v172_v15  ;;  %1005 = vmatprep.subr.mxu0 %v1055_v0 }
  0x2a   : > { %981 = vmatprep.mubr.msk.f32.mxu0 %vm1056_vm0, %v1055_v0  ;;  %1006 = vmatpush3.msra.mxu0 %v881_v23 }
  0x2b   : > { %1007 = vmatprep.subr.mxu0 %v1055_v0 }
  0x2c   : > { %1008 = vmatpush3.msra.mxu0 %v880_v24 }
  0x2d   : > { %982 = vmatmul.mubr.msk.f32.gmra.mxu0 %vm182_vm1, %v372_v25 }
  0x2e   : > { %1009 = vmatprep.mubr.msk.f32.mxu0 %vm1056_vm0, %v1055_v0 }
  0x31   : > { %1010 = vmatmul.mubr.msk.f32.vlgmr.msra.gmra.mxu0 %vm182_vm1, %v171_v11 }
  0x32   : > { %1012 = vmatprep.mubr.msk.f32.mxu0 %vm1056_vm0, %v1055_v0 }
  0x35   : > { %1013 = vmatmul.mubr.msk.f32.gmra.mxu0 %vm182_vm1, %v172_v15 }
  0x36   : > { %1015 = vmatprep.mubr.msk.f32.mxu0 %vm1056_vm0, %v1055_v0 }
  0x39   : > { %1016 = vmatmul.mubr.msk.f32.gmra.mxu0 %vm182_vm1, %v570_v26 }
  0xd9   : > { %v258_v28 = vpop.f32.mrf.mxu0 }
  0xda   : > { %959 = vmatmul.mubr.msk.f32.vlgmr.msra.gmra.mxu1 %vm182_vm1, %v258_v28 }
  0xdb   : > { %v943_v29 = vpop.f32.mrf.mxu0  ;;  %985 = vmatpush3.msra.mxu1 %v1094_v1  ;;  %961 = vmatprep.mubr.msk.f32.mxu1 %vm1056_vm0, %v1055_v0 }
  0xdc   : > { %986 = vmatprep.subr.mxu1 %v1055_v0 }
  0xdd   : > { %v263_v30 = vpop.f32.mrf.mxu0  ;;  %987 = vmatpush3.msra.mxu1 %v1099_v2 }
  0xde   : > { %962 = vmatmul.mubr.msk.f32.gmra.mxu1 %vm182_vm1, %v263_v30  ;;  %988 = vmatprep.subr.mxu1 %v1055_v0 }
  0xdf   : > { %v946_v31 = vpop.f32.mrf.mxu0  ;;  %964 = vmatprep.mubr.msk.f32.mxu1 %vm1056_vm0, %v1055_v0  ;;  %989 = vmatpush3.msra.mxu1 %v1109_v3 }
  0xe0   : > { %990 = vmatprep.subr.mxu1 %v1055_v0 }
  0xe1   : > { %v268_v32 = vpop.f32.mrf.mxu0  ;;  %991 = vmatpush3.msra.mxu1 %v272_v27 }
  0xe2   : > { %965 = vmatmul.mubr.msk.f32.gmra.mxu1 %vm182_vm1, %v268_v32  ;;  %1018 = vmatprep.subr.mxu1 %v1055_v0 }
  0xe3   : > { %v949_v33 = vpop.f32.mrf.mxu0  ;;  %992 = vmatprep.mubr.msk.f32.mxu1 %vm1056_vm0, %v1055_v0 }
  0xe5   : > { %v457_v34 = vpop.f32.mrf.mxu0 }
  0xe6   : > { %993 = vmatmul.mubr.msk.f32.vlgmr.msra.gmra.mxu1 %vm182_vm1, %v457_v34 }
  0xe7   : > { %v977_v35 = vpop.f32.mrf.mxu0  ;;  %1019 = vmatpush3.msra.mxu1 %v1094_v1  ;;  %995 = vmatprep.mubr.msk.f32.mxu1 %vm1056_vm0, %v1055_v0 }
  0xe8   : > { %1020 = vmatprep.subr.mxu1 %v1055_v0 }
  0xe9   : > { %v462_v36 = vpop.f32.mrf.mxu0  ;;  %1021 = vmatpush3.msra.mxu1 %v1099_v2 }
  0xea   : > { %996 = vmatmul.mubr.msk.f32.gmra.mxu1 %vm182_vm1, %v462_v36  ;;  %1022 = vmatprep.subr.mxu1 %v1055_v0 }
  0xeb   : > { %v980_v37 = vpop.f32.mrf.mxu0  ;;  %998 = vmatprep.mubr.msk.f32.mxu1 %vm1056_vm0, %v1055_v0  ;;  %1023 = vmatpush3.msra.mxu1 %v1109_v3 }
  0xec   : > { %1024 = vmatprep.subr.mxu1 %v1055_v0 }
  0xed   : > { %v467_v38 = vpop.f32.mrf.mxu0  ;;  %1025 = vmatpush3.msra.mxu1 %v272_v27 }
  0xee   : > { %999 = vmatmul.mubr.msk.f32.gmra.mxu1 %vm182_vm1, %v467_v38 }
  0xef   : > { %v983_v39 = vpop.f32.mrf.mxu0  ;;  %1026 = vmatprep.mubr.msk.f32.mxu1 %vm1056_vm0, %v1055_v0 }
  0xf1   : > { %v655_v40 = vpop.f32.mrf.mxu0 }
  0xf2   : > { %1027 = vmatmul.mubr.msk.f32.vlgmr.msra.gmra.mxu1 %vm182_vm1, %v655_v40 }
  0xf3   : > { %v1011_v41 = vpop.f32.mrf.mxu0  ;;  %1029 = vmatprep.mubr.msk.f32.mxu1 %vm1056_vm0, %v1055_v0 }
  0xf5   : > { %v660_v42 = vpop.f32.mrf.mxu0 }
  0xf6   : > { %1030 = vmatmul.mubr.msk.f32.gmra.mxu1 %vm182_vm1, %v660_v42 }
  0xf7   : > { %v1014_v43 = vpop.f32.mrf.mxu0  ;;  %1032 = vmatprep.mubr.msk.f32.mxu1 %vm1056_vm0, %v1055_v0 }
  0xf9   : > { %v665_v44 = vpop.f32.mrf.mxu0 }
  0xfa   : > { %1033 = vmatmul.mubr.msk.f32.gmra.mxu1 %vm182_vm1, %v665_v44 }
  0xfb   : > { %v1017_v45 = vpop.f32.mrf.mxu0 }
 0x19a   : > { %v351_v46 = vpop.f32.mrf.mxu1 }
 0x19b   : > { %366 = vst.msk [vmem:[%s170_s14] sm:$0xff] %vm365_vm2, %v351_v46 }
 0x19c   : > { %v960_v47 = vpop.f32.mrf.mxu1 }
 0x19e   : > { %v356_v48 = vpop.f32.mrf.mxu1 }
 0x19f   : > { %367 = vst.msk [vmem:[%s170_s14 + $0x8] sm:$0xff] %vm365_vm2, %v356_v48 }
 0x1a0   : > { %v963_v49 = vpop.f32.mrf.mxu1 }
 0x1a2   : > { %v361_v50 = vpop.f32.mrf.mxu1 }
 0x1a3   : > { %369 = vst.msk [vmem:[%s170_s14 + $0x10] sm:$0xf] %vm368_vm3, %v361_v50 }
 0x1a4   : > { %v966_v51 = vpop.f32.mrf.mxu1 }
 0x1a6   : > { %v550_v52 = vpop.f32.mrf.mxu1 }
 0x1a7   : > { %844 = vst.msk [vmem:[%s170_s14 + $0x18] sm:$0xff] %vm365_vm2, %v550_v52 }
 0x1a8   : > { %v994_v53 = vpop.f32.mrf.mxu1 }
 0x1aa   : > { %v555_v54 = vpop.f32.mrf.mxu1 }
 0x1ab   : > { %845 = vst.msk [vmem:[%s170_s14 + $0x20] sm:$0xff] %vm365_vm2, %v555_v54 }
 0x1ac   : > { %v997_v55 = vpop.f32.mrf.mxu1 }
 0x1ae   : > { %v560_v56 = vpop.f32.mrf.mxu1 }
 0x1af   : > { %846 = vst.msk [vmem:[%s170_s14 + $0x28] sm:$0xf] %vm368_vm3, %v560_v56 }
 0x1b0   : > { %v1000_v57 = vpop.f32.mrf.mxu1 }
 0x1b2   : > { %v748_v58 = vpop.f32.mrf.mxu1 }
 0x1b3   : > { %857 = vst.msk [vmem:[%s170_s14 + $0x30] sm:$0xff] %vm365_vm2, %v748_v58 }
 0x1b4   : > { %v1028_v59 = vpop.f32.mrf.mxu1 }
 0x1b6   : > { %v753_v60 = vpop.f32.mrf.mxu1 }
 0x1b7   : > { %858 = vst.msk [vmem:[%s170_s14 + $0x38] sm:$0xff] %vm365_vm2, %v753_v60 }
 0x1b8   : > { %v1031_v61 = vpop.f32.mrf.mxu1 }
 0x1ba   : > { %v758_v62 = vpop.f32.mrf.mxu1 }
 0x1bb   : > { %859 = vst.msk [vmem:[%s170_s14 + $0x40] sm:$0xf] %vm368_vm3, %v758_v62 }
 0x1bc   : > { %v1034_v63 = vpop.f32.mrf.mxu1 }
 0x1bd PF: > { %s13_s12 = sadd.s32 1, %s1053_s12  }
 0x1be   : > { %p10_p4 = scmp.ge.s32.totalorder %s13_s12, 6  }
 0x1c0   :  { %12 = sbr.rel (!%p10_p4) target bundleno = 1 (0x1), region = 66 }

</bundles_post_ra>
